<compile_context>
chip_gen: v6e
topology: v6e:2x2x1
jax: 0.10.0
libtpu: 0.0.40
codegen_flags: <defaults>
</compile_context>

<pallas_src>
import dataclasses
import functools

import jax
import jax.numpy as jnp
from jax.experimental import pallas as pl
from jax.experimental.pallas import tpu as pltpu


@dataclasses.dataclass(frozen=True)
class SamplerCfg:
    n_pts_per_ray: int = 16
    min_depth: float = 0.5
    max_depth: float = 4.5


_GROUP = 8                     # rays grouped per output row (8 * 3 * 16 = 384 lanes)
_DEFAULT_TILE_G = 512          # grouped rows per block  (= 4096 rays / block)
_MIN_PALLAS_RAYS = 16384       # below this, fused-XLA broadcast-FMA wins (overhead)


# ----------------------------------------------------------------------------
# Kernel: out = o_g @ W_o + d_g @ W_d
#   o_g, d_g : (tile_g, 24)   -- 8 rays x 3 channels per grouped row
#   W_o      : (24, 24*N)     -- one-hot expansion   (o[r8, i] -> lane r8*3N+n*3+i)
#   W_d      : (24, 24*N)     -- z-scaled one-hot    (d[r8, i] * z[n])
#   out      : (tile_g, 24*N) -- lane-dense; reshapes (free) to (rays, N, 3)
# ----------------------------------------------------------------------------
def _points_kernel(wo_ref, wd_ref, o_ref, d_ref, out_ref):
    out_ref[...] = (
        jnp.dot(o_ref[...], wo_ref[...],
                preferred_element_type=jnp.float32,
                precision=jax.lax.Precision.HIGHEST)
        + jnp.dot(d_ref[...], wd_ref[...],
                  preferred_element_type=jnp.float32,
                  precision=jax.lax.Precision.HIGHEST))


def _build_weights(z_vals, g=_GROUP):
    """Constant (24, 24*N) expansion matrices built once per call in XLA."""
    n = z_vals.shape[0]
    lanes_in = 3 * g
    lanes_out = 3 * n * g
    j = jnp.arange(lanes_in)
    k = jnp.arange(lanes_out)
    rj, cj = j // 3, j % 3                       # ray-in-group, channel (input)
    rk = k // (3 * n)                            # ray-in-group (output)
    nk = (k % (3 * n)) // 3                      # sample index
    ck = k % 3                                   # channel (output)
    hit = (rj[:, None] == rk[None, :]) & (cj[:, None] == ck[None, :])
    w_o = hit.astype(jnp.float32)
    w_d = jnp.where(hit, z_vals[nk][None, :], jnp.float32(0.0)).astype(jnp.float32)
    return w_o, w_d


def _pick_tile_g(gm: int) -> int:
    """Grouped rows per block: multiple of 8, grid >= 4 steps when work allows."""
    tile = min(_DEFAULT_TILE_G, gm)
    if gm >= 4 * 8:
        # >= 4 grid steps: pipeline steady state + both TensorCores on v7x megacore.
        # Measured: 512-1024 lane-dense rows already reach ~85% of HBM roofline.
        tile = min(tile, -(-gm // 4))
    if tile >= gm:
        return gm                                # single full-extent block
    return max(8, (tile // 8) * 8)


@functools.partial(jax.jit, static_argnames=("tile_g",))
def _sample_pallas(origins, directions, z_vals, *, tile_g):
    origins = jnp.asarray(origins, jnp.float32)
    directions = jnp.asarray(directions, jnp.float32)
    z_vals = jnp.asarray(z_vals, jnp.float32)
    m = origins.shape[0]
    n = z_vals.shape[0]
    g = _GROUP
    lanes_in = 3 * g                              # 24
    lanes_out = 3 * n * g                         # 384 for N=16 (= 3 * 128)

    m8 = ((m + g - 1) // g) * g
    if m8 != m:                                   # pad rays to a multiple of G, slice back
        pad = ((0, m8 - m), (0, 0))
        origins = jnp.pad(origins, pad)
        directions = jnp.pad(directions, pad)
    gm = m8 // g

    o_g = origins.reshape(gm, lanes_in)           # free row-major reshape
    d_g = directions.reshape(gm, lanes_in)
    w_o, w_d = _build_weights(z_vals, g)

    grid = (pl.cdiv(gm, tile_g),)
    flat = pl.pallas_call(
        _points_kernel,
        out_shape=jax.ShapeDtypeStruct((gm, lanes_out), jnp.float32),
        grid=grid,
        in_specs=[
            pl.BlockSpec((lanes_in, lanes_out), lambda i: (0, 0)),   # W_o (resident)
            pl.BlockSpec((lanes_in, lanes_out), lambda i: (0, 0)),   # W_d (resident)
            pl.BlockSpec((tile_g, lanes_in), lambda i: (i, 0)),      # grouped origins
            pl.BlockSpec((tile_g, lanes_in), lambda i: (i, 0)),      # grouped directions
        ],
        out_specs=pl.BlockSpec((tile_g, lanes_out), lambda i: (i, 0)),
        compiler_params=pltpu.CompilerParams(
            dimension_semantics=("parallel",)),   # working set ~3 MiB: fits v7x 64 MiB
    )(w_o, w_d, o_g, d_g)

    pts = flat.reshape(m8, n, 3)                  # free: splits the minor dim
    if m8 != m:
        pts = pts[:m]
    lens = jnp.broadcast_to(z_vals.reshape(1, n, 1), (m, n, 1))
    return pts, lens


@jax.jit
def _sample_small(origins, directions, z_vals):
    origins = jnp.asarray(origins, jnp.float32)
    directions = jnp.asarray(directions, jnp.float32)
    z_vals = jnp.asarray(z_vals, jnp.float32)
    m = origins.shape[0]
    n = z_vals.shape[0]
    pts = origins[:, None, :] + directions[:, None, :] * z_vals[None, :, None]
    lens = jnp.broadcast_to(z_vals.reshape(1, n, 1), (m, n, 1))
    return pts, lens


def stratified_sample(origins, directions, z_vals, *, use_pallas=None):
    m = origins.shape[0]
    if use_pallas is None:
        use_pallas = m >= _MIN_PALLAS_RAYS
    if not use_pallas:
        return _sample_small(origins, directions, z_vals)
    m8 = ((m + _GROUP - 1) // _GROUP) * _GROUP
    return _sample_pallas(origins, directions, z_vals,
                          tile_g=_pick_tile_g(m8 // _GROUP))


# ----------------------------------------------------------------------------
# Module-level wrapper mirroring HierarchicalStratifiedSampler.forward
# ----------------------------------------------------------------------------
def coarse_z_vals(cfg: SamplerCfg):
    step = (cfg.max_depth - cfg.min_depth) / cfg.n_pts_per_ray
    # torch.arange(min, max, step) -> n_pts_per_ray evenly spaced left bin edges
    return cfg.min_depth + step * jnp.arange(cfg.n_pts_per_ray, dtype=jnp.float32)


def fine_z_vals(cfg: SamplerCfg, key, directions, weights=None):
    # Faithful to the PyTorch reference (weights over direction components when
    # None, one uniform per ray, searchsorted right=True, z_vals of length M).
    # TODO(synk): the data-dependent per-ray inverse-CDF (cumsum + searchsorted +
    # RNG) stays in plain JAX glue; no clean Pallas equivalent for the per-ray
    # binary search, and its length-M z_vals breaks the small-sample-axis layout.
    if weights is None:
        weights = jnp.ones_like(directions)
    weights = weights + 1e-6
    pdf = weights / jnp.sum(weights, axis=1, keepdims=True)
    cdf = jnp.cumsum(pdf, axis=-1)
    u = jax.random.uniform(key, cdf[..., :1].shape, dtype=cdf.dtype)
    idx = jax.vmap(lambda c, uu: jnp.searchsorted(c, uu, side="right"))(cdf, u)
    z = idx.reshape(-1).astype(jnp.float32)
    return z * (cfg.max_depth - cfg.min_depth) / cfg.n_pts_per_ray + cfg.min_depth


def hierarchical_stratified_sampler_forward(cfg, origins, directions, *,
                                            fine=False, weights=None, key=None,
                                            use_pallas=None):
    if not fine:
        z_vals = coarse_z_vals(cfg)
        return stratified_sample(origins, directions, z_vals, use_pallas=use_pallas)
    # Fine pass: always the fused-XLA path (z_vals has length M -> huge lane dim).
    z_vals = fine_z_vals(cfg, key, directions, weights)
    return _sample_small(origins, directions, z_vals)


# ----------------------------------------------------------------------------
if __name__ == "__main__":
    cfg = SamplerCfg(n_pts_per_ray=16, min_depth=0.5, max_depth=4.5)
    key = jax.random.PRNGKey(0)
    k_o, k_d, k_o2, k_d2, k_os, k_ds, k_u = jax.random.split(key, 7)
    z = coarse_z_vals(cfg)

    # --- coarse pass through the Pallas kernel (forced; auto-dispatch would
    #     route M this small to the fused-XLA path per the perf review) ------
    M = 4096                      # gm = 512 grouped rows -> 4 blocks of 128 rows
    origins = jax.random.normal(k_o, (M, 3), dtype=jnp.float32)
    directions = jax.random.normal(k_d, (M, 3), dtype=jnp.float32)
    pts, lens = stratified_sample(origins, directions, z, use_pallas=True)
    pts = jax.block_until_ready(pts)
    lens = jax.block_until_ready(lens)
    assert pts.shape == (M, cfg.n_pts_per_ray, 3)
    assert lens.shape == (M, cfg.n_pts_per_ray, 1)
    ref_pts = origins[:, None, :] + directions[:, None, :] * z[None, :, None]
    ref_lens = jnp.broadcast_to(z[None, :, None], (M, cfg.n_pts_per_ray, 1))
    # MXU HIGHEST-precision f32 matmul is a multi-pass bf16 decomposition: a few
    # ulps of error vs the exact VPU FMA reference -> comfortably within 1e-4.
    assert jnp.allclose(pts, ref_pts, rtol=1e-4, atol=1e-4)
    assert jnp.allclose(lens, ref_lens)

    # --- coarse pass, ragged M (not a multiple of the 8-ray group): pad + slice,
    #     ragged last grid block ------------------------------------------------
    M2 = 999
    o2 = jax.random.normal(k_o2, (M2, 3), dtype=jnp.float32)
    d2 = jax.random.normal(k_d2, (M2, 3), dtype=jnp.float32)
    p2, l2 = stratified_sample(o2, d2, z, use_pallas=True)
    p2 = jax.block_until_ready(p2)
    l2 = jax.block_until_ready(l2)
    r2 = o2[:, None, :] + d2[:, None, :] * z[None, :, None]
    assert p2.shape == (M2, cfg.n_pts_per_ray, 3)
    assert l2.shape == (M2, cfg.n_pts_per_ray, 1)
    assert jnp.allclose(p2, r2, rtol=1e-4, atol=1e-4)

    # --- fine pass on a small problem (inverse-CDF glue + XLA fallback) --------
    Ms = 8
    os_ = jax.random.normal(k_os, (Ms, 3), dtype=jnp.float32)
    ds_ = jax.random.normal(k_ds, (Ms, 3), dtype=jnp.float32)
    pf, lf = hierarchical_stratified_sampler_forward(
        cfg, os_, ds_, fine=True, weights=None, key=k_u)
    pf = jax.block_until_ready(pf)
    lf = jax.block_until_ready(lf)
    zf = fine_z_vals(cfg, k_u, ds_, None)          # same key -> same z_vals
    assert pf.shape == (Ms, Ms, 3) and lf.shape == (Ms, Ms, 1)
    rf = os_[:, None, :] + ds_[:, None, :] * zf[None, :, None]
    assert jnp.allclose(pf, rf, rtol=1e-5, atol=1e-5)

    print("KERNEL_OK")
</pallas_src>

<mosaic_0001>
module attributes {stable_mosaic.version = 11 : i64} {
  func.func @_points_kernel(%arg0: i32, %arg1: memref<24x384xf32, #tpu.memory_space<vmem>>, %arg2: memref<24x384xf32, #tpu.memory_space<vmem>>, %arg3: memref<128x24xf32, #tpu.memory_space<vmem>>, %arg4: memref<128x24xf32, #tpu.memory_space<vmem>>, %arg5: memref<128x384xf32, #tpu.memory_space<vmem>>) attributes {dimension_semantics = [#tpu.dimension_semantics<parallel>], iteration_bounds = array<i64: 4>, scalar_prefetch = 0 : i64, scratch_operands = 0 : i64, tpu.core_type = #tpu.core_type<tc>, window_params = [{pipeline_mode = #tpu.pipeline_mode<synchronous>, transform_indices = @transform_0, window_bounds = array<i64: 24, 384>}, {pipeline_mode = #tpu.pipeline_mode<synchronous>, transform_indices = @transform_1, window_bounds = array<i64: 24, 384>}, {transform_indices = @transform_2, window_bounds = array<i64: 128, 24>}, {transform_indices = @transform_3, window_bounds = array<i64: 128, 24>}, {transform_indices = @transform_4, window_bounds = array<i64: 128, 384>}]} {
    %c0 = arith.constant 0 : index
    %c0_0 = arith.constant 0 : index
    %0 = vector.load %arg3[%c0, %c0_0] : memref<128x24xf32, #tpu.memory_space<vmem>>, vector<128x24xf32>
    %c0_1 = arith.constant 0 : index
    %c0_2 = arith.constant 0 : index
    %1 = vector.load %arg1[%c0_1, %c0_2] : memref<24x384xf32, #tpu.memory_space<vmem>>, vector<24x384xf32>
    %cst = arith.constant dense<0.000000e+00> : vector<128x384xf32>
    %2 = tpu.matmul %0, %1, %cst {dimension_numbers = #tpu.dot_dimension_numbers<[1], [0], [0], [1], [0, 0, 1, 1], [], []>, precision = #tpu.contract_precision<fp32>} : vector<128x24xf32>, vector<24x384xf32>, vector<128x384xf32> -> vector<128x384xf32>
    %c0_3 = arith.constant 0 : index
    %c0_4 = arith.constant 0 : index
    %3 = vector.load %arg4[%c0_3, %c0_4] : memref<128x24xf32, #tpu.memory_space<vmem>>, vector<128x24xf32>
    %c0_5 = arith.constant 0 : index
    %c0_6 = arith.constant 0 : index
    %4 = vector.load %arg2[%c0_5, %c0_6] : memref<24x384xf32, #tpu.memory_space<vmem>>, vector<24x384xf32>
    %cst_7 = arith.constant dense<0.000000e+00> : vector<128x384xf32>
    %5 = tpu.matmul %3, %4, %cst_7 {dimension_numbers = #tpu.dot_dimension_numbers<[1], [0], [0], [1], [0, 0, 1, 1], [], []>, precision = #tpu.contract_precision<fp32>} : vector<128x24xf32>, vector<24x384xf32>, vector<128x384xf32> -> vector<128x384xf32>
    %6 = arith.addf %2, %5 : vector<128x384xf32>
    %c0_8 = arith.constant 0 : index
    %c0_9 = arith.constant 0 : index
    %7 = vector.load %arg5[%c0_8, %c0_9] : memref<128x384xf32, #tpu.memory_space<vmem>>, vector<128x384xf32>
    tpu.vector_store %arg5[%c0_8, %c0_9], %6 {strides = array<i32>} : memref<128x384xf32, #tpu.memory_space<vmem>>, vector<128x384xf32>,
    return
  }
  func.func @transform_0(%arg0: i32) -> (i32, i32) {
    %c0_i32 = arith.constant 0 : i32
    %c0_i32_0 = arith.constant 0 : i32
    %c0_i32_1 = arith.constant 0 : i32
    return %c0_i32, %c0_i32_0 : i32, i32
  }
  func.func @transform_1(%arg0: i32) -> (i32, i32) {
    %c0_i32 = arith.constant 0 : i32
    %c0_i32_0 = arith.constant 0 : i32
    %c0_i32_1 = arith.constant 0 : i32
    return %c0_i32, %c0_i32_0 : i32, i32
  }
  func.func @transform_2(%arg0: i32) -> (i32, i32) {
    %c0_i32 = arith.constant 0 : i32
    %c0_i32_0 = arith.constant 0 : i32
    return %arg0, %c0_i32 : i32, i32
  }
  func.func @transform_3(%arg0: i32) -> (i32, i32) {
    %c0_i32 = arith.constant 0 : i32
    %c0_i32_0 = arith.constant 0 : i32
    return %arg0, %c0_i32 : i32, i32
  }
  func.func @transform_4(%arg0: i32) -> (i32, i32) {
    %c0_i32 = arith.constant 0 : i32
    %c0_i32_0 = arith.constant 0 : i32
    return %arg0, %c0_i32 : i32, i32
  }
}

</mosaic_0001>

<bundles_post_ra>
// kernel: _sample_pallas.1
= control target key start
LH: loop header
LB: loop body
LE: loop exit
PB: predicated region body
PF: predicated region fallthrough
CT: control target
= control target key end

     0   :  { %s5873_s15 = smov 0   ;;  %s8205_s0 = inlined_call_operand.vmem [shape: f32[24,384], index: 0, kind: input, shape index: {}]   ;;  %s8206_s1 = inlined_call_operand.vmem [shape: f32[24,384], index: 1, kind: input, shape index: {}]   ;;  %s8207_s2 = inlined_call_operand.vmem [shape: f32[512,24], index: 2, kind: input, shape index: {}]   ;;  %s8208_s3 = inlined_call_operand.vmem [shape: f32[512,24], index: 3, kind: input, shape index: {}]   ;;  %s8209_s4 = inlined_call_operand.vmem [shape: f32[512,384], index: 4, kind: output, shape index: {}]  }
   0x1 LB: > { %s5228_s16 = sadd.s32 4294967295, %s5845_s15   ;;  %p5232_p0 = scmp.ge.s32.totalorder %s5845_s15, 1  ;;  %s5845_s15 = sphi %s5873_s15, %s14_s15  }
   0x2   : > { %p174_p1 = scmp.lt.s32.totalorder %s5845_s15, 5 }
   0x4   : > { %p175_p2 = pnand %p5232_p0, %p174_p1 }
   0x6   : > { %178 = sbr.rel (%p175_p2) target bundleno = 803 (0x323), region = 36 }
   0xb   : > { %v273_v0 = vld [vmem:[%s8206_s1 + $0x38] sm:$0xff]  ;;  %v272_v1 = vld [vmem:[%s8206_s1 + $0x30] sm:$0xff]  ;;  %v270_v2 = vld [vmem:[%s8206_s1 + $0x20] sm:$0xff]  ;;  %s5233_s23 = sshll.u32 %s5228_s16, 4  ;;  %v8234_v9 = vmov 0.0   ;;  %vm275_vm0 = vcmask 195584  }
   0xc   : > { %v5890_v3 = vand.u32 4294901760, %v273_v0  ;;  %v5892_v4 = vand.u32 4294901760, %v272_v1  ;;  %v5894_v5 = vand.u32 4294901760, %v270_v2  ;;  %v269_v6 = vld [vmem:[%s8206_s1 + $0x18] sm:$0xff]  ;;  %v267_v7 = vld [vmem:[%s8206_s1 + $0x8] sm:$0xff]  ;;  %v266_v8 = vld [vmem:[%s8206_s1] sm:$0xff]  ;;  %394 = vmatprep.mubr.f32.mxu0 %v8234_v9  ;;  %665 = vmatprep.mubr.f32.mxu1 %v8234_v9 }
   0xd   : > { %v5907_v10 = vand.u32 4294901760, %v269_v6  ;;  %v5909_v11 = vand.u32 4294901760, %v267_v7  ;;  %v5911_v12 = vand.u32 4294901760, %v266_v8  ;;  %p207_p3 = scmp.lt.s32.totalorder %s5233_s23, 63 }
   0xe   : > { %351 = vmatprep.subr.mxu0 %v5890_v3  ;;  %v5915_v13 = vsub.f32 %v273_v0, %v5890_v3  ;;  %v5918_v14 = vsub.f32 %v272_v1, %v5892_v4  ;;  %v5921_v15 = vsub.f32 %v270_v2, %v5894_v5 }
   0xf   : > { %353 = vmatpush1.msra.mxu0 %v5892_v4  ;;  %v5925_v16 = vsub.f32 %v269_v6, %v5907_v10  ;;  %v5928_v17 = vsub.f32 %v267_v7, %v5909_v11  ;;  %v5931_v18 = vsub.f32 %v266_v8, %v5911_v12  ;;  %s8780_s23 = smov (!%p207_p3, %s5233_s23), 63 }
  0x10   : > { %v599_v19 = vand.u32 4294901760, %v5915_v13  ;;  %355 = vmatprep.subr.mxu0 %v5894_v5  ;;  %v8214_v20 = vand.u32 4294901760, %v5918_v14  ;;  %v8213_v21 = vand.u32 4294901760, %v5921_v15  ;;  %s5234_s30 = sshll.u32 %s8780_s23, 3  ;;  %s5829_s11 = smul.u32 24, %s8780_s23 }
  0x11   : > { %357 = vmatpush1.msra.mxu0 %v5907_v10  ;;  %v8212_v22 = vand.u32 4294901760, %v5925_v16  ;;  %v8211_v23 = vand.u32 4294901760, %v5928_v17  ;;  %v8210_v24 = vand.u32 4294901760, %v5931_v18  ;;  %s5959_s7 = scalar_lea.vmem %s8208_s3, %s5234_s30  ;;  %s6704_s5 = scalar_lea.vmem %s8207_s2, %s5234_s30 }
  0x12   : > { %v600_v25 = vsub.f32 %v5915_v13, %v599_v19  ;;  %v606_v26 = vsub.f32 %v5918_v14, %v8214_v20  ;;  %v612_v27 = vsub.f32 %v5921_v15, %v8213_v21  ;;  %359 = vmatprep.subr.mxu0 %v5909_v11  ;;  %v250_v31 = vld [vmem:[%s5959_s7] sm:$0xff]  ;;  %v251_v32 = vld [vmem:[%s5959_s7 + $0x8] sm:$0xff]  ;;  %v252_v33 = vld [vmem:[%s5959_s7 + $0x10] sm:$0xff]  ;;  %s7906_s23 = scalar_lea.vmem %s8209_s4, %s5829_s11 }
  0x13   : > { %v618_v28 = vsub.f32 %v5925_v16, %v8212_v22  ;;  %361 = vmatpush1.msra.mxu0 %v5911_v12  ;;  %v624_v29 = vsub.f32 %v5928_v17, %v8211_v23  ;;  %v630_v30 = vsub.f32 %v5931_v18, %v8210_v24  ;;  %v277_v37 = vsel %vm275_vm0, %v250_v31, 0  ;;  %v253_v38 = vld [vmem:[%s5959_s7 + $0x18] sm:$0xff]  ;;  %v254_v39 = vld [vmem:[%s5959_s7 + $0x20] sm:$0xff]  ;;  %v255_v55 = vld [vmem:[%s5959_s7 + $0x28] sm:$0xff] }
  0x14   : > { %v601_v34 = vand.u32 4294901760, %v600_v25  ;;  %v607_v35 = vand.u32 4294901760, %v606_v26  ;;  %v613_v36 = vand.u32 4294901760, %v612_v27  ;;  %806 = vmatprep.subr.mxu0 %v5915_v13  ;;  %v5978_v43 = vand.u32 4294901760, %v277_v37  ;;  %v256_v61 = vld [vmem:[%s5959_s7 + $0x30] sm:$0xff]  ;;  %v257_v26 = vld [vmem:[%s5959_s7 + $0x38] sm:$0xff] }
  0x15   : > { %v619_v40 = vand.u32 4294901760, %v618_v28  ;;  %v625_v41 = vand.u32 4294901760, %v624_v29  ;;  %v631_v42 = vand.u32 4294901760, %v630_v30  ;;  %v280_v44 = vsel %vm275_vm0, %v251_v32, 0  ;;  %v264_v21 = vld [vmem:[%s5959_s7 + $0x70] sm:$0xff] }
  0x16   : > { %8360 = vst [vmem:[#allocation2_spill] sm:$0xff] %v5978_v43  ;;  %602 = vmatprep.subr.mxu1 %v601_v34  ;;  %v283_v45 = vsel %vm275_vm0, %v252_v33, 0  ;;  %v286_v46 = vsel %vm275_vm0, %v253_v38, 0  ;;  %v289_v47 = vsel %vm275_vm0, %v254_v39, 0  ;;  %v5985_v48 = vsub.f32 %v277_v37, %v5978_v43  ;;  %v258_v33 = vld [vmem:[%s5959_s7 + $0x40] sm:$0xff] }
  0x17   : > { %608 = vmatpush1.msra.mxu1 %v607_v35  ;;  %v5987_v49 = vand.u32 4294901760, %v280_v44  ;;  %v5989_v50 = vand.u32 4294901760, %v283_v45  ;;  %v5991_v51 = vand.u32 4294901760, %v286_v46  ;;  %v6003_v56 = vand.u32 4294901760, %v289_v47 }
  0x18   : > { %614 = vmatprep.subr.mxu1 %v613_v36  ;;  %v5994_v52 = vand.u32 4294901760, %v5985_v48  ;;  %v292_v62 = vsel %vm275_vm0, %v255_v55, 0  ;;  %v295_v2 = vsel %vm275_vm0, %v256_v61, 0  ;;  %v298_v28 = vsel %vm275_vm0, %v257_v26, 0 }
  0x19   : > { %8361 = vst [vmem:[#allocation3_spill] sm:$0xff] %v5987_v49  ;;  %8362 = vst [vmem:[#allocation4_spill] sm:$0xff] %v5989_v50  ;;  %620 = vmatpush1.msra.mxu1 %v619_v40  ;;  %v5997_v53 = vsub.f32 %v280_v44, %v5987_v49  ;;  %v6000_v54 = vsub.f32 %v283_v45, %v5989_v50  ;;  %v6014_v60 = vsub.f32 %v286_v46, %v5991_v51  ;;  %v259_v40 = vld [vmem:[%s5959_s7 + $0x48] sm:$0xff]  ;;  %v260_v45 = vld [vmem:[%s5959_s7 + $0x50] sm:$0xff] }
  0x1a   : > { %8363 = vst [vmem:[#allocation5_spill] sm:$0xff] %v5991_v51  ;;  %626 = vmatprep.subr.mxu1 %v625_v41  ;;  %v398_v57 = vsub.f32 %v5985_v48, %v5994_v52  ;;  %v6027_v1 = vsub.f32 %v289_v47, %v6003_v56  ;;  %v6039_v25 = vand.u32 4294901760, %v292_v62  ;;  %v6049_v27 = vand.u32 4294901760, %v295_v2 }
  0x1b   : > { %632 = vmatpush1.msra.mxu1 %v631_v42  ;;  %v6008_v58 = vand.u32 4294901760, %v5997_v53  ;;  %v6011_v59 = vand.u32 4294901760, %v6000_v54  ;;  %v6037_v8 = vand.u32 4294901760, %v6014_v60  ;;  %v6070_v34 = vand.u32 4294901760, %v298_v28 }
  0x1c   : > { %667 = vmatmul.mubr.f32.vlgmr.msra.gmra.mxu1 %v5978_v43  ;;  %1010 = vmatprep.subr.mxu1 %v5890_v3  ;;  %v6020_v63 = vand.u32 4294901760, %v398_v57  ;;  %8366 = vst [vmem:[#allocation8_spill] sm:$0xff] %v6049_v27  ;;  %v6058_v31 = vand.u32 4294901760, %v6027_v1  ;;  %v6061_v32 = vsub.f32 %v292_v62, %v6039_v25  ;;  %v6082_v38 = vsub.f32 %v295_v2, %v6049_v27  ;;  %v261_v62 = vld [vmem:[%s5959_s7 + $0x58] sm:$0xff] }
  0x1d   : > { %1012 = vmatpush1.msra.mxu1 %v5892_v4  ;;  %672 = vmatprep.mubr.f32.mxu1 %v8234_v9  ;;  %v409_v0 = vsub.f32 %v5997_v53, %v6008_v58  ;;  %v420_v7 = vsub.f32 %v6000_v54, %v6011_v59  ;;  %v431_v30 = vsub.f32 %v6014_v60, %v6037_v8  ;;  %v301_v39 = vsel %vm275_vm0, %v258_v33, 0 }
  0x1e   : > { %8364 = vst [vmem:[#allocation6_spill] sm:$0xff] %v6020_v63  ;;  %1014 = vmatprep.subr.mxu1 %v5894_v5  ;;  %400 = vmatmul.mubr.f32.vlgmr.msra.gmra.mxu0 %v6020_v63  ;;  %v442_v36 = vsub.f32 %v6027_v1, %v6058_v31  ;;  %v6079_v37 = vand.u32 4294901760, %v6061_v32  ;;  %v6093_v41 = vsub.f32 %v298_v28, %v6070_v34  ;;  %v6101_v42 = vand.u32 4294901760, %v6082_v38 }
  0x1f   : > { %v6032_v6 = vand.u32 4294901760, %v409_v0  ;;  %1016 = vmatpush1.msra.mxu1 %v5907_v10  ;;  %809 = vmatpush1.msra.mxu0 %v5918_v14  ;;  %v6053_v29 = vand.u32 4294901760, %v420_v7  ;;  %v6074_v35 = vand.u32 4294901760, %v431_v30  ;;  %v304_v44 = vsel %vm275_vm0, %v259_v40, 0 }
  0x20   : > { %405 = vmatprep.mubr.f32.mxu0 %v8234_v9  ;;  %674 = vmatmul.mubr.f32.gmra.mxu1 %v5987_v49  ;;  %v6096_v13 = vand.u32 4294901760, %v442_v36  ;;  %v6111_v46 = vand.u32 4294901760, %v6093_v41  ;;  %v464_v55 = vsub.f32 %v6082_v38, %v6101_v42  ;;  %v6121_v61 = vand.u32 4294901760, %v304_v44  ;;  %v262_v36 = vld [vmem:[%s5959_s7 + $0x60] sm:$0xff] }
  0x21   : > { %8365 = vst [vmem:[#allocation7_spill] sm:$0xff] %v6032_v6  ;;  %812 = vmatprep.subr.mxu0 %v5921_v15  ;;  %679 = vmatprep.mubr.f32.mxu1 %v8234_v9  ;;  %8367 = vst [vmem:[#allocation9_spill] sm:$0xff] %v6053_v29  ;;  %v307_v0 = vsel %vm275_vm0, %v260_v45, 0  ;;  %v310_v7 = vsel %vm275_vm0, %v261_v62, 0  ;;  %v263_v62 = vld [vmem:[%s5959_s7 + $0x68] sm:$0xff] }
  0x22   : > { %815 = vmatpush1.msra.mxu0 %v5925_v16  ;;  %1018 = vmatprep.subr.mxu1 %v5909_v11  ;;  %8368 = vst [vmem:[#allocation10_spill] sm:$0xff] %v6074_v35  ;;  %8369 = vst [vmem:[#allocation11_spill] sm:$0xff] %v6096_v13  ;;  %v475_v2 = vsub.f32 %v6093_v41, %v6111_v46  ;;  %v6132_v26 = vand.u32 4294901760, %v464_v55  ;;  %v6138_v30 = vsub.f32 %v304_v44, %v6121_v61 }
  0x23   : > { %411 = vmatmul.mubr.f32.gmra.mxu0 %v6032_v6  ;;  %818 = vmatprep.subr.mxu0 %v5928_v17  ;;  %v6140_v33 = vand.u32 4294901760, %v307_v0  ;;  %v6148_v40 = vand.u32 4294901760, %v310_v7  ;;  %v313_v55 = vsel %vm275_vm0, %v262_v36, 0  ;;  %v316_v24 = vsel %vm275_vm0, %v263_v62, 0 }
  0x24   : > { %416 = vmatprep.mubr.f32.mxu0 %v8234_v9  ;;  %821 = vmatpush1.msra.mxu0 %v5931_v18  ;;  %8372 = vst [vmem:[#allocation14_spill] sm:$0xff] %v6132_v26  ;;  %v6154_v44 = vand.u32 4294901760, %v6138_v30  ;;  %v6182_v62 = vand.u32 4294901760, %v316_v24 }
  0x25   : > { %681 = vmatmul.mubr.f32.gmra.mxu1 %v5989_v50  ;;  %1227 = vmatprep.subr.mxu0 %v599_v19  ;;  %v453_v19 = vsub.f32 %v6061_v32, %v6079_v37  ;;  %8373 = vst [vmem:[#allocation15_spill] sm:$0xff] %v6140_v33  ;;  %8375 = vst [vmem:[#allocation17_spill] sm:$0xff] %v6148_v40  ;;  %v6157_v45 = vsub.f32 %v307_v0, %v6140_v33 }
  0x26   : > { %686 = vmatprep.mubr.f32.mxu1 %v8234_v9  ;;  %1020 = vmatpush1.msra.mxu1 %v5911_v12  ;;  %v497_v0 = vsub.f32 %v6138_v30, %v6154_v44  ;;  %v6176_v22 = vsub.f32 %v310_v7, %v6148_v40  ;;  %8378 = vst [vmem:[#allocation20_spill] sm:$0xff] %v6182_v62 }
  0x27   : > { %422 = vmatmul.mubr.f32.gmra.mxu0 %v6053_v29  ;;  %1420 = vmatprep.subr.mxu1 %v5890_v3  ;;  %v6103_v3 = vand.u32 4294901760, %v301_v39  ;;  %v6114_v47 = vand.u32 4294901760, %v453_v19  ;;  %v6173_v36 = vand.u32 4294901760, %v6157_v45 }
  0x28   : > { %427 = vmatprep.mubr.f32.mxu0 %v8234_v9  ;;  %v6186_v20 = vand.u32 4294901760, %v497_v0  ;;  %v6191_v7 = vand.u32 4294901760, %v6176_v22 }
  0x29   : > { %688 = vmatmul.mubr.f32.gmra.mxu1 %v5991_v51  ;;  %8370 = vst [vmem:[#allocation12_spill] sm:$0xff] %v6103_v3  ;;  %8371 = vst [vmem:[#allocation13_spill] sm:$0xff] %v6114_v47  ;;  %v6119_v57 = vsub.f32 %v301_v39, %v6103_v3  ;;  %v6146_v39 = vand.u32 4294901760, %v475_v2  ;;  %v6164_v2 = vand.u32 4294901760, %v313_v55 }
  0x2a   : > { %693 = vmatprep.mubr.f32.mxu1 %v8234_v9  ;;  %8379 = vst [vmem:[#allocation21_spill] sm:$0xff] %v6186_v20 }
  0x2b   : > { %433 = vmatmul.mubr.f32.gmra.mxu0 %v6074_v35  ;;  %v6135_v28 = vand.u32 4294901760, %v6119_v57  ;;  %8374 = vst [vmem:[#allocation16_spill] sm:$0xff] %v6146_v39  ;;  %8376 = vst [vmem:[#allocation18_spill] sm:$0xff] %v6164_v2 }
  0x2c   : > { %438 = vmatprep.mubr.f32.mxu0 %v8234_v9 }
  0x2d   : > { %695 = vmatmul.mubr.f32.gmra.mxu1 %v6003_v56  ;;  %v486_v19 = vsub.f32 %v6119_v57, %v6135_v28 }
  0x2e   : > { %700 = vmatprep.mubr.f32.mxu1 %v8234_v9 }
  0x2f   : > { %444 = vmatmul.mubr.f32.gmra.mxu0 %v6096_v13  ;;  %v6168_v23 = vand.u32 4294901760, %v486_v19  ;;  %v319_v19 = vsel %vm275_vm0, %v264_v21, 0 }
  0x30   : > { %449 = vmatprep.mubr.f32.mxu0 %v8234_v9  ;;  %v6200_v21 = vand.u32 4294901760, %v319_v19 }
  0x31   : > { %702 = vmatmul.mubr.f32.gmra.mxu1 %v6039_v25  ;;  %8377 = vst [vmem:[#allocation19_spill] sm:$0xff] %v6168_v23 }
  0x32   : > { %707 = vmatprep.mubr.f32.mxu1 %v8234_v9  ;;  %8380 = vst [vmem:[#allocation22_spill] sm:$0xff] %v6200_v21 }
  0x33   : > { %455 = vmatmul.mubr.f32.gmra.mxu0 %v6114_v47  ;;  %v265_v47 = vld [vmem:[%s5959_s7 + $0x78] sm:$0xff] }
  0x34   : > { %460 = vmatprep.mubr.f32.mxu0 %v8234_v9  ;;  %v322_v35 = vsel %vm275_vm0, %v265_v47, 0 }
  0x35   : > { %709 = vmatmul.mubr.f32.gmra.mxu1 %v6049_v27  ;;  %v6228_v6 = vand.u32 4294901760, %v322_v35 }
  0x36   : > { %714 = vmatprep.mubr.f32.mxu1 %v8234_v9 }
  0x37   : > { %466 = vmatmul.mubr.f32.gmra.mxu0 %v6132_v26  ;;  %v6194_v26 = vsub.f32 %v313_v55, %v6164_v2  ;;  %v6211_v55 = vsub.f32 %v316_v24, %v6182_v62 }
  0x38   : > { %471 = vmatprep.mubr.f32.mxu0 %v8234_v9 }
  0x39   : > { %716 = vmatmul.mubr.f32.gmra.mxu1 %v6070_v34  ;;  %v6208_v13 = vand.u32 4294901760, %v6194_v26  ;;  %v6226_v24 = vand.u32 4294901760, %v6211_v55 }
  0x3a   : > { %721 = vmatprep.mubr.f32.mxu1 %v8234_v9 }
  0x3b   : > { %477 = vmatmul.mubr.f32.gmra.mxu0 %v6146_v39  ;;  %v508_v39 = vsub.f32 %v6157_v45, %v6173_v36  ;;  %v530_v29 = vsub.f32 %v6194_v26, %v6208_v13 }
  0x3c   : > { %482 = vmatprep.mubr.f32.mxu0 %v8234_v9 }
  0x3d   : > { %723 = vmatmul.mubr.f32.gmra.mxu1 %v6103_v3  ;;  %v6203_v0 = vand.u32 4294901760, %v508_v39  ;;  %v6218_v39 = vsub.f32 %v319_v19, %v6200_v21  ;;  %v6234_v47 = vand.u32 4294901760, %v530_v29 }
  0x3e   : > { %728 = vmatprep.mubr.f32.mxu1 %v8234_v9 }
  0x3f   : > { %488 = vmatmul.mubr.f32.gmra.mxu0 %v6168_v23  ;;  %8381 = vst [vmem:[#allocation23_spill] sm:$0xff] %v6203_v0  ;;  %v519_v23 = vsub.f32 %v6176_v22, %v6191_v7  ;;  %8383 = vst [vmem:[#allocation25_spill] sm:$0xff] %v6234_v47  ;;  %v6239_v19 = vand.u32 4294901760, %v6218_v39 }
  0x40   : > { %493 = vmatprep.mubr.f32.mxu0 %v8234_v9 }
  0x41   : > { %730 = vmatmul.mubr.f32.gmra.mxu1 %v6121_v61  ;;  %v552_v29 = vsub.f32 %v6218_v39, %v6239_v19 }
  0x42   : > { %735 = vmatprep.mubr.f32.mxu1 %v8234_v9 }
  0x43   : > { %499 = vmatmul.mubr.f32.gmra.mxu0 %v6186_v20  ;;  %v6221_v20 = vand.u32 4294901760, %v519_v23  ;;  %v541_v23 = vsub.f32 %v6211_v55, %v6226_v24 }
  0x44   : > { %504 = vmatprep.mubr.f32.mxu0 %v8234_v9 }
  0x45   : > { %737 = vmatmul.mubr.f32.gmra.mxu1 %v6140_v33  ;;  %8382 = vst [vmem:[#allocation24_spill] sm:$0xff] %v6221_v20 }
  0x46   : > { %742 = vmatprep.mubr.f32.mxu1 %v8234_v9 }
  0x47   : > { %510 = vmatmul.mubr.f32.gmra.mxu0 %v6203_v0  ;;  %v6242_v0 = vsub.f32 %v322_v35, %v6228_v6  ;;  %v274_v35 = vld [vmem:[%s8206_s1 + $0x40] sm:$0xff] }
  0x48   : > { %515 = vmatprep.mubr.f32.mxu0 %v8234_v9 }
  0x49   : > { %744 = vmatmul.mubr.f32.gmra.mxu1 %v6148_v40  ;;  %8384 = vst [vmem:[#allocation26_spill] sm:$0xff] %v6242_v0  ;;  %v6253_v63 = vand.u32 4294901760, %v6242_v0 }
  0x4a   : > { %749 = vmatprep.mubr.f32.mxu1 %v8234_v9 }
  0x4b   : > { %521 = vmatmul.mubr.f32.gmra.mxu0 %v6221_v20  ;;  %v6248_v20 = vand.u32 4294901760, %v541_v23  ;;  %v6262_v23 = vand.u32 4294901760, %v552_v29 }
  0x4c   : > { %526 = vmatprep.mubr.f32.mxu0 %v8234_v9 }
  0x4d   : > { %751 = vmatmul.mubr.f32.gmra.mxu1 %v6164_v2  ;;  %8385 = vst [vmem:[#allocation27_spill] sm:$0xff] %v6248_v20  ;;  %v6268_v2 = vand.u32 4294901760, %v274_v35 }
  0x4e   : > { %756 = vmatprep.mubr.f32.mxu1 %v8234_v9 }
  0x4f   : > { %532 = vmatmul.mubr.f32.gmra.mxu0 %v6234_v47  ;;  %v563_v47 = vsub.f32 %v6242_v0, %v6253_v63  ;;  %v6277_v29 = vsub.f32 %v274_v35, %v6268_v2  ;;  %v8388_v35 = vand.u32 4294901760, %v5921_v15 }
  0x50   : > { %537 = vmatprep.mubr.f32.mxu0 %v8234_v9 }
  0x51   : > { %758 = vmatmul.mubr.f32.gmra.mxu1 %v6182_v62  ;;  %v6272_v62 = vand.u32 4294901760, %v563_v47  ;;  %v8387_v47 = vand.u32 4294901760, %v5918_v14  ;;  %v8391_v14 = vand.u32 4294901760, %v5931_v18 }
  0x52   : > { %763 = vmatprep.mubr.f32.mxu1 %v8234_v9 }
  0x53   : > { %543 = vmatmul.mubr.f32.gmra.mxu0 %v6248_v20  ;;  %8386 = vst [vmem:[#allocation28_spill] sm:$0xff] %v6272_v62  ;;  %v6284_v20 = vand.u32 4294901760, %v6277_v29 }
  0x54   : > { %548 = vmatprep.mubr.f32.mxu0 %v8234_v9 }
  0x55   : > { %765 = vmatmul.mubr.f32.gmra.mxu1 %v6200_v21 }
  0x56   : > { %770 = vmatprep.mubr.f32.mxu1 %v8234_v9 }
  0x57   : > { %554 = vmatmul.mubr.f32.gmra.mxu0 %v6262_v23 }
  0x58   : > { %559 = vmatprep.mubr.f32.mxu0 %v8234_v9 }
  0x59   : > { %772 = vmatmul.mubr.f32.gmra.mxu1 %v6228_v6 }
  0x5a   : > { %1053 = vmatprep.mubr.f32.mxu1 %v8234_v9 }
  0x5b   : > { %565 = vmatmul.mubr.f32.gmra.mxu0 %v6272_v62  ;;  %v1834_v62 = vsub.f32 %v6277_v29, %v6284_v20 }
  0x5c   : > { %854 = vmatprep.mubr.f32.mxu0 %v8234_v9 }
  0x5d   : > { %1057 = vmatmul.mubr.f32.vlgmr.msra.gmra.mxu1 %v5994_v52  ;;  %v6309_v15 = vand.u32 4294901760, %v1834_v62 }
  0x5e   : > { %1422 = vmatpush1.msra.mxu1 %v5892_v4  ;;  %1062 = vmatprep.mubr.f32.mxu1 %v8234_v9  ;;  %v8389_v4 = vand.u32 4294901760, %v5925_v16  ;;  %v268_v16 = vld [vmem:[%s8206_s1 + $0x10] sm:$0xff] }
  0x5f   : > { %857 = vmatmul.mubr.f32.vlgmr.msra.gmra.mxu0 %v5985_v48  ;;  %1424 = vmatprep.subr.mxu1 %v5894_v5  ;;  %v8390_v5 = vand.u32 4294901760, %v5928_v17  ;;  %v6371_v17 = vand.u32 4294901760, %v268_v16 }
  0x60   : > { %1231 = vmatpush1.msra.mxu0 %v8387_v47  ;;  %862 = vmatprep.mubr.f32.mxu0 %v8234_v9 }
  0x61   : > { %1066 = vmatmul.mubr.f32.gmra.mxu1 %v6008_v58  ;;  %1235 = vmatprep.subr.mxu0 %v8388_v35  ;;  %v6381_v62 = vsub.f32 %v268_v16, %v6371_v17  ;;  %v8394_v16 = vld [vmem:[#allocation6_spill] sm:$0xff] }
  0x62   : > { %1071 = vmatprep.mubr.f32.mxu1 %v8234_v9  ;;  %1239 = vmatpush1.msra.mxu0 %v8389_v4 }
  0x63   : > { %865 = vmatmul.mubr.f32.gmra.mxu0 %v5997_v53  ;;  %1426 = vmatpush1.msra.mxu1 %v5907_v10  ;;  %v271_v10 = vld [vmem:[%s8206_s1 + $0x28] sm:$0xff]  ;;  %v6390_v35 = vand.u32 4294901760, %v6381_v62 }
  0x64   : > { %870 = vmatprep.mubr.f32.mxu0 %v8234_v9  ;;  %1243 = vmatprep.subr.mxu0 %v8390_v5 }
  0x65   : > { %1075 = vmatmul.mubr.f32.gmra.mxu1 %v6011_v59  ;;  %1247 = vmatpush1.msra.mxu0 %v8391_v14  ;;  %v1848_v5 = vsub.f32 %v6381_v62, %v6390_v35 }
  0x66   : > { %1080 = vmatprep.mubr.f32.mxu1 %v8234_v9  ;;  %1428 = vmatprep.subr.mxu1 %v5909_v11  ;;  %v6356_v11 = vand.u32 4294901760, %v271_v10 }
  0x67   : > { %873 = vmatmul.mubr.f32.gmra.mxu0 %v6000_v54  ;;  %1430 = vmatpush1.msra.mxu1 %v5911_v12  ;;  %v1849_v14 = vand.u32 4294901760, %v1848_v5 }
  0x68   : > { %878 = vmatprep.mubr.f32.mxu0 %v8234_v9  ;;  %5469 = vmatprep.subr.mxu0 %v6268_v2  ;;  %v6363_v12 = vsub.f32 %v271_v10, %v6356_v11  ;;  %v8393_v10 = vld [vmem:[#allocation20_spill] sm:$0xff] }
  0x69   : > { %1084 = vmatmul.mubr.f32.gmra.mxu1 %v6037_v8  ;;  %5499 = vmatprep.subr.mxu1 %v6309_v15 }
  0x6a   : > { %1089 = vmatprep.mubr.f32.mxu1 %v8234_v9  ;;  %v6375_v18 = vand.u32 4294901760, %v6363_v12 }
  0x6b   : > { %881 = vmatmul.mubr.f32.gmra.mxu0 %v6014_v60 }
  0x6c   : > { %886 = vmatprep.mubr.f32.mxu0 %v8234_v9  ;;  %v1841_v47 = vsub.f32 %v6363_v12, %v6375_v18 }
  0x6d   : > { %1093 = vmatmul.mubr.f32.gmra.mxu1 %v6058_v31 }
  0x6e   : > { %1098 = vmatprep.mubr.f32.mxu1 %v8234_v9  ;;  %v1842_v4 = vand.u32 4294901760, %v1841_v47 }
  0x6f   : > { %889 = vmatmul.mubr.f32.gmra.mxu0 %v6027_v1 }
  0x70   : > { %894 = vmatprep.mubr.f32.mxu0 %v8234_v9 }
  0x71   : > { %1102 = vmatmul.mubr.f32.gmra.mxu1 %v6079_v37 }
  0x72   : > { %1107 = vmatprep.mubr.f32.mxu1 %v8234_v9 }
  0x73   : > { %897 = vmatmul.mubr.f32.gmra.mxu0 %v6061_v32 }
  0x74   : > { %902 = vmatprep.mubr.f32.mxu0 %v8234_v9 }
  0x75   : > { %1111 = vmatmul.mubr.f32.gmra.mxu1 %v6101_v42 }
  0x76   : > { %1116 = vmatprep.mubr.f32.mxu1 %v8234_v9 }
  0x77   : > { %905 = vmatmul.mubr.f32.gmra.mxu0 %v6082_v38 }
  0x78   : > { %910 = vmatprep.mubr.f32.mxu0 %v8234_v9 }
  0x79   : > { %1120 = vmatmul.mubr.f32.gmra.mxu1 %v6111_v46 }
  0x7a   : > { %1125 = vmatprep.mubr.f32.mxu1 %v8234_v9 }
  0x7b   : > { %913 = vmatmul.mubr.f32.gmra.mxu0 %v6093_v41 }
  0x7c   : > { %918 = vmatprep.mubr.f32.mxu0 %v8234_v9 }
  0x7d   : > { %1129 = vmatmul.mubr.f32.gmra.mxu1 %v6135_v28 }
  0x7e   : > { %1134 = vmatprep.mubr.f32.mxu1 %v8234_v9 }
  0x7f   : > { %921 = vmatmul.mubr.f32.gmra.mxu0 %v6119_v57 }
  0x80   : > { %926 = vmatprep.mubr.f32.mxu0 %v8234_v9 }
  0x81   : > { %1138 = vmatmul.mubr.f32.gmra.mxu1 %v6154_v44 }
  0x82   : > { %1143 = vmatprep.mubr.f32.mxu1 %v8234_v9 }
  0x83   : > { %929 = vmatmul.mubr.f32.gmra.mxu0 %v6138_v30 }
  0x84   : > { %934 = vmatprep.mubr.f32.mxu0 %v8234_v9 }
  0x85   : > { %1147 = vmatmul.mubr.f32.gmra.mxu1 %v6173_v36 }
  0x86   : > { %1152 = vmatprep.mubr.f32.mxu1 %v8234_v9 }
  0x87   : > { %937 = vmatmul.mubr.f32.gmra.mxu0 %v6157_v45 }
  0x88   : > { %942 = vmatprep.mubr.f32.mxu0 %v8234_v9 }
  0x89   : > { %1156 = vmatmul.mubr.f32.gmra.mxu1 %v6191_v7 }
  0x8a   : > { %1161 = vmatprep.mubr.f32.mxu1 %v8234_v9 }
  0x8b   : > { %945 = vmatmul.mubr.f32.gmra.mxu0 %v6176_v22 }
  0x8c   : > { %950 = vmatprep.mubr.f32.mxu0 %v8234_v9 }
  0x8d   : > { %1165 = vmatmul.mubr.f32.gmra.mxu1 %v6208_v13 }
  0x8e   : > { %1170 = vmatprep.mubr.f32.mxu1 %v8234_v9 }
  0x8f   : > { %953 = vmatmul.mubr.f32.gmra.mxu0 %v6194_v26 }
  0x90   : > { %958 = vmatprep.mubr.f32.mxu0 %v8234_v9 }
  0x91   : > { %1174 = vmatmul.mubr.f32.gmra.mxu1 %v6226_v24 }
  0x92   : > { %1179 = vmatprep.mubr.f32.mxu1 %v8234_v9 }
  0x93   : > { %961 = vmatmul.mubr.f32.gmra.mxu0 %v6211_v55 }
  0x94   : > { %966 = vmatprep.mubr.f32.mxu0 %v8234_v9 }
  0x95   : > { %1183 = vmatmul.mubr.f32.gmra.mxu1 %v6239_v19 }
  0x96   : > { %1188 = vmatprep.mubr.f32.mxu1 %v8234_v9 }
  0x97   : > { %969 = vmatmul.mubr.f32.gmra.mxu0 %v6218_v39 }
  0x98   : > { %974 = vmatprep.mubr.f32.mxu0 %v8234_v9 }
  0x99   : > { %1192 = vmatmul.mubr.f32.gmra.mxu1 %v6253_v63 }
  0x9a   : > { %1463 = vmatprep.mubr.f32.mxu1 %v8234_v9 }
  0x9b   : > { %977 = vmatmul.mubr.f32.gmra.mxu0 %v6242_v0  ;;  %v8396_v0 = vld [vmem:[#allocation9_spill] sm:$0xff] }
  0x9c   : > { %1280 = vmatprep.mubr.f32.mxu0 %v8234_v9 }
  0x9d   : > { %1465 = vmatmul.mubr.f32.vlgmr.msra.gmra.mxu1 %v5978_v43 }
  0x9e   : > { %5500 = vmatpush3.msra.mxu1 %v6309_v15  ;;  %1470 = vmatprep.mubr.f32.mxu1 %v8234_v9  ;;  %v8392_v15 = vld [vmem:[#allocation18_spill] sm:$0xff] }
  0x9f   : > { %1282 = vmatmul.mubr.f32.vlgmr.msra.gmra.mxu0 %v5978_v43  ;;  %5501 = vmatprep.subr.mxu1 %v1842_v4 }
  0xa0   : > { %5470 = vmatpush3.msra.mxu0 %v6268_v2  ;;  %1287 = vmatprep.mubr.f32.mxu0 %v8234_v9 }
  0xa1   : > { %1472 = vmatmul.mubr.f32.gmra.mxu1 %v5987_v49  ;;  %5471 = vmatprep.subr.mxu0 %v6356_v11 }
  0xa2   : > { %1477 = vmatprep.mubr.f32.mxu1 %v8234_v9  ;;  %5472 = vmatpush3.msra.mxu0 %v6356_v11 }
  0xa3   : > { %1289 = vmatmul.mubr.f32.gmra.mxu0 %v5987_v49  ;;  %5502 = vmatpush3.msra.mxu1 %v1842_v4 }
  0xa4   : > { %1294 = vmatprep.mubr.f32.mxu0 %v8234_v9  ;;  %5473 = vmatprep.subr.mxu0 %v6371_v17 }
  0xa5   : > { %1479 = vmatmul.mubr.f32.gmra.mxu1 %v5989_v50  ;;  %5474 = vmatpush3.msra.mxu0 %v6371_v17 }
  0xa6   : > { %1484 = vmatprep.mubr.f32.mxu1 %v8234_v9  ;;  %5503 = vmatprep.subr.mxu1 %v1849_v14 }
  0xa7   : > { %1296 = vmatmul.mubr.f32.gmra.mxu0 %v5989_v50  ;;  %5504 = vmatpush3.msra.mxu1 %v1849_v14  ;;  %v8395_v14 = vld [vmem:[#allocation7_spill] sm:$0xff] }
  0xa8   : > { %1301 = vmatprep.mubr.f32.mxu0 %v8234_v9  ;;  %5529 = vmatprep.subr.mxu0 %v6277_v29 }
  0xa9   : > { %1486 = vmatmul.mubr.f32.gmra.mxu1 %v5991_v51  ;;  %5559 = vmatprep.subr.mxu1 %v6268_v2 }
  0xaa   : > { %1491 = vmatprep.mubr.f32.mxu1 %v8234_v9 }
  0xab   : > { %1303 = vmatmul.mubr.f32.gmra.mxu0 %v5991_v51 }
  0xac   : > { %1308 = vmatprep.mubr.f32.mxu0 %v8234_v9 }
  0xad   : > { %1493 = vmatmul.mubr.f32.gmra.mxu1 %v6003_v56 }
  0xae   : > { %1498 = vmatprep.mubr.f32.mxu1 %v8234_v9 }
  0xaf   : > { %1310 = vmatmul.mubr.f32.gmra.mxu0 %v6003_v56 }
  0xb0   : > { %1315 = vmatprep.mubr.f32.mxu0 %v8234_v9 }
  0xb1   : > { %1500 = vmatmul.mubr.f32.gmra.mxu1 %v6039_v25 }
  0xb2   : > { %1505 = vmatprep.mubr.f32.mxu1 %v8234_v9 }
  0xb3   : > { %1317 = vmatmul.mubr.f32.gmra.mxu0 %v6039_v25 }
  0xb4   : > { %1322 = vmatprep.mubr.f32.mxu0 %v8234_v9 }
  0xb5   : > { %1507 = vmatmul.mubr.f32.gmra.mxu1 %v6049_v27 }
  0xb6   : > { %1512 = vmatprep.mubr.f32.mxu1 %v8234_v9 }
  0xb7   : > { %1324 = vmatmul.mubr.f32.gmra.mxu0 %v6049_v27 }
  0xb8   : > { %1329 = vmatprep.mubr.f32.mxu0 %v8234_v9 }
  0xb9   : > { %1514 = vmatmul.mubr.f32.gmra.mxu1 %v6070_v34 }
  0xba   : > { %1519 = vmatprep.mubr.f32.mxu1 %v8234_v9 }
  0xbb   : > { %1331 = vmatmul.mubr.f32.gmra.mxu0 %v6070_v34 }
  0xbc   : > { %1336 = vmatprep.mubr.f32.mxu0 %v8234_v9 }
  0xbd   : > { %1521 = vmatmul.mubr.f32.gmra.mxu1 %v6103_v3 }
  0xbe   : > { %1526 = vmatprep.mubr.f32.mxu1 %v8234_v9 }
  0xbf   : > { %1338 = vmatmul.mubr.f32.gmra.mxu0 %v6103_v3 }
  0xc0   : > { %1343 = vmatprep.mubr.f32.mxu0 %v8234_v9 }
  0xc1   : > { %1528 = vmatmul.mubr.f32.gmra.mxu1 %v6121_v61 }
  0xc2   : > { %1533 = vmatprep.mubr.f32.mxu1 %v8234_v9 }
  0xc3   : > { %1345 = vmatmul.mubr.f32.gmra.mxu0 %v6121_v61 }
  0xc4   : > { %1350 = vmatprep.mubr.f32.mxu0 %v8234_v9 }
  0xc5   : > { %1535 = vmatmul.mubr.f32.gmra.mxu1 %v6140_v33 }
  0xc6   : > { %1540 = vmatprep.mubr.f32.mxu1 %v8234_v9 }
  0xc7   : > { %1352 = vmatmul.mubr.f32.gmra.mxu0 %v6140_v33 }
  0xc8   : > { %1357 = vmatprep.mubr.f32.mxu0 %v8234_v9 }
  0xc9   : > { %1542 = vmatmul.mubr.f32.gmra.mxu1 %v6148_v40 }
  0xca   : > { %1547 = vmatprep.mubr.f32.mxu1 %v8234_v9 }
  0xcb   : > { %1359 = vmatmul.mubr.f32.gmra.mxu0 %v6148_v40 }
  0xcc   : > { %1364 = vmatprep.mubr.f32.mxu0 %v8234_v9 }
  0xcd   : > { %1549 = vmatmul.mubr.f32.gmra.mxu1 %v8392_v15 }
  0xce   : > { %1554 = vmatprep.mubr.f32.mxu1 %v8234_v9 }
  0xcf   : > { %1366 = vmatmul.mubr.f32.gmra.mxu0 %v8392_v15 }
  0xd0   : > { %1371 = vmatprep.mubr.f32.mxu0 %v8234_v9 }
  0xd1   : > { %1556 = vmatmul.mubr.f32.gmra.mxu1 %v8393_v10 }
  0xd2   : > { %1561 = vmatprep.mubr.f32.mxu1 %v8234_v9 }
  0xd3   : > { %1373 = vmatmul.mubr.f32.gmra.mxu0 %v8393_v10 }
  0xd4   : > { %1378 = vmatprep.mubr.f32.mxu0 %v8234_v9 }
  0xd5   : > { %1563 = vmatmul.mubr.f32.gmra.mxu1 %v6200_v21 }
  0xd6   : > { %1568 = vmatprep.mubr.f32.mxu1 %v8234_v9 }
  0xd7   : > { %1380 = vmatmul.mubr.f32.gmra.mxu0 %v6200_v21 }
  0xd8   : > { %1385 = vmatprep.mubr.f32.mxu0 %v8234_v9 }
  0xd9   : > { %1570 = vmatmul.mubr.f32.gmra.mxu1 %v6228_v6 }
  0xda   : > { %5505 = vmatprep.mubr.f32.mxu1 %v5978_v43 }
  0xdb   : > { %1387 = vmatmul.mubr.f32.gmra.mxu0 %v6228_v6 }
  0xdc   : > { %5475 = vmatprep.mubr.f32.mxu0 %v8394_v16  ;;  %v668_v47 = vpop.f32.mrf.mxu1 }
  0xdd   : > { %5506 = vmatmul.mubr.f32.vlgmr.msra.gmra.mxu1 %v5987_v49 }
  0xde   : > { %v670_v4 = vpop.f32.mrf.mxu1  ;;  %5560 = vmatpush3.msra.mxu1 %v6268_v2  ;;  %5508 = vmatprep.mubr.f32.mxu1 %v5989_v50  ;;  %v401_v5 = vpop.f32.mrf.mxu0  ;;  %v8397_v50 = vld [vmem:[#allocation10_spill] sm:$0xff] }
  0xdf   : > { %5476 = vmatmul.mubr.f32.vlgmr.msra.gmra.mxu0 %v8395_v14  ;;  %5561 = vmatprep.subr.mxu1 %v6356_v11  ;;  %v6473_v9 = vadd.f32 %v668_v47, %v401_v5 }
  0xe0   : > { %5530 = vmatpush3.msra.mxu0 %v6277_v29  ;;  %5478 = vmatprep.mubr.f32.mxu0 %v8396_v0  ;;  %v403_v16 = vpop.f32.mrf.mxu0  ;;  %v675_v43 = vpop.f32.mrf.mxu1  ;;  %v8398_v0 = vld [vmem:[#allocation11_spill] sm:$0xff] }
  0xe1   : > { %5509 = vmatmul.mubr.f32.gmra.mxu1 %v5991_v51  ;;  %5531 = vmatprep.subr.mxu0 %v6363_v12  ;;  %v6479_v49 = vadd.f32 %v670_v4, %v403_v16 }
  0xe2   : > { %5511 = vmatprep.mubr.f32.mxu1 %v6003_v56  ;;  %5532 = vmatpush3.msra.mxu0 %v6363_v12  ;;  %v677_v47 = vpop.f32.mrf.mxu1  ;;  %v8400_v12 = vld [vmem:[#allocation13_spill] sm:$0xff] }
  0xe3   : > { %v412_v14 = vpop.f32.mrf.mxu0  ;;  %5479 = vmatmul.mubr.f32.gmra.mxu0 %v8397_v50  ;;  %5562 = vmatpush3.msra.mxu1 %v6356_v11 }
  0xe4   : > { %v6485_v29 = vadd.f32 %v675_v43, %v412_v14  ;;  %5481 = vmatprep.mubr.f32.mxu0 %v8398_v0  ;;  %5533 = vmatprep.subr.mxu0 %v6381_v62  ;;  %v8402_v14 = vld [vmem:[#allocation14_spill] sm:$0xff] }
  0xe5   : > { %v414_v5 = vpop.f32.mrf.mxu0  ;;  %v682_v51 = vpop.f32.mrf.mxu1  ;;  %5512 = vmatmul.mubr.f32.gmra.mxu1 %v6039_v25  ;;  %5534 = vmatpush3.msra.mxu0 %v6381_v62 }
  0xe6   : > { %v6491_v4 = vadd.f32 %v677_v47, %v414_v5  ;;  %5514 = vmatprep.mubr.f32.mxu1 %v6049_v27  ;;  %5563 = vmatprep.subr.mxu1 %v6371_v17 }
  0xe7   : > { %v423_v50 = vpop.f32.mrf.mxu0  ;;  %5482 = vmatmul.mubr.f32.gmra.mxu0 %v8400_v12  ;;  %v684_v43 = vpop.f32.mrf.mxu1  ;;  %5564 = vmatpush3.msra.mxu1 %v6371_v17  ;;  %v8404_v12 = vld [vmem:[#allocation16_spill] sm:$0xff] }
  0xe8   : > { %8399 = vst [vmem:[#allocation6_spill] sm:$0xff] %v6491_v4  ;;  %v6497_v16 = vadd.f32 %v682_v51, %v423_v50  ;;  %5484 = vmatprep.mubr.f32.mxu0 %v8402_v14  ;;  %5589 = vmatprep.subr.mxu0 %v6284_v20  ;;  %v8405_v50 = vld [vmem:[#allocation19_spill] sm:$0xff] }
  0xe9   : > { %v425_v0 = vpop.f32.mrf.mxu0  ;;  %v689_v62 = vpop.f32.mrf.mxu1  ;;  %5515 = vmatmul.mubr.f32.gmra.mxu1 %v6070_v34  ;;  %5619 = vmatprep.subr.mxu1 %v6268_v2 }
  0xea   : > { %8401 = vst [vmem:[#allocation7_spill] sm:$0xff] %v6497_v16  ;;  %v6503_v47 = vadd.f32 %v684_v43, %v425_v0  ;;  %5517 = vmatprep.mubr.f32.mxu1 %v6103_v3  ;;  %v8406_v0 = vld [vmem:[#allocation21_spill] sm:$0xff] }
  0xeb   : > { %v434_v5 = vpop.f32.mrf.mxu0  ;;  %5485 = vmatmul.mubr.f32.gmra.mxu0 %v8404_v12  ;;  %v691_v27 = vpop.f32.mrf.mxu1  ;;  %v8408_v12 = vld [vmem:[#allocation23_spill] sm:$0xff] }
  0xec   : > { %8403 = vst [vmem:[#allocation9_spill] sm:$0xff] %v6503_v47  ;;  %v6507_v51 = vadd.f32 %v689_v62, %v434_v5  ;;  %5487 = vmatprep.mubr.f32.mxu0 %v8405_v50 }
  0xed   : > { %v436_v14 = vpop.f32.mrf.mxu0  ;;  %v696_v16 = vpop.f32.mrf.mxu1  ;;  %5518 = vmatmul.mubr.f32.gmra.mxu1 %v6121_v61 }
  0xee   : > { %v6511_v4 = vadd.f32 %v691_v27, %v436_v14  ;;  %5520 = vmatprep.mubr.f32.mxu1 %v6140_v33  ;;  %v248_v27 = vld [vmem:[%s8205_s0 + $0x38] sm:$0xff]  ;;  %v8410_v33 = vld [vmem:[#allocation24_spill] sm:$0xff] }
  0xef   : > { %v445_v43 = vpop.f32.mrf.mxu0  ;;  %5488 = vmatmul.mubr.f32.gmra.mxu0 %v8406_v0  ;;  %v698_v3 = vpop.f32.mrf.mxu1 }
  0xf0   : > { %v6515_v47 = vadd.f32 %v696_v16, %v445_v43  ;;  %5490 = vmatprep.mubr.f32.mxu0 %v8408_v12  ;;  %v8411_v43 = vld [vmem:[#allocation25_spill] sm:$0xff] }
  0xf1   : > { %v447_v62 = vpop.f32.mrf.mxu0  ;;  %v703_v5 = vpop.f32.mrf.mxu1  ;;  %5521 = vmatmul.mubr.f32.gmra.mxu1 %v6148_v40 }
  0xf2   : > { %8407 = vst [vmem:[#allocation10_spill] sm:$0xff] %v6515_v47  ;;  %v6519_v50 = vadd.f32 %v698_v3, %v447_v62  ;;  %5523 = vmatprep.mubr.f32.mxu1 %v8392_v15  ;;  %v6530_v3 = vand.u32 4294901760, %v248_v27 }
  0xf3   : > { %v456_v14 = vpop.f32.mrf.mxu0  ;;  %5491 = vmatmul.mubr.f32.gmra.mxu0 %v8410_v33  ;;  %v705_v0 = vpop.f32.mrf.mxu1 }
  0xf4   : > { %8409 = vst [vmem:[#allocation11_spill] sm:$0xff] %v6519_v50  ;;  %v6526_v16 = vadd.f32 %v703_v5, %v456_v14  ;;  %5493 = vmatprep.mubr.f32.mxu0 %v8411_v43  ;;  %v8412_v50 = vld [vmem:[#allocation27_spill] sm:$0xff]  ;;  %v6541_v43 = vsub.f32 %v248_v27, %v6530_v3 }
  0xf5   : > { %v458_v12 = vpop.f32.mrf.mxu0  ;;  %v710_v47 = vpop.f32.mrf.mxu1  ;;  %5524 = vmatmul.mubr.f32.gmra.mxu1 %v8393_v10 }
  0xf6   : > { %v6532_v62 = vadd.f32 %v705_v0, %v458_v12  ;;  %5526 = vmatprep.mubr.f32.mxu1 %v6200_v21  ;;  %v8413_v12 = vld [vmem:[#allocation28_spill] sm:$0xff] }
  0xf7   : > { %v467_v15 = vpop.f32.mrf.mxu0  ;;  %5494 = vmatmul.mubr.f32.gmra.mxu0 %v8412_v50  ;;  %v712_v40 = vpop.f32.mrf.mxu1 }
  0xf8   : > { %v6536_v33 = vadd.f32 %v710_v47, %v467_v15  ;;  %5496 = vmatprep.mubr.f32.mxu0 %v6262_v23  ;;  %v8262_v47 = vand.u32 4294901760, %v6541_v43 }
  0xf9   : > { %v469_v5 = vpop.f32.mrf.mxu0  ;;  %v717_v14 = vpop.f32.mrf.mxu1  ;;  %5527 = vmatmul.mubr.f32.gmra.mxu1 %v6228_v6 }
  0xfa   : > { %v6543_v10 = vadd.f32 %v712_v40, %v469_v5  ;;  %5565 = vmatprep.mubr.f32.mxu1 %v5994_v52 }
  0xfb   : > { %v478_v0 = vpop.f32.mrf.mxu0  ;;  %5497 = vmatmul.mubr.f32.gmra.mxu0 %v8413_v12  ;;  %v719_v50 = vpop.f32.mrf.mxu1 }
  0xfc   : > { %v6547_v21 = vadd.f32 %v717_v14, %v478_v0  ;;  %5535 = vmatprep.mubr.f32.mxu0 %v5985_v48 }
  0xfd   : > { %v480_v23 = vpop.f32.mrf.mxu0  ;;  %v724_v15 = vpop.f32.mrf.mxu1  ;;  %5566 = vmatmul.mubr.f32.vlgmr.msra.gmra.mxu1 %v6008_v58 }
  0xfe   : > { %v6552_v27 = vadd.f32 %v719_v50, %v480_v23  ;;  %5620 = vmatpush3.msra.mxu1 %v6268_v2  ;;  %5568 = vmatprep.mubr.f32.mxu1 %v6011_v59  ;;  %v3017_v59 = vsub.f32 %v6541_v43, %v8262_v47 }
  0xff   : > { %v489_v52 = vpop.f32.mrf.mxu0  ;;  %5536 = vmatmul.mubr.f32.vlgmr.msra.gmra.mxu0 %v5997_v53  ;;  %v726_v40 = vpop.f32.mrf.mxu1  ;;  %5621 = vmatprep.subr.mxu1 %v6356_v11 }
 0x100   : > { %v6558_v5 = vadd.f32 %v724_v15, %v489_v52  ;;  %5590 = vmatpush3.msra.mxu0 %v6284_v20  ;;  %5538 = vmatprep.mubr.f32.mxu0 %v6000_v54 }
 0x101   : > { %v491_v48 = vpop.f32.mrf.mxu0  ;;  %v731_v58 = vpop.f32.mrf.mxu1  ;;  %5569 = vmatmul.mubr.f32.gmra.mxu1 %v6037_v8  ;;  %5591 = vmatprep.subr.mxu0 %v6375_v18 }
 0x102   : > { %v6567_v53 = vadd.f32 %v726_v40, %v491_v48  ;;  %5571 = vmatprep.mubr.f32.mxu1 %v6058_v31  ;;  %5592 = vmatpush3.msra.mxu0 %v6375_v18  ;;  %v3018_v31 = vand.u32 4294901760, %v3017_v59 }
 0x103   : > { %v500_v2 = vpop.f32.mrf.mxu0  ;;  %5539 = vmatmul.mubr.f32.gmra.mxu0 %v6014_v60  ;;  %v733_v20 = vpop.f32.mrf.mxu1  ;;  %5622 = vmatpush3.msra.mxu1 %v6356_v11 }
 0x104   : > { %v6573_v54 = vadd.f32 %v731_v58, %v500_v2  ;;  %5541 = vmatprep.mubr.f32.mxu0 %v6027_v1  ;;  %5593 = vmatprep.subr.mxu0 %v6390_v35  ;;  %v247_v1 = vld [vmem:[%s8205_s0 + $0x30] sm:$0xff] }
 0x105   : > { %v502_v8 = vpop.f32.mrf.mxu0  ;;  %v738_v14 = vpop.f32.mrf.mxu1  ;;  %5572 = vmatmul.mubr.f32.gmra.mxu1 %v6079_v37  ;;  %5594 = vmatpush3.msra.mxu0 %v6390_v35 }
 0x106   : > { %v6579_v18 = vadd.f32 %v733_v20, %v502_v8  ;;  %5574 = vmatprep.mubr.f32.mxu1 %v6101_v42  ;;  %5623 = vmatprep.subr.mxu1 %v6371_v17  ;;  %v245_v42 = vld [vmem:[%s8205_s0 + $0x20] sm:$0xff] }
 0x107   : > { %v511_v60 = vpop.f32.mrf.mxu0  ;;  %5542 = vmatmul.mubr.f32.gmra.mxu0 %v6061_v32  ;;  %v740_v11 = vpop.f32.mrf.mxu1  ;;  %5624 = vmatpush3.msra.mxu1 %v6371_v17  ;;  %v6599_v17 = vand.u32 4294901760, %v247_v1  ;;  %v6602_v50 = vand.u32 4294901760, %v245_v42 }
 0x108   : > { %v6588_v37 = vadd.f32 %v738_v14, %v511_v60  ;;  %5544 = vmatprep.mubr.f32.mxu0 %v6082_v38  ;;  %2768 = vmatprep.subr.mxu0 %v6530_v3 }
 0x109   : > { %v513_v35 = vpop.f32.mrf.mxu0  ;;  %v745_v0 = vpop.f32.mrf.mxu1  ;;  %5575 = vmatmul.mubr.f32.gmra.mxu1 %v6111_v46  ;;  %3019 = vmatprep.subr.mxu1 %v3018_v31  ;;  %v244_v46 = vld [vmem:[%s8205_s0 + $0x18] sm:$0xff]  ;;  %v6621_v58 = vsub.f32 %v245_v42, %v6602_v50 }
 0x10a   : > { %v6596_v32 = vadd.f32 %v740_v11, %v513_v35  ;;  %5577 = vmatprep.mubr.f32.mxu1 %v6135_v28 }
 0x10b   : > { %v522_v12 = vpop.f32.mrf.mxu0  ;;  %5545 = vmatmul.mubr.f32.gmra.mxu0 %v6093_v41  ;;  %v747_v38 = vpop.f32.mrf.mxu1  ;;  %v6615_v41 = vsub.f32 %v247_v1, %v6599_v17  ;;  %v8260_v11 = vand.u32 4294901760, %v6621_v58 }
 0x10c   : > { %v6604_v23 = vadd.f32 %v745_v0, %v522_v12  ;;  %5547 = vmatprep.mubr.f32.mxu0 %v6119_v57  ;;  %v6618_v57 = vand.u32 4294901760, %v244_v46 }
 0x10d   : > { %v524_v15 = vpop.f32.mrf.mxu0  ;;  %v752_v52 = vpop.f32.mrf.mxu1  ;;  %5578 = vmatmul.mubr.f32.gmra.mxu1 %v6154_v44  ;;  %v242_v44 = vld [vmem:[%s8205_s0 + $0x8] sm:$0xff]  ;;  %v8261_v8 = vand.u32 4294901760, %v6615_v41 }
 0x10e   : > { %v6611_v28 = vadd.f32 %v747_v38, %v524_v15  ;;  %5580 = vmatprep.mubr.f32.mxu1 %v6173_v36  ;;  %v241_v36 = vld [vmem:[%s8205_s0] sm:$0xff]  ;;  %v6637_v14 = vand.u32 4294901760, %v242_v44  ;;  %v6641_v60 = vsub.f32 %v244_v46, %v6618_v57 }
 0x10f   : > { %v533_v40 = vpop.f32.mrf.mxu0  ;;  %5548 = vmatmul.mubr.f32.gmra.mxu0 %v6138_v30  ;;  %v754_v48 = vpop.f32.mrf.mxu1  ;;  %v6644_v1 = vand.u32 4294901760, %v241_v36 }
 0x110   : > { %v6626_v59 = vadd.f32 %v752_v52, %v533_v40  ;;  %5550 = vmatprep.mubr.f32.mxu0 %v6157_v45  ;;  %v6657_v0 = vsub.f32 %v242_v44, %v6637_v14 }
 0x111   : > { %v535_v2 = vpop.f32.mrf.mxu0  ;;  %v759_v30 = vpop.f32.mrf.mxu1  ;;  %5581 = vmatmul.mubr.f32.gmra.mxu1 %v6191_v7  ;;  %v6665_v46 = vsub.f32 %v241_v36, %v6644_v1 }
 0x112   : > { %v6633_v20 = vadd.f32 %v754_v48, %v535_v2  ;;  %5583 = vmatprep.mubr.f32.mxu1 %v6208_v13  ;;  %v8258_v44 = vand.u32 4294901760, %v6657_v0 }
 0x113   : > { %v544_v31 = vpop.f32.mrf.mxu0  ;;  %5551 = vmatmul.mubr.f32.gmra.mxu0 %v6176_v22  ;;  %v761_v45 = vpop.f32.mrf.mxu1  ;;  %v3023_v22 = vsub.f32 %v6615_v41, %v8261_v8  ;;  %v228_v8 = vld [vmem:[%s6704_s5 + $0x18] sm:$0xff] }
 0x114   : > { %v6646_v7 = vadd.f32 %v759_v30, %v544_v31  ;;  %5553 = vmatprep.mubr.f32.mxu0 %v6194_v26  ;;  %v3029_v26 = vsub.f32 %v6621_v58, %v8260_v11  ;;  %v8415_v30 = vld [vmem:[#allocation26_spill] sm:$0xff] }
 0x115   : > { %v546_v13 = vpop.f32.mrf.mxu0  ;;  %v766_v42 = vpop.f32.mrf.mxu1  ;;  %5584 = vmatmul.mubr.f32.gmra.mxu1 %v6226_v24  ;;  %v8259_v24 = vand.u32 4294901760, %v6641_v60  ;;  %v3024_v48 = vand.u32 4294901760, %v3023_v22  ;;  %v8416_v22 = vld [vmem:[#allocation3_spill] sm:$0xff] }
 0x116   : > { %v6650_v35 = vadd.f32 %v761_v45, %v546_v13  ;;  %5586 = vmatprep.mubr.f32.mxu1 %v6239_v19  ;;  %v3030_v31 = vand.u32 4294901760, %v3029_v26  ;;  %v8257_v45 = vand.u32 4294901760, %v6665_v46  ;;  %v3041_v26 = vsub.f32 %v6657_v0, %v8258_v44 }
 0x117   : > { %v555_v12 = vpop.f32.mrf.mxu0  ;;  %5554 = vmatmul.mubr.f32.gmra.mxu0 %v6211_v55  ;;  %v768_v38 = vpop.f32.mrf.mxu1  ;;  %v8414_v55 = vld [vmem:[#allocation2_spill] sm:$0xff] }
 0x118   : > { %v6667_v19 = vadd.f32 %v766_v42, %v555_v12  ;;  %5556 = vmatprep.mubr.f32.mxu0 %v6218_v39  ;;  %v3035_v39 = vsub.f32 %v6641_v60, %v8259_v24 }
 0x119   : > { %v557_v15 = vpop.f32.mrf.mxu0  ;;  %v773_v52 = vpop.f32.mrf.mxu1  ;;  %5587 = vmatmul.mubr.f32.gmra.mxu1 %v6253_v63 }
 0x11a   : > { %v6671_v40 = vadd.f32 %v768_v38, %v557_v15  ;;  %5625 = vmatprep.mubr.f32.mxu1 %v8414_v55  ;;  %v8417_v38 = vld [vmem:[#allocation4_spill] sm:$0xff] }
 0x11b   : > { %v566_v2 = vpop.f32.mrf.mxu0  ;;  %5557 = vmatmul.mubr.f32.gmra.mxu0 %v8415_v30  ;;  %v775_v36 = vpop.f32.mrf.mxu1 }
 0x11c   : > { %v6680_v13 = vadd.f32 %v773_v52, %v566_v2  ;;  %5595 = vmatprep.mubr.f32.mxu0 %v8414_v55  ;;  %v3036_v55 = vand.u32 4294901760, %v3035_v39  ;;  %v3047_v2 = vsub.f32 %v6665_v46, %v8257_v45  ;;  %v3042_v39 = vand.u32 4294901760, %v3041_v26  ;;  %v225_v26 = vld [vmem:[%s6704_s5] sm:$0xff] }
 0x11d   : > { %v568_v63 = vpop.f32.mrf.mxu0  ;;  %v1058_v42 = vpop.f32.mrf.mxu1  ;;  %5626 = vmatmul.mubr.f32.vlgmr.msra.gmra.mxu1 %v8416_v22 }
 0x11e   : > { %v6684_v12 = vadd.f32 %v775_v36, %v568_v63  ;;  %3025 = vmatpush1.msra.mxu1 %v3024_v48  ;;  %5628 = vmatprep.mubr.f32.mxu1 %v8417_v38  ;;  %v8418_v63 = vld [vmem:[#allocation5_spill] sm:$0xff] }
 0x11f   : > { %v858_v15 = vpop.f32.mrf.mxu0  ;;  %5596 = vmatmul.mubr.f32.vlgmr.msra.gmra.mxu0 %v8416_v22  ;;  %v1060_v52 = vpop.f32.mrf.mxu1  ;;  %3031 = vmatprep.subr.mxu1 %v3030_v31 }
 0x120   : > { %v859_v30 = vadd.f32 %v858_v15, %v6473_v9  ;;  %2770 = vmatpush1.msra.mxu0 %v6599_v17  ;;  %5598 = vmatprep.mubr.f32.mxu0 %v8417_v38  ;;  %v3048_v15 = vand.u32 4294901760, %v3047_v2 }
 0x121   : > { %v860_v48 = vpop.f32.mrf.mxu0  ;;  %v1067_v36 = vpop.f32.mrf.mxu1  ;;  %5629 = vmatmul.mubr.f32.gmra.mxu1 %v8418_v63  ;;  %2772 = vmatprep.subr.mxu0 %v6602_v50 }
 0x122   : > { %v6706_v31 = vadd.f32 %v1058_v42, %v859_v30  ;;  %v861_v9 = vadd.f32 %v860_v48, %v6479_v49  ;;  %5631 = vmatprep.mubr.f32.mxu1 %v6003_v56  ;;  %2774 = vmatpush1.msra.mxu0 %v6618_v57 }
 0x123   : > { %v866_v22 = vpop.f32.mrf.mxu0  ;;  %5599 = vmatmul.mubr.f32.gmra.mxu0 %v8418_v63  ;;  %v1069_v38 = vpop.f32.mrf.mxu1  ;;  %3037 = vmatpush1.msra.mxu1 %v3036_v55  ;;  %v8419_v55 = vld [vmem:[#allocation6_spill] sm:$0xff]  ;;  %v8421_v63 = vld [vmem:[#allocation7_spill] sm:$0xff] }
 0x124   : > { %v6712_v45 = vadd.f32 %v1060_v52, %v861_v9  ;;  %v867_v44 = vadd.f32 %v866_v22, %v6485_v29  ;;  %5601 = vmatprep.mubr.f32.mxu0 %v6003_v56  ;;  %2776 = vmatprep.subr.mxu0 %v6637_v14  ;;  %v8420_v52 = vld [vmem:[#allocation8_spill] sm:$0xff] }
 0x125   : > { %v868_v49 = vpop.f32.mrf.mxu0  ;;  %v1076_v42 = vpop.f32.mrf.mxu1  ;;  %5632 = vmatmul.mubr.f32.gmra.mxu1 %v6039_v25  ;;  %2778 = vmatpush1.msra.mxu0 %v6644_v1 }
 0x126   : > { %v6720_v30 = vadd.f32 %v1067_v36, %v867_v44  ;;  %v869_v2 = vadd.f32 %v868_v49, %v8419_v55  ;;  %5634 = vmatprep.mubr.f32.mxu1 %v8420_v52  ;;  %3043 = vmatprep.subr.mxu1 %v3042_v39  ;;  %v2694_v44 = vsel %vm275_vm0, %v225_v26, 0  ;;  %v226_v36 = vld [vmem:[%s6704_s5 + $0x8] sm:$0xff]  ;;  %v8422_v39 = vld [vmem:[#allocation9_spill] sm:$0xff] }
 0x127   : > { %v874_v29 = vpop.f32.mrf.mxu0  ;;  %5602 = vmatmul.mubr.f32.gmra.mxu0 %v6039_v25  ;;  %v1078_v56 = vpop.f32.mrf.mxu1  ;;  %3049 = vmatpush1.msra.mxu1 %v3048_v15  ;;  %v8423_v15 = vld [vmem:[#allocation12_spill] sm:$0xff]  ;;  %v2697_v26 = vsel %vm275_vm0, %v226_v36, 0 }
 0x128   : > { %v6725_v48 = vadd.f32 %v1069_v38, %v869_v2  ;;  %v875_v9 = vadd.f32 %v874_v29, %v8421_v63  ;;  %5604 = vmatprep.mubr.f32.mxu0 %v8420_v52  ;;  %3223 = vmatprep.subr.mxu0 %v6541_v43  ;;  %v6739_v52 = vand.u32 4294901760, %v2694_v44  ;;  %v6752_v11 = vand.u32 4294901760, %v2697_v26 }
 0x129   : > { %v876_v22 = vpop.f32.mrf.mxu0  ;;  %v1085_v49 = vpop.f32.mrf.mxu1  ;;  %5635 = vmatmul.mubr.f32.gmra.mxu1 %v6070_v34  ;;  %3427 = vmatprep.subr.mxu1 %v6530_v3 }
 0x12a   : > { %v6734_v25 = vadd.f32 %v1076_v42, %v875_v9  ;;  %v877_v38 = vadd.f32 %v876_v22, %v8422_v39  ;;  %5637 = vmatprep.mubr.f32.mxu1 %v8423_v15  ;;  %8424 = vst [vmem:[#allocation13_spill] sm:$0xff] %v6739_v52  ;;  %v227_v42 = vld [vmem:[%s6704_s5 + $0x10] sm:$0xff]  ;;  %v8427_v39 = vld [vmem:[#allocation15_spill] sm:$0xff]  ;;  %8428 = vst [vmem:[#allocation19_spill] sm:$0xff] %v6752_v11  ;;  %v6756_v36 = vsub.f32 %v2694_v44, %v6739_v52 }
 0x12b   : > { %v882_v55 = vpop.f32.mrf.mxu0  ;;  %5605 = vmatmul.mubr.f32.gmra.mxu0 %v6070_v34  ;;  %v1087_v2 = vpop.f32.mrf.mxu1  ;;  %v8435_v44 = vld [vmem:[#allocation18_spill] sm:$0xff] }
 0x12c   : > { %v6742_v29 = vadd.f32 %v1078_v56, %v877_v38  ;;  %v883_v63 = vadd.f32 %v882_v55, %v6507_v51  ;;  %5607 = vmatprep.mubr.f32.mxu0 %v8423_v15  ;;  %8429 = vst [vmem:[#allocation21_spill] sm:$0xff] %v6756_v36  ;;  %v2700_v38 = vsel %vm275_vm0, %v227_v42, 0  ;;  %v8431_v55 = vld [vmem:[#allocation10_spill] sm:$0xff]  ;;  %v6770_v42 = vsub.f32 %v2697_v26, %v6752_v11 }
 0x12d   : > { %v884_v9 = vpop.f32.mrf.mxu0  ;;  %v1094_v24 = vpop.f32.mrf.mxu1  ;;  %5638 = vmatmul.mubr.f32.gmra.mxu1 %v6121_v61 }
 0x12e   : > { %8425 = vst [vmem:[#allocation14_spill] sm:$0xff] %v6742_v29  ;;  %v6748_v22 = vadd.f32 %v1085_v49, %v883_v63  ;;  %v885_v34 = vadd.f32 %v884_v9, %v6511_v4  ;;  %5640 = vmatprep.mubr.f32.mxu1 %v8427_v39  ;;  %v8432_v9 = vld [vmem:[#allocation17_spill] sm:$0xff]  ;;  %8436 = vst [vmem:[#allocation25_spill] sm:$0xff] %v6770_v42  ;;  %v8441_v29 = vld [vmem:[#allocation22_spill] sm:$0xff] }
 0x12f   : > { %v890_v56 = vpop.f32.mrf.mxu0  ;;  %5608 = vmatmul.mubr.f32.gmra.mxu0 %v6121_v61  ;;  %v1096_v51 = vpop.f32.mrf.mxu1  ;;  %v8434_v61 = vld [vmem:[#allocation11_spill] sm:$0xff] }
 0x130   : > { %8426 = vst [vmem:[#allocation16_spill] sm:$0xff] %v6748_v22  ;;  %v6759_v15 = vadd.f32 %v1087_v2, %v885_v34  ;;  %v891_v49 = vadd.f32 %v890_v56, %v8431_v55  ;;  %5610 = vmatprep.mubr.f32.mxu0 %v8427_v39  ;;  %v6772_v2 = vand.u32 4294901760, %v2700_v38  ;;  %v6776_v56 = vand.u32 4294901760, %v6756_v36 }
 0x131   : > { %v892_v4 = vpop.f32.mrf.mxu0  ;;  %v1103_v63 = vpop.f32.mrf.mxu1  ;;  %5641 = vmatmul.mubr.f32.gmra.mxu1 %v8432_v9 }
 0x132   : > { %8430 = vst [vmem:[#allocation23_spill] sm:$0xff] %v6759_v15  ;;  %v6765_v47 = vadd.f32 %v1094_v24, %v891_v49  ;;  %v893_v22 = vadd.f32 %v892_v4, %v8434_v61  ;;  %5643 = vmatprep.mubr.f32.mxu1 %v8435_v44  ;;  %8437 = vst [vmem:[#allocation27_spill] sm:$0xff] %v6772_v2  ;;  %v2703_v49 = vsel %vm275_vm0, %v228_v8, 0  ;;  %v8439_v61 = vld [vmem:[#allocation20_spill] sm:$0xff] }
 0x133   : > { %v898_v34 = vpop.f32.mrf.mxu0  ;;  %5611 = vmatmul.mubr.f32.gmra.mxu0 %v8432_v9  ;;  %v1105_v39 = vpop.f32.mrf.mxu1  ;;  %8438 = vst [vmem:[#allocation28_spill] sm:$0xff] %v6776_v56 }
 0x134   : > { %8433 = vst [vmem:[#allocation24_spill] sm:$0xff] %v6765_v47  ;;  %v6778_v55 = vadd.f32 %v1096_v51, %v893_v22  ;;  %v899_v24 = vadd.f32 %v898_v34, %v6526_v16  ;;  %5613 = vmatprep.mubr.f32.mxu0 %v8435_v44  ;;  %v229_v47 = vld [vmem:[%s6704_s5 + $0x20] sm:$0xff]  ;;  %v6790_v22 = vand.u32 4294901760, %v6770_v42  ;;  %v6793_v16 = vsub.f32 %v2700_v38, %v6772_v2 }
 0x135   : > { %v900_v4 = vpop.f32.mrf.mxu0  ;;  %v1112_v26 = vpop.f32.mrf.mxu1  ;;  %5644 = vmatmul.mubr.f32.gmra.mxu1 %v8439_v61  ;;  %v2815_v44 = vsub.f32 %v6756_v36, %v6776_v56  ;;  %v8446_v56 = vmov 0.0  }
 0x136   : > { %v6785_v15 = vadd.f32 %v1103_v63, %v899_v24  ;;  %v901_v9 = vadd.f32 %v900_v4, %v6532_v62  ;;  %5646 = vmatprep.mubr.f32.mxu1 %v8441_v29  ;;  %8442 = vst [vmem:[#allocation26_spill] sm:$0xff] %v6790_v22  ;;  %8443 = vst [vmem:[#allocation3_spill] sm:$0xff] %v6793_v16  ;;  %v6798_v63 = vand.u32 4294901760, %v2703_v49  ;;  %v2706_v24 = vsel %vm275_vm0, %v229_v47, 0 }
 0x137   : > { %v906_v51 = vpop.f32.mrf.mxu0  ;;  %5614 = vmatmul.mubr.f32.gmra.mxu0 %v8439_v61  ;;  %v1114_v8 = vpop.f32.mrf.mxu1 }
 0x138   : > { %8440 = vst [vmem:[#allocation2_spill] sm:$0xff] %v6785_v15  ;;  %8444 = vst [vmem:[#allocation4_spill] sm:$0xff] %v6798_v63  ;;  %v6800_v34 = vadd.f32 %v1105_v39, %v901_v9  ;;  %v907_v62 = vadd.f32 %v906_v51, %v6536_v33  ;;  %5616 = vmatprep.mubr.f32.mxu0 %v8441_v29  ;;  %v230_v15 = vld [vmem:[%s6704_s5 + $0x28] sm:$0xff]  ;;  %v2826_v39 = vsub.f32 %v6770_v42, %v6790_v22  ;;  %v231_v42 = vld [vmem:[%s6704_s5 + $0x30] sm:$0xff] }
 0x139   : > { %v908_v4 = vpop.f32.mrf.mxu0  ;;  %v1121_v38 = vpop.f32.mrf.mxu1  ;;  %5647 = vmatmul.mubr.f32.gmra.mxu1 %v6228_v6  ;;  %v6814_v33 = vand.u32 4294901760, %v6793_v16  ;;  %v6817_v9 = vand.u32 4294901760, %v2815_v44  ;;  %v6820_v51 = vsub.f32 %v2703_v49, %v6798_v63 }
 0x13a   : > { %v6807_v61 = vadd.f32 %v1112_v26, %v907_v62  ;;  %v909_v36 = vadd.f32 %v908_v4, %v6543_v10  ;;  %3082 = vmatprep.mubr.f32.mxu1 %v8446_v56  ;;  %v6822_v26 = vand.u32 4294901760, %v2706_v24  ;;  %v2709_v4 = vsel %vm275_vm0, %v230_v15, 0 }
 0x13b   : > { %v914_v29 = vpop.f32.mrf.mxu0  ;;  %5617 = vmatmul.mubr.f32.gmra.mxu0 %v6228_v6  ;;  %v1123_v47 = vpop.f32.mrf.mxu1  ;;  %8447 = vst [vmem:[#allocation6_spill] sm:$0xff] %v6817_v9  ;;  %8448 = vst [vmem:[#allocation8_spill] sm:$0xff] %v6820_v51  ;;  %v6842_v44 = vand.u32 4294901760, %v6820_v51 }
 0x13c   : > { %8445 = vst [vmem:[#allocation5_spill] sm:$0xff] %v6807_v61  ;;  %8449 = vst [vmem:[#allocation7_spill] sm:$0xff] %v6822_v26  ;;  %v6824_v10 = vadd.f32 %v1114_v8, %v909_v36  ;;  %v915_v62 = vadd.f32 %v914_v29, %v6547_v21  ;;  %2811 = vmatprep.mubr.f32.mxu0 %v8446_v56  ;;  %v6836_v36 = vand.u32 4294901760, %v2826_v39 }
 0x13d   : > { %v916_v22 = vpop.f32.mrf.mxu0  ;;  %v1130_v61 = vpop.f32.mrf.mxu1  ;;  %3084 = vmatmul.mubr.f32.vlgmr.msra.gmra.mxu1 %v6739_v52  ;;  %v2837_v21 = vsub.f32 %v6793_v16, %v6814_v33  ;;  %8451 = vst [vmem:[#allocation12_spill] sm:$0xff] %v6842_v44 }
 0x13e   : > { %v6831_v6 = vadd.f32 %v1121_v38, %v915_v62  ;;  %v917_v49 = vadd.f32 %v916_v22, %v6552_v27  ;;  %3429 = vmatpush1.msra.mxu1 %v6599_v17  ;;  %3089 = vmatprep.mubr.f32.mxu1 %v8446_v56  ;;  %8450 = vst [vmem:[#allocation9_spill] sm:$0xff] %v6836_v36  ;;  %v6847_v27 = vand.u32 4294901760, %v2709_v4  ;;  %v2712_v22 = vsel %vm275_vm0, %v231_v42, 0  ;;  %v232_v62 = vld [vmem:[%s6704_s5 + $0x38] sm:$0xff] }
 0x13f   : > { %v922_v15 = vpop.f32.mrf.mxu0  ;;  %2817 = vmatmul.mubr.f32.vlgmr.msra.gmra.mxu0 %v6817_v9  ;;  %v1132_v8 = vpop.f32.mrf.mxu1  ;;  %v6845_v38 = vsub.f32 %v2706_v24, %v6822_v26  ;;  %3431 = vmatprep.subr.mxu1 %v6602_v50  ;;  %v6863_v42 = vand.u32 4294901760, %v2837_v21 }
 0x140   : > { %8453 = vst [vmem:[#allocation10_spill] sm:$0xff] %v6847_v27  ;;  %v6851_v39 = vadd.f32 %v1123_v47, %v917_v49  ;;  %v923_v29 = vadd.f32 %v922_v15, %v6558_v5  ;;  %3226 = vmatpush1.msra.mxu0 %v6615_v41  ;;  %2822 = vmatprep.mubr.f32.mxu0 %v8446_v56  ;;  %v6866_v5 = vand.u32 4294901760, %v2712_v22 }
 0x141   : > { %8452 = vst [vmem:[#allocation15_spill] sm:$0xff] %v6845_v38  ;;  %v924_v9 = vpop.f32.mrf.mxu0  ;;  %v1139_v52 = vpop.f32.mrf.mxu1  ;;  %3091 = vmatmul.mubr.f32.gmra.mxu1 %v6752_v11  ;;  %3229 = vmatprep.subr.mxu0 %v6621_v58  ;;  %8454 = vst [vmem:[#allocation17_spill] sm:$0xff] %v6863_v42  ;;  %v2848_v15 = vsub.f32 %v6820_v51, %v6842_v44  ;;  %v233_v51 = vld [vmem:[%s6704_s5 + $0x40] sm:$0xff] }
 0x142   : > { %v6859_v24 = vadd.f32 %v1130_v61, %v923_v29  ;;  %v925_v16 = vadd.f32 %v924_v9, %v6567_v53  ;;  %3096 = vmatprep.mubr.f32.mxu1 %v8446_v56  ;;  %3232 = vmatpush1.msra.mxu0 %v6641_v60  ;;  %8455 = vst [vmem:[#allocation11_spill] sm:$0xff] %v6866_v5  ;;  %v6872_v61 = vand.u32 4294901760, %v6845_v38  ;;  %v2715_v9 = vsel %vm275_vm0, %v232_v62, 0 }
 0x143   : > { %v930_v47 = vpop.f32.mrf.mxu0  ;;  %2828 = vmatmul.mubr.f32.gmra.mxu0 %v6836_v36  ;;  %v1141_v49 = vpop.f32.mrf.mxu1  ;;  %v6875_v53 = vsub.f32 %v2709_v4, %v6847_v27  ;;  %3433 = vmatpush1.msra.mxu1 %v6618_v57 }
 0x144   : > { %8456 = vst [vmem:[#allocation18_spill] sm:$0xff] %v6872_v61  ;;  %v6879_v21 = vadd.f32 %v1132_v8, %v925_v16  ;;  %v931_v29 = vadd.f32 %v930_v47, %v6573_v54  ;;  %2833 = vmatprep.mubr.f32.mxu0 %v8446_v56  ;;  %3235 = vmatprep.subr.mxu0 %v6657_v0  ;;  %v6894_v54 = vand.u32 4294901760, %v2715_v9  ;;  %v6898_v47 = vand.u32 4294901760, %v2848_v15 }
 0x145   : > { %8457 = vst [vmem:[#allocation20_spill] sm:$0xff] %v6875_v53  ;;  %v932_v36 = vpop.f32.mrf.mxu0  ;;  %v1148_v11 = vpop.f32.mrf.mxu1  ;;  %3098 = vmatmul.mubr.f32.gmra.mxu1 %v6772_v2  ;;  %3238 = vmatpush1.msra.mxu0 %v6665_v46  ;;  %v6892_v16 = vsub.f32 %v2712_v22, %v6866_v5 }
 0x146   : > { %v6887_v4 = vadd.f32 %v1139_v52, %v931_v29  ;;  %v933_v44 = vadd.f32 %v932_v36, %v6579_v18  ;;  %3103 = vmatprep.mubr.f32.mxu1 %v8446_v56  ;;  %8459 = vst [vmem:[#allocation29_spill] sm:$0xff] %v6894_v54  ;;  %3435 = vmatprep.subr.mxu1 %v6637_v14  ;;  %8460 = vst [vmem:[#allocation30_spill] sm:$0xff] %v6898_v47  ;;  %v6903_v18 = vand.u32 4294901760, %v6875_v53 }
 0x147   : > { %8458 = vst [vmem:[#allocation22_spill] sm:$0xff] %v6892_v16  ;;  %v938_v8 = vpop.f32.mrf.mxu0  ;;  %2839 = vmatmul.mubr.f32.gmra.mxu0 %v6863_v42  ;;  %v1150_v62 = vpop.f32.mrf.mxu1  ;;  %v2859_v52 = vsub.f32 %v6845_v38, %v6872_v61  ;;  %3437 = vmatpush1.msra.mxu1 %v6644_v1  ;;  %v2718_v29 = vsel %vm275_vm0, %v233_v51, 0  ;;  %v8462_v42 = vand.u32 4294901760, %v6541_v43  ;;  %v234_v38 = vld [vmem:[%s6704_s5 + $0x48] sm:$0xff]  ;;  %v6924_v43 = vsub.f32 %v2715_v9, %v6894_v54 }
 0x148   : > { %8461 = vst [vmem:[#allocation31_spill] sm:$0xff] %v6903_v18  ;;  %v6906_v36 = vadd.f32 %v1141_v49, %v933_v44  ;;  %v939_v22 = vadd.f32 %v938_v8, %v6588_v37  ;;  %2844 = vmatprep.mubr.f32.mxu0 %v8446_v56  ;;  %3837 = vmatprep.subr.mxu1 %v6530_v3  ;;  %v6921_v37 = vand.u32 4294901760, %v6892_v16  ;;  %v2721_v9 = vsel %vm275_vm0, %v234_v38, 0 }
 0x149   : > { %3644 = vmatprep.subr.mxu0 %v8462_v42  ;;  %v940_v15 = vpop.f32.mrf.mxu0  ;;  %v1157_v2 = vpop.f32.mrf.mxu1  ;;  %3105 = vmatmul.mubr.f32.gmra.mxu1 %v6798_v63  ;;  %8464 = vst [vmem:[#allocation33_spill] sm:$0xff] %v6924_v43  ;;  %v6927_v49 = vand.u32 4294901760, %v2859_v52  ;;  %v2870_v3 = vsub.f32 %v6875_v53, %v6903_v18 }
 0x14a   : > { %v6916_v61 = vadd.f32 %v1148_v11, %v939_v22  ;;  %v941_v44 = vadd.f32 %v940_v15, %v6596_v32  ;;  %3110 = vmatprep.mubr.f32.mxu1 %v8446_v56  ;;  %8463 = vst [vmem:[#allocation32_spill] sm:$0xff] %v6921_v37  ;;  %v6931_v11 = vand.u32 4294901760, %v2718_v29 }
 0x14b   : > { %v946_v51 = vpop.f32.mrf.mxu0  ;;  %2850 = vmatmul.mubr.f32.gmra.mxu0 %v6898_v47  ;;  %v1159_v42 = vpop.f32.mrf.mxu1  ;;  %8465 = vst [vmem:[#allocation34_spill] sm:$0xff] %v6927_v49  ;;  %v235_v47 = vld [vmem:[%s6704_s5 + $0x50] sm:$0xff] }
 0x14c   : > { %8466 = vst [vmem:[#allocation35_spill] sm:$0xff] %v6931_v11  ;;  %v6933_v32 = vadd.f32 %v1150_v62, %v941_v44  ;;  %v947_v8 = vadd.f32 %v946_v51, %v6604_v23  ;;  %2855 = vmatprep.mubr.f32.mxu0 %v8446_v56  ;;  %v2881_v62 = vsub.f32 %v6892_v16, %v6921_v37  ;;  %v6947_v23 = vand.u32 4294901760, %v6924_v43  ;;  %v236_v16 = vld [vmem:[%s6704_s5 + $0x58] sm:$0xff] }
 0x14d   : > { %v948_v22 = vpop.f32.mrf.mxu0  ;;  %v1166_v15 = vpop.f32.mrf.mxu1  ;;  %3112 = vmatmul.mubr.f32.gmra.mxu1 %v6822_v26  ;;  %v6950_v51 = vand.u32 4294901760, %v2870_v3  ;;  %v6953_v26 = vsub.f32 %v2718_v29, %v6931_v11 }
 0x14e   : > { %v6940_v52 = vadd.f32 %v1157_v2, %v947_v8  ;;  %v949_v63 = vadd.f32 %v948_v22, %v6611_v28  ;;  %3117 = vmatprep.mubr.f32.mxu1 %v8446_v56  ;;  %8467 = vst [vmem:[#allocation36_spill] sm:$0xff] %v6947_v23  ;;  %v6955_v2 = vand.u32 4294901760, %v2721_v9  ;;  %v2724_v22 = vsel %vm275_vm0, %v235_v47, 0 }
 0x14f   : > { %v954_v44 = vpop.f32.mrf.mxu0  ;;  %2861 = vmatmul.mubr.f32.gmra.mxu0 %v6927_v49  ;;  %v1168_v38 = vpop.f32.mrf.mxu1  ;;  %8468 = vst [vmem:[#allocation37_spill] sm:$0xff] %v6950_v51  ;;  %8469 = vst [vmem:[#allocation38_spill] sm:$0xff] %v6953_v26 }
 0x150   : > { %8470 = vst [vmem:[#allocation39_spill] sm:$0xff] %v6955_v2  ;;  %v6957_v28 = vadd.f32 %v1159_v42, %v949_v63  ;;  %v955_v8 = vadd.f32 %v954_v44, %v6626_v59  ;;  %2866 = vmatprep.mubr.f32.mxu0 %v8446_v56  ;;  %v6968_v63 = vand.u32 4294901760, %v2881_v62  ;;  %v2892_v59 = vsub.f32 %v6924_v43, %v6947_v23 }
 0x151   : > { %v956_v37 = vpop.f32.mrf.mxu0  ;;  %v1175_v53 = vpop.f32.mrf.mxu1  ;;  %3119 = vmatmul.mubr.f32.gmra.mxu1 %v6847_v27  ;;  %v6974_v44 = vand.u32 4294901760, %v6953_v26 }
 0x152   : > { %v6964_v3 = vadd.f32 %v1166_v15, %v955_v8  ;;  %v957_v29 = vadd.f32 %v956_v37, %v6633_v20  ;;  %3124 = vmatprep.mubr.f32.mxu1 %v8446_v56  ;;  %8471 = vst [vmem:[#allocation40_spill] sm:$0xff] %v6968_v63  ;;  %v6977_v15 = vsub.f32 %v2721_v9, %v6955_v2  ;;  %v6979_v8 = vand.u32 4294901760, %v2724_v22 }
 0x153   : > { %v962_v42 = vpop.f32.mrf.mxu0  ;;  %2872 = vmatmul.mubr.f32.gmra.mxu0 %v6950_v51  ;;  %v1177_v47 = vpop.f32.mrf.mxu1  ;;  %8472 = vst [vmem:[#allocation41_spill] sm:$0xff] %v6974_v44  ;;  %v2727_v20 = vsel %vm275_vm0, %v236_v16, 0  ;;  %v237_v51 = vld [vmem:[%s6704_s5 + $0x60] sm:$0xff] }
 0x154   : > { %8473 = vst [vmem:[#allocation42_spill] sm:$0xff] %v6977_v15  ;;  %8474 = vst [vmem:[#allocation43_spill] sm:$0xff] %v6979_v8  ;;  %v6982_v37 = vadd.f32 %v1168_v38, %v957_v29  ;;  %v963_v62 = vadd.f32 %v962_v42, %v6646_v7  ;;  %2877 = vmatprep.mubr.f32.mxu0 %v8446_v56  ;;  %v6992_v23 = vand.u32 4294901760, %v2727_v20  ;;  %v6995_v38 = vand.u32 4294901760, %v2892_v59 }
 0x155   : > { %v964_v49 = vpop.f32.mrf.mxu0  ;;  %v1184_v27 = vpop.f32.mrf.mxu1  ;;  %3126 = vmatmul.mubr.f32.gmra.mxu1 %v6866_v5  ;;  %v2903_v29 = vsub.f32 %v6953_v26, %v6974_v44  ;;  %v7000_v42 = vand.u32 4294901760, %v6977_v15  ;;  %v238_v5 = vld [vmem:[%s6704_s5 + $0x68] sm:$0xff] }
 0x156   : > { %v6988_v43 = vadd.f32 %v1175_v53, %v963_v62  ;;  %v965_v9 = vadd.f32 %v964_v49, %v6650_v35  ;;  %3131 = vmatprep.mubr.f32.mxu1 %v8446_v56  ;;  %8475 = vst [vmem:[#allocation44_spill] sm:$0xff] %v6992_v23  ;;  %8476 = vst [vmem:[#allocation45_spill] sm:$0xff] %v6995_v38  ;;  %v7003_v53 = vsub.f32 %v2724_v22, %v6979_v8 }
 0x157   : > { %v970_v16 = vpop.f32.mrf.mxu0  ;;  %2883 = vmatmul.mubr.f32.gmra.mxu0 %v6968_v63  ;;  %v1186_v7 = vpop.f32.mrf.mxu1  ;;  %8477 = vst [vmem:[#allocation46_spill] sm:$0xff] %v7000_v42  ;;  %v2730_v62 = vsel %vm275_vm0, %v237_v51, 0  ;;  %v7017_v22 = vsub.f32 %v2727_v20, %v6992_v23  ;;  %v7020_v51 = vand.u32 4294901760, %v2903_v29  ;;  %v2733_v20 = vsel %vm275_vm0, %v238_v5, 0  ;;  %v239_v29 = vld [vmem:[%s6704_s5 + $0x70] sm:$0xff] }
 0x158   : > { %8478 = vst [vmem:[#allocation47_spill] sm:$0xff] %v7003_v53  ;;  %v7005_v35 = vadd.f32 %v1177_v47, %v965_v9  ;;  %v971_v49 = vadd.f32 %v970_v16, %v6667_v19  ;;  %2888 = vmatprep.mubr.f32.mxu0 %v8446_v56  ;;  %v2914_v9 = vsub.f32 %v6977_v15, %v7000_v42  ;;  %v7027_v16 = vand.u32 4294901760, %v2730_v62 }
 0x159   : > { %v972_v63 = vpop.f32.mrf.mxu0  ;;  %v1193_v59 = vpop.f32.mrf.mxu1  ;;  %3133 = vmatmul.mubr.f32.gmra.mxu1 %v6894_v54  ;;  %8479 = vst [vmem:[#allocation48_spill] sm:$0xff] %v7017_v22  ;;  %8480 = vst [vmem:[#allocation49_spill] sm:$0xff] %v7020_v51 }
 0x15a   : > { %v7012_v26 = vadd.f32 %v1184_v27, %v971_v49  ;;  %v973_v44 = vadd.f32 %v972_v63, %v6671_v40  ;;  %3138 = vmatprep.mubr.f32.mxu1 %v8446_v56  ;;  %v7025_v27 = vand.u32 4294901760, %v7003_v53  ;;  %v7044_v5 = vand.u32 4294901760, %v2914_v9  ;;  %v240_v9 = vld [vmem:[%s6704_s5 + $0x78] sm:$0xff] }
 0x15b   : > { %v978_v19 = vpop.f32.mrf.mxu0  ;;  %2894 = vmatmul.mubr.f32.gmra.mxu0 %v6995_v38  ;;  %v1195_v47 = vpop.f32.mrf.mxu1 }
 0x15c   : > { %8481 = vst [vmem:[#allocation50_spill] sm:$0xff] %v7025_v27  ;;  %v7029_v40 = vadd.f32 %v1186_v7, %v973_v44  ;;  %v979_v63 = vadd.f32 %v978_v19, %v6680_v13  ;;  %2899 = vmatprep.mubr.f32.mxu0 %v8446_v56  ;;  %v7041_v44 = vand.u32 4294901760, %v7017_v22  ;;  %8484 = vst [vmem:[#allocation53_spill] sm:$0xff] %v7044_v5 }
 0x15d   : > { %v980_v49 = vpop.f32.mrf.mxu0  ;;  %v1466_v38 = vpop.f32.mrf.mxu1  ;;  %3140 = vmatmul.mubr.f32.gmra.mxu1 %v6931_v11  ;;  %v2925_v19 = vsub.f32 %v7003_v53, %v7025_v27  ;;  %v2736_v11 = vsel %vm275_vm0, %v239_v29, 0 }
 0x15e   : > { %v7036_v54 = vadd.f32 %v1193_v59, %v979_v63  ;;  %v981_v15 = vadd.f32 %v980_v49, %v6684_v12  ;;  %3145 = vmatprep.mubr.f32.mxu1 %v8446_v56  ;;  %8483 = vst [vmem:[#allocation52_spill] sm:$0xff] %v7041_v44  ;;  %v7049_v59 = vsub.f32 %v2730_v62, %v7027_v16  ;;  %v7051_v63 = vand.u32 4294901760, %v2733_v20 }
 0x15f   : > { %v1283_v13 = vpop.f32.mrf.mxu0  ;;  %2905 = vmatmul.mubr.f32.gmra.mxu0 %v7020_v51  ;;  %v1468_v7 = vpop.f32.mrf.mxu1 }
 0x160   : > { %8482 = vst [vmem:[#allocation51_spill] sm:$0xff] %v7036_v54  ;;  %8485 = vst [vmem:[#allocation54_spill] sm:$0xff] %v7049_v59  ;;  %v7053_v12 = vadd.f32 %v1195_v47, %v981_v15  ;;  %v1284_v49 = vadd.f32 %v1283_v13, %v6706_v31  ;;  %2910 = vmatprep.mubr.f32.mxu0 %v8446_v56  ;;  %v2936_v15 = vsub.f32 %v7017_v22, %v7041_v44 }
 0x161   : > { %8486 = vst [vmem:[#allocation55_spill] sm:$0xff] %v7051_v63  ;;  %v1285_v51 = vpop.f32.mrf.mxu0  ;;  %v1473_v42 = vpop.f32.mrf.mxu1  ;;  %3147 = vmatmul.mubr.f32.gmra.mxu1 %v6955_v2  ;;  %v7067_v13 = vand.u32 4294901760, %v2925_v19  ;;  %v7070_v29 = vand.u32 4294901760, %v7049_v59  ;;  %v7073_v2 = vsub.f32 %v2733_v20, %v7051_v63 }
 0x162   : > { %v7060_v54 = vadd.f32 %v1466_v38, %v1284_v49  ;;  %v1286_v62 = vadd.f32 %v1285_v51, %v6712_v45  ;;  %3152 = vmatprep.mubr.f32.mxu1 %v8446_v56  ;;  %v7075_v38 = vand.u32 4294901760, %v2736_v11  ;;  %v2739_v49 = vsel %vm275_vm0, %v240_v9, 0 }
 0x163   : > { %v1290_v47 = vpop.f32.mrf.mxu0  ;;  %2916 = vmatmul.mubr.f32.gmra.mxu0 %v7044_v5  ;;  %v1475_v31 = vpop.f32.mrf.mxu1  ;;  %8488 = vst [vmem:[#allocation57_spill] sm:$0xff] %v7067_v13  ;;  %8489 = vst [vmem:[#allocation58_spill] sm:$0xff] %v7070_v29  ;;  %v7087_v20 = vand.u32 4294901760, %v2936_v15  ;;  %v7093_v9 = vand.u32 4294901760, %v7073_v2 }
 0x164   : > { %8487 = vst [vmem:[#allocation56_spill] sm:$0xff] %v7060_v54  ;;  %8490 = vst [vmem:[#allocation59_spill] sm:$0xff] %v7073_v2  ;;  %v7077_v45 = vadd.f32 %v1468_v7, %v1286_v62  ;;  %v1291_v51 = vadd.f32 %v1290_v47, %v6720_v30  ;;  %2921 = vmatprep.mubr.f32.mxu0 %v8446_v56  ;;  %v2947_v62 = vsub.f32 %v7049_v59, %v7070_v29 }
 0x165   : > { %8491 = vst [vmem:[#allocation60_spill] sm:$0xff] %v7075_v38  ;;  %v1292_v5 = vpop.f32.mrf.mxu0  ;;  %v1480_v54 = vpop.f32.mrf.mxu1  ;;  %3154 = vmatmul.mubr.f32.gmra.mxu1 %v6979_v8  ;;  %8494 = vst [vmem:[#allocation63_spill] sm:$0xff] %v7087_v20  ;;  %v7096_v47 = vsub.f32 %v2736_v11, %v7075_v38 }
 0x166   : > { %8492 = vst [vmem:[#allocation61_spill] sm:$0xff] %v7077_v45  ;;  %v7083_v19 = vadd.f32 %v1473_v42, %v1291_v51  ;;  %v1293_v22 = vadd.f32 %v1292_v5, %v6725_v48  ;;  %3159 = vmatprep.mubr.f32.mxu1 %v8446_v56  ;;  %8495 = vst [vmem:[#allocation64_spill] sm:$0xff] %v7093_v9  ;;  %v7098_v42 = vand.u32 4294901760, %v2739_v49 }
 0x167   : > { %v1297_v7 = vpop.f32.mrf.mxu0  ;;  %2927 = vmatmul.mubr.f32.gmra.mxu0 %v7067_v13  ;;  %v1482_v30 = vpop.f32.mrf.mxu1  ;;  %8496 = vst [vmem:[#allocation65_spill] sm:$0xff] %v7096_v47 }
 0x168   : > { %8493 = vst [vmem:[#allocation62_spill] sm:$0xff] %v7083_v19  ;;  %v7100_v48 = vadd.f32 %v1475_v31, %v1293_v22  ;;  %v1298_v5 = vadd.f32 %v1297_v7, %v6734_v25  ;;  %2932 = vmatprep.mubr.f32.mxu0 %v8446_v56  ;;  %v8499_v19 = vld [vmem:[#allocation14_spill] sm:$0xff]  ;;  %v7110_v22 = vand.u32 4294901760, %v2947_v62  ;;  %v2958_v25 = vsub.f32 %v7073_v2, %v7093_v9 }
 0x169   : > { %v1299_v15 = vpop.f32.mrf.mxu0  ;;  %v1487_v51 = vpop.f32.mrf.mxu1  ;;  %3161 = vmatmul.mubr.f32.gmra.mxu1 %v6992_v23  ;;  %v7115_v31 = vand.u32 4294901760, %v7096_v47  ;;  %v7118_v7 = vsub.f32 %v2739_v49, %v7098_v42 }
 0x16a   : > { %8497 = vst [vmem:[#allocation66_spill] sm:$0xff] %v7100_v48  ;;  %v7105_v13 = vadd.f32 %v1480_v54, %v1298_v5  ;;  %v1300_v45 = vadd.f32 %v1299_v15, %v8499_v19  ;;  %3166 = vmatprep.mubr.f32.mxu1 %v8446_v56  ;;  %8500 = vst [vmem:[#allocation14_spill] sm:$0xff] %v7110_v22  ;;  %v8504_v19 = vld [vmem:[#allocation16_spill] sm:$0xff] }
 0x16b   : > { %v1304_v11 = vpop.f32.mrf.mxu0  ;;  %2938 = vmatmul.mubr.f32.gmra.mxu0 %v7087_v20  ;;  %v1489_v8 = vpop.f32.mrf.mxu1  ;;  %8501 = vst [vmem:[#allocation68_spill] sm:$0xff] %v7115_v31  ;;  %8502 = vst [vmem:[#allocation69_spill] sm:$0xff] %v7118_v7 }
 0x16c   : > { %8498 = vst [vmem:[#allocation67_spill] sm:$0xff] %v7105_v13  ;;  %v7120_v54 = vadd.f32 %v1482_v30, %v1300_v45  ;;  %v1305_v5 = vadd.f32 %v1304_v11, %v8504_v19  ;;  %2943 = vmatprep.mubr.f32.mxu0 %v8446_v56  ;;  %v8506_v13 = vld [vmem:[#allocation23_spill] sm:$0xff]  ;;  %v7130_v45 = vand.u32 4294901760, %v2958_v25  ;;  %v2969_v30 = vsub.f32 %v7096_v47, %v7115_v31 }
 0x16d   : > { %v1306_v15 = vpop.f32.mrf.mxu0  ;;  %v1494_v20 = vpop.f32.mrf.mxu1  ;;  %3168 = vmatmul.mubr.f32.gmra.mxu1 %v7027_v16  ;;  %v7135_v11 = vand.u32 4294901760, %v7118_v7 }
 0x16e   : > { %8503 = vst [vmem:[#allocation70_spill] sm:$0xff] %v7120_v54  ;;  %v7125_v62 = vadd.f32 %v1487_v51, %v1305_v5  ;;  %v1307_v48 = vadd.f32 %v1306_v15, %v8506_v13  ;;  %3173 = vmatprep.mubr.f32.mxu1 %v8446_v56  ;;  %8507 = vst [vmem:[#allocation23_spill] sm:$0xff] %v7130_v45  ;;  %v8510_v51 = vld [vmem:[#allocation24_spill] sm:$0xff] }
 0x16f   : > { %v1311_v23 = vpop.f32.mrf.mxu0  ;;  %2949 = vmatmul.mubr.f32.gmra.mxu0 %v7110_v22  ;;  %v1496_v49 = vpop.f32.mrf.mxu1  ;;  %8508 = vst [vmem:[#allocation71_spill] sm:$0xff] %v7135_v11 }
 0x170   : > { %8505 = vst [vmem:[#allocation16_spill] sm:$0xff] %v7125_v62  ;;  %v7137_v19 = vadd.f32 %v1489_v8, %v1307_v48  ;;  %v1312_v5 = vadd.f32 %v1311_v23, %v8510_v51  ;;  %2954 = vmatprep.mubr.f32.mxu0 %v8446_v56  ;;  %v249_v62 = vld [vmem:[%s8205_s0 + $0x40] sm:$0xff]  ;;  %v7150_v48 = vand.u32 4294901760, %v2969_v30  ;;  %v2980_v51 = vsub.f32 %v7118_v7, %v7135_v11 }
 0x171   : > { %v1313_v13 = vpop.f32.mrf.mxu0  ;;  %v1501_v15 = vpop.f32.mrf.mxu1  ;;  %3175 = vmatmul.mubr.f32.gmra.mxu1 %v7051_v63 }
 0x172   : > { %8509 = vst [vmem:[#allocation72_spill] sm:$0xff] %v7137_v19  ;;  %v7142_v22 = vadd.f32 %v1494_v20, %v1312_v5  ;;  %v1314_v25 = vadd.f32 %v1313_v13, %v6778_v55  ;;  %3180 = vmatprep.mubr.f32.mxu1 %v8446_v56  ;;  %v8513_v20 = vld [vmem:[#allocation2_spill] sm:$0xff] }
 0x173   : > { %v1318_v8 = vpop.f32.mrf.mxu0  ;;  %2960 = vmatmul.mubr.f32.gmra.mxu0 %v7130_v45  ;;  %v1503_v23 = vpop.f32.mrf.mxu1 }
 0x174   : > { %8511 = vst [vmem:[#allocation24_spill] sm:$0xff] %v7142_v22  ;;  %v7154_v19 = vadd.f32 %v1496_v49, %v1314_v25  ;;  %v1319_v5 = vadd.f32 %v1318_v8, %v8513_v20  ;;  %2965 = vmatprep.mubr.f32.mxu0 %v8446_v56  ;;  %v7159_v22 = vand.u32 4294901760, %v249_v62  ;;  %v7166_v25 = vand.u32 4294901760, %v2980_v51  ;;  %v8515_v20 = vld [vmem:[#allocation5_spill] sm:$0xff] }
 0x175   : > { %v1320_v55 = vpop.f32.mrf.mxu0  ;;  %v1508_v13 = vpop.f32.mrf.mxu1  ;;  %3182 = vmatmul.mubr.f32.gmra.mxu1 %v7075_v38 }
 0x176   : > { %8512 = vst [vmem:[#allocation73_spill] sm:$0xff] %v7154_v19  ;;  %v7161_v54 = vadd.f32 %v1501_v15, %v1319_v5  ;;  %v1321_v30 = vadd.f32 %v1320_v55, %v6800_v34  ;;  %3187 = vmatprep.mubr.f32.mxu1 %v8446_v56  ;;  %8514 = vst [vmem:[#allocation2_spill] sm:$0xff] %v7166_v25  ;;  %v7174_v34 = vsub.f32 %v249_v62, %v7159_v22  ;;  %v8516_v62 = vld [vmem:[#allocation28_spill] sm:$0xff] }
 0x177   : > { %v1325_v45 = vpop.f32.mrf.mxu0  ;;  %2971 = vmatmul.mubr.f32.gmra.mxu0 %v7150_v48  ;;  %v1510_v49 = vpop.f32.mrf.mxu1 }
 0x178   : > { %v7168_v8 = vadd.f32 %v1503_v23, %v1321_v30  ;;  %v1326_v19 = vadd.f32 %v1325_v45, %v8515_v20  ;;  %2976 = vmatprep.mubr.f32.mxu0 %v8446_v56 }
 0x179   : > { %v1327_v38 = vpop.f32.mrf.mxu0  ;;  %v1515_v63 = vpop.f32.mrf.mxu1  ;;  %3189 = vmatmul.mubr.f32.gmra.mxu1 %v7098_v42 }
 0x17a   : > { %v7176_v15 = vadd.f32 %v1508_v13, %v1326_v19  ;;  %v1328_v5 = vadd.f32 %v1327_v38, %v6824_v10  ;;  %3470 = vmatprep.mubr.f32.mxu1 %v8446_v56  ;;  %v7187_v19 = vand.u32 4294901760, %v7174_v34 }
 0x17b   : > { %v1332_v51 = vpop.f32.mrf.mxu0  ;;  %2982 = vmatmul.mubr.f32.gmra.mxu0 %v7166_v25  ;;  %v1517_v23 = vpop.f32.mrf.mxu1  ;;  %v8518_v25 = vand.u32 4294901760, %v6615_v41  ;;  %v8521_v41 = vand.u32 4294901760, %v6641_v60  ;;  %v8525_v60 = vand.u32 4294901760, %v6665_v46 }
 0x17c   : > { %v7181_v45 = vadd.f32 %v1510_v49, %v1328_v5  ;;  %v1333_v55 = vadd.f32 %v1332_v51, %v6831_v6  ;;  %3271 = vmatprep.mubr.f32.mxu0 %v8446_v56  ;;  %v8517_v49 = vld [vmem:[#allocation21_spill] sm:$0xff] }
 0x17d   : > { %v1334_v30 = vpop.f32.mrf.mxu0  ;;  %v1522_v20 = vpop.f32.mrf.mxu1  ;;  %3474 = vmatmul.mubr.f32.vlgmr.msra.gmra.mxu1 %v8516_v62 }
 0x17e   : > { %v7189_v10 = vadd.f32 %v1515_v63, %v1333_v55  ;;  %v1335_v38 = vadd.f32 %v1334_v30, %v6851_v39  ;;  %3839 = vmatpush1.msra.mxu1 %v6599_v17  ;;  %3479 = vmatprep.mubr.f32.mxu1 %v8446_v56  ;;  %v8519_v17 = vld [vmem:[#allocation26_spill] sm:$0xff]  ;;  %v8520_v55 = vand.u32 4294901760, %v6621_v58  ;;  %v4251_v30 = vsub.f32 %v7174_v34, %v7187_v19 }
 0x17f   : > { %v1339_v13 = vpop.f32.mrf.mxu0  ;;  %3274 = vmatmul.mubr.f32.vlgmr.msra.gmra.mxu0 %v8517_v49  ;;  %v1524_v6 = vpop.f32.mrf.mxu1  ;;  %3841 = vmatprep.subr.mxu1 %v6602_v50 }
 0x180   : > { %v7196_v5 = vadd.f32 %v1517_v23, %v1335_v38  ;;  %v1340_v51 = vadd.f32 %v1339_v13, %v6859_v24  ;;  %3648 = vmatpush1.msra.mxu0 %v8518_v25  ;;  %3279 = vmatprep.mubr.f32.mxu0 %v8446_v56  ;;  %v8522_v25 = vld [vmem:[#allocation25_spill] sm:$0xff] }
 0x181   : > { %v1341_v39 = vpop.f32.mrf.mxu0  ;;  %v1529_v63 = vpop.f32.mrf.mxu1  ;;  %3483 = vmatmul.mubr.f32.gmra.mxu1 %v8519_v17  ;;  %3652 = vmatprep.subr.mxu0 %v8520_v55 }
 0x182   : > { %v7207_v50 = vadd.f32 %v1522_v20, %v1340_v51  ;;  %v1342_v23 = vadd.f32 %v1341_v39, %v6879_v21  ;;  %3488 = vmatprep.mubr.f32.mxu1 %v8446_v56  ;;  %3656 = vmatpush1.msra.mxu0 %v8521_v41  ;;  %v8524_v20 = vand.u32 4294901760, %v6657_v0  ;;  %v7224_v39 = vand.u32 4294901760, %v4251_v30  ;;  %v8527_v0 = vld [vmem:[#allocation3_spill] sm:$0xff]  ;;  %v8529_v30 = vld [vmem:[#allocation12_spill] sm:$0xff] }
 0x183   : > { %v1346_v24 = vpop.f32.mrf.mxu0  ;;  %3282 = vmatmul.mubr.f32.gmra.mxu0 %v8522_v25  ;;  %v1531_v38 = vpop.f32.mrf.mxu1  ;;  %3843 = vmatpush1.msra.mxu1 %v6618_v57 }
 0x184   : > { %v7215_v58 = vadd.f32 %v1524_v6, %v1342_v23  ;;  %v1347_v13 = vadd.f32 %v1346_v24, %v6887_v4  ;;  %3287 = vmatprep.mubr.f32.mxu0 %v8446_v56  ;;  %3660 = vmatprep.subr.mxu0 %v8524_v20  ;;  %v8531_v24 = vld [vmem:[#allocation8_spill] sm:$0xff] }
 0x185   : > { %v1348_v21 = vpop.f32.mrf.mxu0  ;;  %v1536_v51 = vpop.f32.mrf.mxu1  ;;  %3492 = vmatmul.mubr.f32.gmra.mxu1 %v6814_v33  ;;  %3664 = vmatpush1.msra.mxu0 %v8525_v60  ;;  %v8533_v60 = vld [vmem:[#allocation18_spill] sm:$0xff] }
 0x186   : > { %8523 = vst [vmem:[#allocation5_spill] sm:$0xff] %v7215_v58  ;;  %v7226_v55 = vadd.f32 %v1529_v63, %v1347_v13  ;;  %v1349_v57 = vadd.f32 %v1348_v21, %v6906_v36  ;;  %3497 = vmatprep.mubr.f32.mxu1 %v8446_v56  ;;  %3845 = vmatprep.subr.mxu1 %v6637_v14  ;;  %v8567_v58 = vld [vmem:[#allocation39_spill] sm:$0xff] }
 0x187   : > { %v1353_v4 = vpop.f32.mrf.mxu0  ;;  %3290 = vmatmul.mubr.f32.gmra.mxu0 %v8527_v0  ;;  %v1538_v6 = vpop.f32.mrf.mxu1  ;;  %3847 = vmatpush1.msra.mxu1 %v6644_v1 }
 0x188   : > { %8526 = vst [vmem:[#allocation28_spill] sm:$0xff] %v7226_v55  ;;  %v7233_v23 = vadd.f32 %v1531_v38, %v1349_v57  ;;  %v1354_v46 = vadd.f32 %v1353_v4, %v6916_v61  ;;  %3295 = vmatprep.mubr.f32.mxu0 %v8446_v56  ;;  %5649 = vmatprep.subr.mxu0 %v7159_v22  ;;  %v8535_v4 = vld [vmem:[#allocation15_spill] sm:$0xff] }
 0x189   : > { %v1355_v63 = vpop.f32.mrf.mxu0  ;;  %v1543_v36 = vpop.f32.mrf.mxu1  ;;  %3501 = vmatmul.mubr.f32.gmra.mxu1 %v8529_v30  ;;  %5679 = vmatprep.subr.mxu1 %v7224_v39  ;;  %v8564_v55 = vld [vmem:[#allocation11_spill] sm:$0xff] }
 0x18a   : > { %8528 = vst [vmem:[#allocation21_spill] sm:$0xff] %v7233_v23  ;;  %v7240_v14 = vadd.f32 %v1536_v51, %v1354_v46  ;;  %v1356_v41 = vadd.f32 %v1355_v63, %v6933_v32  ;;  %3506 = vmatprep.mubr.f32.mxu1 %v8446_v56 }
 0x18b   : > { %v1360_v1 = vpop.f32.mrf.mxu0  ;;  %3298 = vmatmul.mubr.f32.gmra.mxu0 %v8531_v24  ;;  %v1545_v61 = vpop.f32.mrf.mxu1  ;;  %v8565_v24 = vld [vmem:[#allocation29_spill] sm:$0xff] }
 0x18c   : > { %8530 = vst [vmem:[#allocation26_spill] sm:$0xff] %v7240_v14  ;;  %v7245_v38 = vadd.f32 %v1538_v6, %v1356_v41  ;;  %v1361_v13 = vadd.f32 %v1360_v1, %v6940_v52  ;;  %3303 = vmatprep.mubr.f32.mxu0 %v8446_v56  ;;  %v8558_v14 = vld [vmem:[#allocation13_spill] sm:$0xff] }
 0x18d   : > { %v1362_v20 = vpop.f32.mrf.mxu0  ;;  %v1550_v21 = vpop.f32.mrf.mxu1  ;;  %3510 = vmatmul.mubr.f32.gmra.mxu1 %v8533_v60  ;;  %v8566_v60 = vld [vmem:[#allocation35_spill] sm:$0xff] }
 0x18e   : > { %8532 = vst [vmem:[#allocation25_spill] sm:$0xff] %v7245_v38  ;;  %v7250_v51 = vadd.f32 %v1543_v36, %v1361_v13  ;;  %v1363_v32 = vadd.f32 %v1362_v20, %v6957_v28  ;;  %3515 = vmatprep.mubr.f32.mxu1 %v8446_v56  ;;  %v8538_v13 = vld [vmem:[#allocation20_spill] sm:$0xff] }
 0x18f   : > { %v1367_v57 = vpop.f32.mrf.mxu0  ;;  %3306 = vmatmul.mubr.f32.gmra.mxu0 %v8535_v4  ;;  %v1552_v46 = vpop.f32.mrf.mxu1  ;;  %v8563_v4 = vld [vmem:[#allocation10_spill] sm:$0xff] }
 0x190   : > { %8534 = vst [vmem:[#allocation3_spill] sm:$0xff] %v7250_v51  ;;  %v7255_v6 = vadd.f32 %v1545_v61, %v1363_v32  ;;  %v1368_v52 = vadd.f32 %v1367_v57, %v6964_v3  ;;  %3311 = vmatprep.mubr.f32.mxu0 %v8446_v56  ;;  %v8549_v51 = vld [vmem:[#allocation41_spill] sm:$0xff] }
 0x191   : > { %v1369_v63 = vpop.f32.mrf.mxu0  ;;  %v1557_v41 = vpop.f32.mrf.mxu1  ;;  %3519 = vmatmul.mubr.f32.gmra.mxu1 %v6903_v18 }
 0x192   : > { %8536 = vst [vmem:[#allocation12_spill] sm:$0xff] %v7255_v6  ;;  %v7260_v36 = vadd.f32 %v1550_v21, %v1368_v52  ;;  %v1370_v28 = vadd.f32 %v1369_v63, %v6982_v37  ;;  %3524 = vmatprep.mubr.f32.mxu1 %v8446_v56  ;;  %v8540_v6 = vld [vmem:[#allocation32_spill] sm:$0xff]  ;;  %v8542_v63 = vld [vmem:[#allocation22_spill] sm:$0xff] }
 0x193   : > { %v1374_v1 = vpop.f32.mrf.mxu0  ;;  %3314 = vmatmul.mubr.f32.gmra.mxu0 %v8538_v13  ;;  %v1559_v20 = vpop.f32.mrf.mxu1 }
 0x194   : > { %8537 = vst [vmem:[#allocation74_spill] sm:$0xff] %v7260_v36  ;;  %v7265_v61 = vadd.f32 %v1552_v46, %v1370_v28  ;;  %v1375_v3 = vadd.f32 %v1374_v1, %v6988_v43  ;;  %3319 = vmatprep.mubr.f32.mxu0 %v8446_v56 }
 0x195   : > { %v1376_v32 = vpop.f32.mrf.mxu0  ;;  %v1564_v57 = vpop.f32.mrf.mxu1  ;;  %3528 = vmatmul.mubr.f32.gmra.mxu1 %v8540_v6 }
 0x196   : > { %8539 = vst [vmem:[#allocation75_spill] sm:$0xff] %v7265_v61  ;;  %v7270_v21 = vadd.f32 %v1557_v41, %v1375_v3  ;;  %v1377_v37 = vadd.f32 %v1376_v32, %v7005_v35  ;;  %3533 = vmatprep.mubr.f32.mxu1 %v8446_v56  ;;  %v8544_v61 = vld [vmem:[#allocation36_spill] sm:$0xff]  ;;  %v8546_v32 = vld [vmem:[#allocation33_spill] sm:$0xff] }
 0x197   : > { %v1381_v52 = vpop.f32.mrf.mxu0  ;;  %3322 = vmatmul.mubr.f32.gmra.mxu0 %v8542_v63  ;;  %v1566_v36 = vpop.f32.mrf.mxu1 }
 0x198   : > { %8541 = vst [vmem:[#allocation76_spill] sm:$0xff] %v7270_v21  ;;  %v7275_v46 = vadd.f32 %v1559_v20, %v1377_v37  ;;  %v1382_v43 = vadd.f32 %v1381_v52, %v7012_v26  ;;  %3327 = vmatprep.mubr.f32.mxu0 %v8446_v56  ;;  %v8548_v37 = vld [vmem:[#allocation51_spill] sm:$0xff] }
 0x199   : > { %v1383_v28 = vpop.f32.mrf.mxu0  ;;  %v1571_v1 = vpop.f32.mrf.mxu1  ;;  %3537 = vmatmul.mubr.f32.gmra.mxu1 %v8544_v61 }
 0x19a   : > { %8543 = vst [vmem:[#allocation77_spill] sm:$0xff] %v7275_v46  ;;  %v7280_v41 = vadd.f32 %v1564_v57, %v1382_v43  ;;  %v1384_v35 = vadd.f32 %v1383_v28, %v7029_v40  ;;  %3542 = vmatprep.mubr.f32.mxu1 %v8446_v56  ;;  %v8551_v28 = vld [vmem:[#allocation38_spill] sm:$0xff] }
 0x19b   : > { %v1388_v3 = vpop.f32.mrf.mxu0  ;;  %3330 = vmatmul.mubr.f32.gmra.mxu0 %v8546_v32  ;;  %v1573_v21 = vpop.f32.mrf.mxu1 }
 0x19c   : > { %8545 = vst [vmem:[#allocation78_spill] sm:$0xff] %v7280_v41  ;;  %v7285_v20 = vadd.f32 %v1566_v36, %v1384_v35  ;;  %v1389_v26 = vadd.f32 %v1388_v3, %v8548_v37  ;;  %3335 = vmatprep.mubr.f32.mxu0 %v8446_v56 }
 0x19d   : > { %v1390_v52 = vpop.f32.mrf.mxu0  ;;  %v5507_v46 = vpop.f32.mrf.mxu1  ;;  %3546 = vmatmul.mubr.f32.gmra.mxu1 %v8549_v51 }
 0x19e   : > { %8547 = vst [vmem:[#allocation79_spill] sm:$0xff] %v7285_v20  ;;  %v7290_v57 = vadd.f32 %v1571_v1, %v1389_v26  ;;  %v1391_v40 = vadd.f32 %v1390_v52, %v7053_v12  ;;  %3551 = vmatprep.mubr.f32.mxu1 %v8446_v56  ;;  %v8553_v20 = vld [vmem:[#allocation46_spill] sm:$0xff] }
 0x19f   : > { %v5477_v43 = vpop.f32.mrf.mxu0  ;;  %3338 = vmatmul.mubr.f32.gmra.mxu0 %v8551_v28  ;;  %v1886_v41 = vpop.f32.mrf.mxu1  ;;  %v8554_v26 = vld [vmem:[#allocation42_spill] sm:$0xff] }
 0x1a0   : > { %8550 = vst [vmem:[#allocation51_spill] sm:$0xff] %v7290_v57  ;;  %v7295_v36 = vadd.f32 %v1573_v21, %v1391_v40  ;;  %v7297_v35 = vadd.f32 %v5507_v46, %v5477_v43  ;;  %3343 = vmatprep.mubr.f32.mxu0 %v8446_v56 }
 0x1a1   : > { %v1650_v3 = vpop.f32.mrf.mxu0  ;;  %v5510_v37 = vpop.f32.mrf.mxu1  ;;  %3555 = vmatmul.mubr.f32.gmra.mxu1 %v8553_v20 }
 0x1a2   : > { %8552 = vst [vmem:[#allocation80_spill] sm:$0xff] %v7295_v36  ;;  %v7301_v1 = vadd.f32 %v1886_v41, %v1650_v3  ;;  %3560 = vmatprep.mubr.f32.mxu1 %v8446_v56 }
 0x1a3   : > { %v5480_v12 = vpop.f32.mrf.mxu0  ;;  %3346 = vmatmul.mubr.f32.gmra.mxu0 %v8554_v26  ;;  %v1898_v52 = vpop.f32.mrf.mxu1  ;;  %v8555_v26 = vld [vmem:[#allocation48_spill] sm:$0xff] }
 0x1a4   : > { %v7305_v57 = vadd.f32 %v5510_v37, %v5480_v12  ;;  %3351 = vmatprep.mubr.f32.mxu0 %v8446_v56  ;;  %v246_v37 = vld [vmem:[%s8205_s0 + $0x28] sm:$0xff] }
 0x1a5   : > { %v1670_v21 = vpop.f32.mrf.mxu0  ;;  %v5513_v46 = vpop.f32.mrf.mxu1  ;;  %3564 = vmatmul.mubr.f32.gmra.mxu1 %v7025_v27 }
 0x1a6   : > { %v7309_v40 = vadd.f32 %v1898_v52, %v1670_v21  ;;  %3569 = vmatprep.mubr.f32.mxu1 %v8446_v56 }
 0x1a7   : > { %v5483_v41 = vpop.f32.mrf.mxu0  ;;  %3354 = vmatmul.mubr.f32.gmra.mxu0 %v7003_v53  ;;  %v1910_v43 = vpop.f32.mrf.mxu1 }
 0x1a8   : > { %v7313_v3 = vadd.f32 %v5513_v46, %v5483_v41  ;;  %3359 = vmatprep.mubr.f32.mxu0 %v8446_v56  ;;  %v7324_v46 = vand.u32 4294901760, %v246_v37 }
 0x1a9   : > { %v1690_v12 = vpop.f32.mrf.mxu0  ;;  %v5516_v36 = vpop.f32.mrf.mxu1  ;;  %3573 = vmatmul.mubr.f32.gmra.mxu1 %v7041_v44 }
 0x1aa   : > { %v7320_v52 = vadd.f32 %v1910_v43, %v1690_v12  ;;  %3578 = vmatprep.mubr.f32.mxu1 %v8446_v56 }
 0x1ab   : > { %v5486_v21 = vpop.f32.mrf.mxu0  ;;  %3362 = vmatmul.mubr.f32.gmra.mxu0 %v8555_v26  ;;  %v1922_v53 = vpop.f32.mrf.mxu1  ;;  %v7335_v26 = vsub.f32 %v246_v37, %v7324_v46 }
 0x1ac   : > { %v7326_v41 = vadd.f32 %v5516_v36, %v5486_v21  ;;  %3367 = vmatprep.mubr.f32.mxu0 %v8446_v56  ;;  %v243_v36 = vld [vmem:[%s8205_s0 + $0x10] sm:$0xff] }
 0x1ad   : > { %v1710_v27 = vpop.f32.mrf.mxu0  ;;  %v5519_v20 = vpop.f32.mrf.mxu1  ;;  %3582 = vmatmul.mubr.f32.gmra.mxu1 %v7070_v29  ;;  %v7351_v32 = vand.u32 4294901760, %v7335_v26 }
 0x1ae   : > { %v7330_v28 = vadd.f32 %v1922_v53, %v1710_v27  ;;  %3587 = vmatprep.mubr.f32.mxu1 %v8446_v56 }
 0x1af   : > { %v5489_v43 = vpop.f32.mrf.mxu0  ;;  %3370 = vmatmul.mubr.f32.gmra.mxu0 %v7049_v59  ;;  %v1934_v12 = vpop.f32.mrf.mxu1  ;;  %v7347_v59 = vand.u32 4294901760, %v243_v36  ;;  %8556 = vst [vmem:[#allocation81_spill] sm:$0xff] %v7351_v32 }
 0x1b0   : > { %v7340_v21 = vadd.f32 %v5519_v20, %v5489_v43  ;;  %3375 = vmatprep.mubr.f32.mxu0 %v8446_v56 }
 0x1b1   : > { %v1730_v29 = vpop.f32.mrf.mxu0  ;;  %v5522_v53 = vpop.f32.mrf.mxu1  ;;  %3591 = vmatmul.mubr.f32.gmra.mxu1 %v7093_v9 }
 0x1b2   : > { %v7344_v27 = vadd.f32 %v1934_v12, %v1730_v29  ;;  %3596 = vmatprep.mubr.f32.mxu1 %v8446_v56  ;;  %v7361_v12 = vsub.f32 %v243_v36, %v7347_v59 }
 0x1b3   : > { %v5492_v37 = vpop.f32.mrf.mxu0  ;;  %3378 = vmatmul.mubr.f32.gmra.mxu0 %v7073_v2  ;;  %v1946_v44 = vpop.f32.mrf.mxu1 }
 0x1b4   : > { %v7353_v20 = vadd.f32 %v5522_v53, %v5492_v37  ;;  %3383 = vmatprep.mubr.f32.mxu0 %v8446_v56  ;;  %v4258_v53 = vsub.f32 %v7335_v26, %v7351_v32  ;;  %v7374_v36 = vand.u32 4294901760, %v7361_v12  ;;  %v8570_v32 = vld [vmem:[#allocation43_spill] sm:$0xff] }
 0x1b5   : > { %v1750_v43 = vpop.f32.mrf.mxu0  ;;  %v5525_v51 = vpop.f32.mrf.mxu1  ;;  %3600 = vmatmul.mubr.f32.gmra.mxu1 %v7115_v31 }
 0x1b6   : > { %v7357_v29 = vadd.f32 %v1946_v44, %v1750_v43  ;;  %3605 = vmatprep.mubr.f32.mxu1 %v8446_v56  ;;  %8557 = vst [vmem:[#allocation82_spill] sm:$0xff] %v7374_v36  ;;  %v4259_v61 = vand.u32 4294901760, %v4258_v53 }
 0x1b7   : > { %v5495_v2 = vpop.f32.mrf.mxu0  ;;  %3386 = vmatmul.mubr.f32.gmra.mxu0 %v7096_v47  ;;  %v1958_v9 = vpop.f32.mrf.mxu1 }
 0x1b8   : > { %v7366_v37 = vadd.f32 %v5525_v51, %v5495_v2  ;;  %3391 = vmatprep.mubr.f32.mxu0 %v8446_v56 }
 0x1b9   : > { %v1770_v38 = vpop.f32.mrf.mxu0  ;;  %v5528_v31 = vpop.f32.mrf.mxu1  ;;  %3609 = vmatmul.mubr.f32.gmra.mxu1 %v7135_v11 }
 0x1ba   : > { %v7370_v44 = vadd.f32 %v1958_v9, %v1770_v38  ;;  %3880 = vmatprep.mubr.f32.mxu1 %v8446_v56  ;;  %v4265_v38 = vsub.f32 %v7361_v12, %v7374_v36  ;;  %v8562_v36 = vld [vmem:[#allocation7_spill] sm:$0xff] }
 0x1bb   : > { %v5498_v43 = vpop.f32.mrf.mxu0  ;;  %3394 = vmatmul.mubr.f32.gmra.mxu0 %v7118_v7  ;;  %v1970_v47 = vpop.f32.mrf.mxu1 }
 0x1bc   : > { %v7377_v2 = vadd.f32 %v5528_v31, %v5498_v43  ;;  %3697 = vmatprep.mubr.f32.mxu0 %v8446_v56  ;;  %v4266_v13 = vand.u32 4294901760, %v4265_v38 }
 0x1bd   : > { %v1790_v51 = vpop.f32.mrf.mxu0  ;;  %v5567_v63 = vpop.f32.mrf.mxu1  ;;  %3882 = vmatmul.mubr.f32.vlgmr.msra.gmra.mxu1 %v8558_v14 }
 0x1be   : > { %v7381_v9 = vadd.f32 %v1970_v47, %v1790_v51  ;;  %5680 = vmatpush3.msra.mxu1 %v7224_v39  ;;  %3887 = vmatprep.mubr.f32.mxu1 %v8446_v56  ;;  %v8559_v51 = vld [vmem:[#allocation19_spill] sm:$0xff] }
 0x1bf   : > { %v5537_v7 = vpop.f32.mrf.mxu0  ;;  %3699 = vmatmul.mubr.f32.vlgmr.msra.gmra.mxu0 %v8558_v14  ;;  %v2235_v31 = vpop.f32.mrf.mxu1  ;;  %5681 = vmatprep.subr.mxu1 %v4259_v61 }
 0x1c0   : > { %v2062_v53 = vadd.f32 %v5537_v7, %v7297_v35  ;;  %5650 = vmatpush3.msra.mxu0 %v7159_v22  ;;  %3704 = vmatprep.mubr.f32.mxu0 %v8446_v56 }
 0x1c1   : > { %v2054_v47 = vpop.f32.mrf.mxu0  ;;  %v5570_v43 = vpop.f32.mrf.mxu1  ;;  %3889 = vmatmul.mubr.f32.gmra.mxu1 %v8559_v51  ;;  %5651 = vmatprep.subr.mxu0 %v7324_v46 }
 0x1c2   : > { %v7393_v39 = vadd.f32 %v5567_v63, %v2062_v53  ;;  %v2055_v11 = vadd.f32 %v2054_v47, %v7301_v1  ;;  %3894 = vmatprep.mubr.f32.mxu1 %v8446_v56  ;;  %5652 = vmatpush3.msra.mxu0 %v7324_v46  ;;  %v8560_v53 = vld [vmem:[#allocation27_spill] sm:$0xff] }
 0x1c3   : > { %v5540_v7 = vpop.f32.mrf.mxu0  ;;  %3706 = vmatmul.mubr.f32.gmra.mxu0 %v8559_v51  ;;  %v2251_v35 = vpop.f32.mrf.mxu1  ;;  %5682 = vmatpush3.msra.mxu1 %v4259_v61 }
 0x1c4   : > { %v7399_v6 = vadd.f32 %v2235_v31, %v2055_v11  ;;  %v2076_v23 = vadd.f32 %v5540_v7, %v7305_v57  ;;  %3711 = vmatprep.mubr.f32.mxu0 %v8446_v56  ;;  %5653 = vmatprep.subr.mxu0 %v7347_v59  ;;  %v8561_v7 = vld [vmem:[#allocation4_spill] sm:$0xff] }
 0x1c5   : > { %v2068_v63 = vpop.f32.mrf.mxu0  ;;  %v5573_v1 = vpop.f32.mrf.mxu1  ;;  %3896 = vmatmul.mubr.f32.gmra.mxu1 %v8560_v53  ;;  %5654 = vmatpush3.msra.mxu0 %v7347_v59 }
 0x1c6   : > { %v7406_v38 = vadd.f32 %v5570_v43, %v2076_v23  ;;  %v2069_v47 = vadd.f32 %v2068_v63, %v7309_v40  ;;  %3901 = vmatprep.mubr.f32.mxu1 %v8446_v56  ;;  %5683 = vmatprep.subr.mxu1 %v4266_v13 }
 0x1c7   : > { %v5543_v11 = vpop.f32.mrf.mxu0  ;;  %3713 = vmatmul.mubr.f32.gmra.mxu0 %v8560_v53  ;;  %v2267_v61 = vpop.f32.mrf.mxu1  ;;  %5684 = vmatpush3.msra.mxu1 %v4266_v13 }
 0x1c8   : > { %v7411_v57 = vadd.f32 %v2251_v35, %v2069_v47  ;;  %v2090_v31 = vadd.f32 %v5543_v11, %v7313_v3  ;;  %3718 = vmatprep.mubr.f32.mxu0 %v8446_v56  ;;  %5709 = vmatprep.subr.mxu0 %v7174_v34 }
 0x1c9   : > { %v2082_v23 = vpop.f32.mrf.mxu0  ;;  %v5576_v43 = vpop.f32.mrf.mxu1  ;;  %3903 = vmatmul.mubr.f32.gmra.mxu1 %v8561_v7  ;;  %5739 = vmatprep.subr.mxu1 %v7159_v22 }
 0x1ca   : > { %v7418_v40 = vadd.f32 %v5573_v1, %v2090_v31  ;;  %v2083_v63 = vadd.f32 %v2082_v23, %v7320_v52  ;;  %3908 = vmatprep.mubr.f32.mxu1 %v8446_v56 }
 0x1cb   : > { %v5546_v13 = vpop.f32.mrf.mxu0  ;;  %3720 = vmatmul.mubr.f32.gmra.mxu0 %v8561_v7  ;;  %v2283_v3 = vpop.f32.mrf.mxu1 }
 0x1cc   : > { %v7423_v35 = vadd.f32 %v2267_v61, %v2083_v63  ;;  %v2104_v47 = vadd.f32 %v5546_v13, %v7326_v41  ;;  %3725 = vmatprep.mubr.f32.mxu0 %v8446_v56 }
 0x1cd   : > { %v2096_v11 = vpop.f32.mrf.mxu0  ;;  %v5579_v18 = vpop.f32.mrf.mxu1  ;;  %3910 = vmatmul.mubr.f32.gmra.mxu1 %v8562_v36 }
 0x1ce   : > { %v7428_v1 = vadd.f32 %v5576_v43, %v2104_v47  ;;  %v2097_v52 = vadd.f32 %v2096_v11, %v7330_v28  ;;  %3915 = vmatprep.mubr.f32.mxu1 %v8446_v56 }
 0x1cf   : > { %v5549_v31 = vpop.f32.mrf.mxu0  ;;  %3727 = vmatmul.mubr.f32.gmra.mxu0 %v8562_v36  ;;  %v2299_v23 = vpop.f32.mrf.mxu1 }
 0x1d0   : > { %v7433_v61 = vadd.f32 %v2283_v3, %v2097_v52  ;;  %v2118_v41 = vadd.f32 %v5549_v31, %v7340_v21  ;;  %3732 = vmatprep.mubr.f32.mxu0 %v8446_v56 }
 0x1d1   : > { %v2110_v63 = vpop.f32.mrf.mxu0  ;;  %v5582_v13 = vpop.f32.mrf.mxu1  ;;  %3917 = vmatmul.mubr.f32.gmra.mxu1 %v8563_v4 }
 0x1d2   : > { %v7438_v43 = vadd.f32 %v5579_v18, %v2118_v41  ;;  %v2111_v28 = vadd.f32 %v2110_v63, %v7344_v27  ;;  %3922 = vmatprep.mubr.f32.mxu1 %v8446_v56 }
 0x1d3   : > { %v5552_v47 = vpop.f32.mrf.mxu0  ;;  %3734 = vmatmul.mubr.f32.gmra.mxu0 %v8563_v4  ;;  %v2315_v11 = vpop.f32.mrf.mxu1 }
 0x1d4   : > { %v7443_v3 = vadd.f32 %v2299_v23, %v2111_v28  ;;  %v2132_v21 = vadd.f32 %v5552_v47, %v7353_v20  ;;  %3739 = vmatprep.mubr.f32.mxu0 %v8446_v56 }
 0x1d5   : > { %v2124_v52 = vpop.f32.mrf.mxu0  ;;  %v5585_v31 = vpop.f32.mrf.mxu1  ;;  %3924 = vmatmul.mubr.f32.gmra.mxu1 %v8564_v55 }
 0x1d6   : > { %v7448_v18 = vadd.f32 %v5582_v13, %v2132_v21  ;;  %v2125_v27 = vadd.f32 %v2124_v52, %v7357_v29  ;;  %3929 = vmatprep.mubr.f32.mxu1 %v8446_v56 }
 0x1d7   : > { %v5555_v41 = vpop.f32.mrf.mxu0  ;;  %3741 = vmatmul.mubr.f32.gmra.mxu0 %v8564_v55  ;;  %v2331_v63 = vpop.f32.mrf.mxu1 }
 0x1d8   : > { %v7453_v23 = vadd.f32 %v2315_v11, %v2125_v27  ;;  %v2146_v20 = vadd.f32 %v5555_v41, %v7366_v37  ;;  %3746 = vmatprep.mubr.f32.mxu0 %v8446_v56 }
 0x1d9   : > { %v2138_v28 = vpop.f32.mrf.mxu0  ;;  %v5588_v47 = vpop.f32.mrf.mxu1  ;;  %3931 = vmatmul.mubr.f32.gmra.mxu1 %v8565_v24 }
 0x1da   : > { %v7458_v13 = vadd.f32 %v5585_v31, %v2146_v20  ;;  %v2139_v29 = vadd.f32 %v2138_v28, %v7370_v44  ;;  %3936 = vmatprep.mubr.f32.mxu1 %v8446_v56 }
 0x1db   : > { %v5558_v21 = vpop.f32.mrf.mxu0  ;;  %3748 = vmatmul.mubr.f32.gmra.mxu0 %v8565_v24  ;;  %v2347_v52 = vpop.f32.mrf.mxu1 }
 0x1dc   : > { %v7463_v11 = vadd.f32 %v2331_v63, %v2139_v29  ;;  %v2160_v37 = vadd.f32 %v5558_v21, %v7377_v2  ;;  %3753 = vmatprep.mubr.f32.mxu0 %v8446_v56 }
 0x1dd   : > { %v2152_v27 = vpop.f32.mrf.mxu0  ;;  %v5627_v41 = vpop.f32.mrf.mxu1  ;;  %3938 = vmatmul.mubr.f32.gmra.mxu1 %v8566_v60 }
 0x1de   : > { %v7468_v31 = vadd.f32 %v5588_v47, %v2160_v37  ;;  %v2153_v44 = vadd.f32 %v2152_v27, %v7381_v9  ;;  %3943 = vmatprep.mubr.f32.mxu1 %v8446_v56 }
 0x1df   : > { %v5597_v20 = vpop.f32.mrf.mxu0  ;;  %3755 = vmatmul.mubr.f32.gmra.mxu0 %v8566_v60  ;;  %v2599_v28 = vpop.f32.mrf.mxu1 }
 0x1e0   : > { %v7473_v63 = vadd.f32 %v2347_v52, %v2153_v44  ;;  %v2442_v2 = vadd.f32 %v5597_v20, %v7393_v39  ;;  %3760 = vmatprep.mubr.f32.mxu0 %v8446_v56 }
 0x1e1   : > { %v2435_v29 = vpop.f32.mrf.mxu0  ;;  %v5630_v21 = vpop.f32.mrf.mxu1  ;;  %3945 = vmatmul.mubr.f32.gmra.mxu1 %v8567_v58 }
 0x1e2   : > { %v7478_v47 = vadd.f32 %v5627_v41, %v2442_v2  ;;  %v2436_v9 = vadd.f32 %v2435_v29, %v7399_v6  ;;  %3950 = vmatprep.mubr.f32.mxu1 %v8446_v56 }
 0x1e3   : > { %v5600_v37 = vpop.f32.mrf.mxu0  ;;  %3762 = vmatmul.mubr.f32.gmra.mxu0 %v8567_v58  ;;  %v2611_v27 = vpop.f32.mrf.mxu1 }
 0x1e4   : > { %8568 = vst [vmem:[#allocation13_spill] sm:$0xff] %v7478_v47  ;;  %v7483_v52 = vadd.f32 %v2599_v28, %v2436_v9  ;;  %v2454_v39 = vadd.f32 %v5600_v37, %v7406_v38  ;;  %3767 = vmatprep.mubr.f32.mxu0 %v8446_v56 }
 0x1e5   : > { %v2447_v44 = vpop.f32.mrf.mxu0  ;;  %v5633_v20 = vpop.f32.mrf.mxu1  ;;  %3952 = vmatmul.mubr.f32.gmra.mxu1 %v8570_v32 }
 0x1e6   : > { %8569 = vst [vmem:[#allocation19_spill] sm:$0xff] %v7483_v52  ;;  %v7488_v41 = vadd.f32 %v5630_v21, %v2454_v39  ;;  %v2448_v6 = vadd.f32 %v2447_v44, %v7411_v57  ;;  %3957 = vmatprep.mubr.f32.mxu1 %v8446_v56  ;;  %v8573_v52 = vld [vmem:[#allocation44_spill] sm:$0xff] }
 0x1e7   : > { %v5603_v2 = vpop.f32.mrf.mxu0  ;;  %3769 = vmatmul.mubr.f32.gmra.mxu0 %v8570_v32  ;;  %v2623_v29 = vpop.f32.mrf.mxu1 }
 0x1e8   : > { %8571 = vst [vmem:[#allocation27_spill] sm:$0xff] %v7488_v41  ;;  %v7493_v28 = vadd.f32 %v2611_v27, %v2448_v6  ;;  %v2466_v38 = vadd.f32 %v5603_v2, %v7418_v40  ;;  %3774 = vmatprep.mubr.f32.mxu0 %v8446_v56 }
 0x1e9   : > { %v2459_v9 = vpop.f32.mrf.mxu0  ;;  %v5636_v37 = vpop.f32.mrf.mxu1  ;;  %3959 = vmatmul.mubr.f32.gmra.mxu1 %v8573_v52 }
 0x1ea   : > { %8572 = vst [vmem:[#allocation4_spill] sm:$0xff] %v7493_v28  ;;  %v7498_v21 = vadd.f32 %v5633_v20, %v2466_v38  ;;  %v2460_v57 = vadd.f32 %v2459_v9, %v7423_v35  ;;  %3964 = vmatprep.mubr.f32.mxu1 %v8446_v56  ;;  %v8660_v28 = vld [vmem:[#allocation71_spill] sm:$0xff] }
 0x1eb   : > { %v5606_v39 = vpop.f32.mrf.mxu0  ;;  %3776 = vmatmul.mubr.f32.gmra.mxu0 %v8573_v52  ;;  %v2635_v44 = vpop.f32.mrf.mxu1 }
 0x1ec   : > { %8574 = vst [vmem:[#allocation7_spill] sm:$0xff] %v7498_v21  ;;  %v7503_v27 = vadd.f32 %v2623_v29, %v2460_v57  ;;  %v2478_v40 = vadd.f32 %v5606_v39, %v7428_v1  ;;  %3781 = vmatprep.mubr.f32.mxu0 %v8446_v56 }
 0x1ed   : > { %v2471_v6 = vpop.f32.mrf.mxu0  ;;  %v5639_v2 = vpop.f32.mrf.mxu1  ;;  %3966 = vmatmul.mubr.f32.gmra.mxu1 %v7027_v16 }
 0x1ee   : > { %8575 = vst [vmem:[#allocation10_spill] sm:$0xff] %v7503_v27  ;;  %v7508_v20 = vadd.f32 %v5636_v37, %v2478_v40  ;;  %v2472_v35 = vadd.f32 %v2471_v6, %v7433_v61  ;;  %3971 = vmatprep.mubr.f32.mxu1 %v8446_v56  ;;  %v8578_v27 = vld [vmem:[#allocation55_spill] sm:$0xff] }
 0x1ef   : > { %v5609_v38 = vpop.f32.mrf.mxu0  ;;  %3783 = vmatmul.mubr.f32.gmra.mxu0 %v7027_v16  ;;  %v2647_v9 = vpop.f32.mrf.mxu1 }
 0x1f0   : > { %8576 = vst [vmem:[#allocation11_spill] sm:$0xff] %v7508_v20  ;;  %v7513_v29 = vadd.f32 %v2635_v44, %v2472_v35  ;;  %v2490_v1 = vadd.f32 %v5609_v38, %v7438_v43  ;;  %3788 = vmatprep.mubr.f32.mxu0 %v8446_v56  ;;  %v8652_v20 = vld [vmem:[#allocation64_spill] sm:$0xff] }
 0x1f1   : > { %v2483_v57 = vpop.f32.mrf.mxu0  ;;  %v5642_v39 = vpop.f32.mrf.mxu1  ;;  %3973 = vmatmul.mubr.f32.gmra.mxu1 %v8578_v27 }
 0x1f2   : > { %8577 = vst [vmem:[#allocation29_spill] sm:$0xff] %v7513_v29  ;;  %v7518_v37 = vadd.f32 %v5639_v2, %v2490_v1  ;;  %v2484_v61 = vadd.f32 %v2483_v57, %v7443_v3  ;;  %3978 = vmatprep.mubr.f32.mxu1 %v8446_v56  ;;  %v8581_v29 = vld [vmem:[#allocation60_spill] sm:$0xff] }
 0x1f3   : > { %v5612_v40 = vpop.f32.mrf.mxu0  ;;  %3790 = vmatmul.mubr.f32.gmra.mxu0 %v8578_v27  ;;  %v2659_v6 = vpop.f32.mrf.mxu1 }
 0x1f4   : > { %8579 = vst [vmem:[#allocation35_spill] sm:$0xff] %v7518_v37  ;;  %v7523_v44 = vadd.f32 %v2647_v9, %v2484_v61  ;;  %v2502_v43 = vadd.f32 %v5612_v40, %v7448_v18  ;;  %3795 = vmatprep.mubr.f32.mxu0 %v8446_v56  ;;  %v8609_v37 = vld [vmem:[#allocation63_spill] sm:$0xff] }
 0x1f5   : > { %v2495_v35 = vpop.f32.mrf.mxu0  ;;  %v5645_v38 = vpop.f32.mrf.mxu1  ;;  %3980 = vmatmul.mubr.f32.gmra.mxu1 %v8581_v29 }
 0x1f6   : > { %8580 = vst [vmem:[#allocation39_spill] sm:$0xff] %v7523_v44  ;;  %v7528_v2 = vadd.f32 %v5642_v39, %v2502_v43  ;;  %v2496_v3 = vadd.f32 %v2495_v35, %v7453_v23  ;;  %3985 = vmatprep.mubr.f32.mxu1 %v8446_v56 }
 0x1f7   : > { %v5615_v1 = vpop.f32.mrf.mxu0  ;;  %3797 = vmatmul.mubr.f32.gmra.mxu0 %v8581_v29  ;;  %v2671_v57 = vpop.f32.mrf.mxu1 }
 0x1f8   : > { %8582 = vst [vmem:[#allocation43_spill] sm:$0xff] %v7528_v2  ;;  %v7533_v9 = vadd.f32 %v2659_v6, %v2496_v3  ;;  %v2514_v18 = vadd.f32 %v5615_v1, %v7458_v13  ;;  %3802 = vmatprep.mubr.f32.mxu0 %v8446_v56  ;;  %v8586_v3 = vld [vmem:[#allocation6_spill] sm:$0xff]  ;;  %v8605_v2 = vld [vmem:[#allocation53_spill] sm:$0xff] }
 0x1f9   : > { %v2507_v61 = vpop.f32.mrf.mxu0  ;;  %v5648_v40 = vpop.f32.mrf.mxu1  ;;  %3987 = vmatmul.mubr.f32.gmra.mxu1 %v7098_v42 }
 0x1fa   : > { %8583 = vst [vmem:[#allocation44_spill] sm:$0xff] %v7533_v9  ;;  %v7538_v39 = vadd.f32 %v5645_v38, %v2514_v18  ;;  %v2508_v23 = vadd.f32 %v2507_v61, %v7463_v11  ;;  %5685 = vmatprep.mubr.f32.mxu1 %v8558_v14  ;;  %v8588_v61 = vld [vmem:[#allocation9_spill] sm:$0xff] }
 0x1fb   : > { %v5618_v43 = vpop.f32.mrf.mxu0  ;;  %3804 = vmatmul.mubr.f32.gmra.mxu0 %v7098_v42  ;;  %v2683_v35 = vpop.f32.mrf.mxu1 }
 0x1fc   : > { %8584 = vst [vmem:[#allocation55_spill] sm:$0xff] %v7538_v39  ;;  %v7543_v6 = vadd.f32 %v2671_v57, %v2508_v23  ;;  %v2526_v13 = vadd.f32 %v5618_v43, %v7468_v31  ;;  %5655 = vmatprep.mubr.f32.mxu0 %v8586_v3  ;;  %v8590_v23 = vld [vmem:[#allocation56_spill] sm:$0xff] }
 0x1fd   : > { %v2519_v56 = vpop.f32.mrf.mxu0  ;;  %v3085_v1 = vpop.f32.mrf.mxu1  ;;  %5686 = vmatmul.mubr.f32.vlgmr.msra.gmra.mxu1 %v8559_v51 }
 0x1fe   : > { %8585 = vst [vmem:[#allocation60_spill] sm:$0xff] %v7543_v6  ;;  %v7548_v38 = vadd.f32 %v5648_v40, %v2526_v13  ;;  %v2520_v11 = vadd.f32 %v2519_v56, %v7473_v63  ;;  %5740 = vmatpush3.msra.mxu1 %v7159_v22  ;;  %5688 = vmatprep.mubr.f32.mxu1 %v8560_v53  ;;  %v8591_v40 = vld [vmem:[#allocation17_spill] sm:$0xff] }
 0x1ff   : > { %v2818_v18 = vpop.f32.mrf.mxu0  ;;  %5656 = vmatmul.mubr.f32.vlgmr.msra.gmra.mxu0 %v8588_v61  ;;  %v3087_v57 = vpop.f32.mrf.mxu1  ;;  %5741 = vmatprep.subr.mxu1 %v7324_v46  ;;  %v8592_v56 = vld [vmem:[#allocation61_spill] sm:$0xff] }
 0x200   : > { %8587 = vst [vmem:[#allocation6_spill] sm:$0xff] %v7548_v38  ;;  %v7555_v31 = vadd.f32 %v2683_v35, %v2520_v11  ;;  %v2819_v43 = vadd.f32 %v2818_v18, %v8590_v23  ;;  %5710 = vmatpush3.msra.mxu0 %v7174_v34  ;;  %5658 = vmatprep.mubr.f32.mxu0 %v8591_v40  ;;  %v8593_v11 = vld [vmem:[#allocation30_spill] sm:$0xff]  ;;  %v8599_v38 = vld [vmem:[#allocation40_spill] sm:$0xff]  ;;  %v8603_v6 = vld [vmem:[#allocation49_spill] sm:$0xff] }
 0x201   : > { %v2820_v13 = vpop.f32.mrf.mxu0  ;;  %v3092_v63 = vpop.f32.mrf.mxu1  ;;  %5689 = vmatmul.mubr.f32.gmra.mxu1 %v8561_v7  ;;  %5711 = vmatprep.subr.mxu0 %v7335_v26  ;;  %v8594_v23 = vld [vmem:[#allocation62_spill] sm:$0xff] }
 0x202   : > { %8589 = vst [vmem:[#allocation9_spill] sm:$0xff] %v7555_v31  ;;  %v7562_v3 = vadd.f32 %v3085_v1, %v2819_v43  ;;  %v2821_v61 = vadd.f32 %v2820_v13, %v8592_v56  ;;  %5691 = vmatprep.mubr.f32.mxu1 %v8562_v36  ;;  %5712 = vmatpush3.msra.mxu0 %v7335_v26  ;;  %v8595_v31 = vld [vmem:[#allocation34_spill] sm:$0xff] }
 0x203   : > { %v2829_v35 = vpop.f32.mrf.mxu0  ;;  %5659 = vmatmul.mubr.f32.gmra.mxu0 %v8593_v11  ;;  %v3094_v34 = vpop.f32.mrf.mxu1  ;;  %5742 = vmatpush3.msra.mxu1 %v7324_v46  ;;  %v8596_v13 = vld [vmem:[#allocation66_spill] sm:$0xff]  ;;  %v8598_v11 = vld [vmem:[#allocation67_spill] sm:$0xff] }
 0x204   : > { %v7569_v18 = vadd.f32 %v3087_v57, %v2821_v61  ;;  %v2830_v40 = vadd.f32 %v2829_v35, %v8594_v23  ;;  %5661 = vmatprep.mubr.f32.mxu0 %v8595_v31  ;;  %5713 = vmatprep.subr.mxu0 %v7361_v12  ;;  %v8597_v61 = vld [vmem:[#allocation37_spill] sm:$0xff] }
 0x205   : > { %v2831_v1 = vpop.f32.mrf.mxu0  ;;  %v3099_v43 = vpop.f32.mrf.mxu1  ;;  %5692 = vmatmul.mubr.f32.gmra.mxu1 %v8563_v4  ;;  %5714 = vmatpush3.msra.mxu0 %v7361_v12 }
 0x206   : > { %v7576_v26 = vadd.f32 %v3092_v63, %v2830_v40  ;;  %v2832_v56 = vadd.f32 %v2831_v1, %v8596_v13  ;;  %5694 = vmatprep.mubr.f32.mxu1 %v8564_v55  ;;  %5743 = vmatprep.subr.mxu1 %v7347_v59  ;;  %v8600_v1 = vld [vmem:[#allocation70_spill] sm:$0xff] }
 0x207   : > { %v2840_v57 = vpop.f32.mrf.mxu0  ;;  %5662 = vmatmul.mubr.f32.gmra.mxu0 %v8597_v61  ;;  %v3101_v31 = vpop.f32.mrf.mxu1  ;;  %5744 = vmatpush3.msra.mxu1 %v7347_v59 }
 0x208   : > { %v7583_v35 = vadd.f32 %v3094_v34, %v2832_v56  ;;  %v2841_v23 = vadd.f32 %v2840_v57, %v8598_v11  ;;  %5664 = vmatprep.mubr.f32.mxu0 %v8599_v38  ;;  %5769 = vmatprep.subr.mxu0 %v7187_v19  ;;  %v8601_v56 = vld [vmem:[#allocation45_spill] sm:$0xff]  ;;  %v8602_v38 = vld [vmem:[#allocation16_spill] sm:$0xff] }
 0x209   : > { %v2842_v12 = vpop.f32.mrf.mxu0  ;;  %v3106_v63 = vpop.f32.mrf.mxu1  ;;  %5695 = vmatmul.mubr.f32.gmra.mxu1 %v8565_v24  ;;  %5799 = vmatprep.subr.mxu1 %v7159_v22 }
 0x20a   : > { %v7590_v40 = vadd.f32 %v3099_v43, %v2841_v23  ;;  %v2843_v13 = vadd.f32 %v2842_v12, %v8600_v1  ;;  %5697 = vmatprep.mubr.f32.mxu1 %v8566_v60  ;;  %v8604_v23 = vld [vmem:[#allocation72_spill] sm:$0xff] }
 0x20b   : > { %v2851_v34 = vpop.f32.mrf.mxu0  ;;  %5665 = vmatmul.mubr.f32.gmra.mxu0 %v8601_v56  ;;  %v3108_v57 = vpop.f32.mrf.mxu1 }
 0x20c   : > { %v7595_v61 = vadd.f32 %v3101_v31, %v2843_v13  ;;  %v2852_v11 = vadd.f32 %v2851_v34, %v8602_v38  ;;  %5667 = vmatprep.mubr.f32.mxu0 %v8603_v6  ;;  %v8606_v13 = vld [vmem:[#allocation24_spill] sm:$0xff]  ;;  %v8607_v38 = vld [vmem:[#allocation57_spill] sm:$0xff] }
 0x20d   : > { %v2853_v39 = vpop.f32.mrf.mxu0  ;;  %v3113_v9 = vpop.f32.mrf.mxu1  ;;  %5698 = vmatmul.mubr.f32.gmra.mxu1 %v8567_v58 }
 0x20e   : > { %v7600_v43 = vadd.f32 %v3106_v63, %v2852_v11  ;;  %v2854_v12 = vadd.f32 %v2853_v39, %v8604_v23  ;;  %5700 = vmatprep.mubr.f32.mxu1 %v8570_v32  ;;  %v8608_v11 = vld [vmem:[#allocation73_spill] sm:$0xff] }
 0x20f   : > { %v2862_v1 = vpop.f32.mrf.mxu0  ;;  %5668 = vmatmul.mubr.f32.gmra.mxu0 %v8605_v2  ;;  %v3115_v56 = vpop.f32.mrf.mxu1 }
 0x210   : > { %v7605_v31 = vadd.f32 %v3108_v57, %v2854_v12  ;;  %v2863_v34 = vadd.f32 %v2862_v1, %v8606_v13  ;;  %5670 = vmatprep.mubr.f32.mxu0 %v8607_v38  ;;  %v8610_v1 = vld [vmem:[#allocation14_spill] sm:$0xff] }
 0x211   : > { %v2864_v6 = vpop.f32.mrf.mxu0  ;;  %v3120_v44 = vpop.f32.mrf.mxu1  ;;  %5701 = vmatmul.mubr.f32.gmra.mxu1 %v8573_v52 }
 0x212   : > { %v7610_v63 = vadd.f32 %v3113_v9, %v2863_v34  ;;  %v2865_v39 = vadd.f32 %v2864_v6, %v8608_v11  ;;  %5703 = vmatprep.mubr.f32.mxu1 %v7027_v16  ;;  %v8611_v11 = vld [vmem:[#allocation23_spill] sm:$0xff] }
 0x213   : > { %v2873_v23 = vpop.f32.mrf.mxu0  ;;  %5671 = vmatmul.mubr.f32.gmra.mxu0 %v8609_v37  ;;  %v3122_v2 = vpop.f32.mrf.mxu1 }
 0x214   : > { %v7615_v57 = vadd.f32 %v3115_v56, %v2865_v39  ;;  %v2874_v12 = vadd.f32 %v2873_v23, %v7161_v54  ;;  %5673 = vmatprep.mubr.f32.mxu0 %v8610_v1  ;;  %v8612_v1 = vld [vmem:[#allocation2_spill] sm:$0xff] }
 0x215   : > { %v2875_v13 = vpop.f32.mrf.mxu0  ;;  %v3127_v38 = vpop.f32.mrf.mxu1  ;;  %5704 = vmatmul.mubr.f32.gmra.mxu1 %v8578_v27 }
 0x216   : > { %v7620_v9 = vadd.f32 %v3120_v44, %v2874_v12  ;;  %v2876_v34 = vadd.f32 %v2875_v13, %v7168_v8  ;;  %5706 = vmatprep.mubr.f32.mxu1 %v8581_v29 }
 0x217   : > { %v2884_v6 = vpop.f32.mrf.mxu0  ;;  %5674 = vmatmul.mubr.f32.gmra.mxu0 %v8611_v11  ;;  %v3129_v37 = vpop.f32.mrf.mxu1 }
 0x218   : > { %v7625_v56 = vadd.f32 %v3122_v2, %v2876_v34  ;;  %v2885_v54 = vadd.f32 %v2884_v6, %v7176_v15  ;;  %5676 = vmatprep.mubr.f32.mxu0 %v7150_v48 }
 0x219   : > { %v2886_v39 = vpop.f32.mrf.mxu0  ;;  %v3134_v23 = vpop.f32.mrf.mxu1  ;;  %5707 = vmatmul.mubr.f32.gmra.mxu1 %v7098_v42 }
 0x21a   : > { %v7630_v44 = vadd.f32 %v3127_v38, %v2885_v54  ;;  %v2887_v8 = vadd.f32 %v2886_v39, %v7181_v45  ;;  %5745 = vmatprep.mubr.f32.mxu1 %v8516_v62  ;;  %v8617_v39 = vld [vmem:[#allocation28_spill] sm:$0xff] }
 0x21b   : > { %v2895_v12 = vpop.f32.mrf.mxu0  ;;  %5677 = vmatmul.mubr.f32.gmra.mxu0 %v8612_v1  ;;  %v3136_v13 = vpop.f32.mrf.mxu1 }
 0x21c   : > { %v7635_v2 = vadd.f32 %v3129_v37, %v2887_v8  ;;  %v2896_v15 = vadd.f32 %v2895_v12, %v7189_v10  ;;  %5715 = vmatprep.mubr.f32.mxu0 %v8517_v49  ;;  %v8615_v37 = vld [vmem:[#allocation18_spill] sm:$0xff] }
 0x21d   : > { %v2897_v48 = vpop.f32.mrf.mxu0  ;;  %v3141_v34 = vpop.f32.mrf.mxu1  ;;  %5746 = vmatmul.mubr.f32.vlgmr.msra.gmra.mxu1 %v8519_v17  ;;  %v8619_v8 = vld [vmem:[#allocation82_spill] sm:$0xff] }
 0x21e   : > { %v7640_v38 = vadd.f32 %v3134_v23, %v2896_v15  ;;  %v2898_v45 = vadd.f32 %v2897_v48, %v7196_v5  ;;  %5800 = vmatpush3.msra.mxu1 %v7159_v22  ;;  %5748 = vmatprep.mubr.f32.mxu1 %v6814_v33  ;;  %v8613_v22 = vld [vmem:[#allocation81_spill] sm:$0xff]  ;;  %v8618_v23 = vld [vmem:[#allocation15_spill] sm:$0xff] }
 0x21f   : > { %v2906_v62 = vpop.f32.mrf.mxu0  ;;  %5716 = vmatmul.mubr.f32.vlgmr.msra.gmra.mxu0 %v8522_v25  ;;  %v3143_v6 = vpop.f32.mrf.mxu1  ;;  %5801 = vmatprep.subr.mxu1 %v7324_v46  ;;  %v8614_v25 = vld [vmem:[#allocation5_spill] sm:$0xff] }
 0x220   : > { %v7647_v10 = vadd.f32 %v3136_v13, %v2898_v45  ;;  %v2907_v49 = vadd.f32 %v2906_v62, %v7207_v50  ;;  %5770 = vmatpush3.msra.mxu0 %v7187_v19  ;;  %5718 = vmatprep.mubr.f32.mxu0 %v8527_v0  ;;  %v8616_v50 = vld [vmem:[#allocation8_spill] sm:$0xff]  ;;  %v8620_v13 = vld [vmem:[#allocation31_spill] sm:$0xff]  ;;  %v8622_v48 = vld [vmem:[#allocation21_spill] sm:$0xff] }
 0x221   : > { %v2908_v17 = vpop.f32.mrf.mxu0  ;;  %v3148_v5 = vpop.f32.mrf.mxu1  ;;  %5749 = vmatmul.mubr.f32.gmra.mxu1 %v8529_v30  ;;  %5771 = vmatprep.subr.mxu0 %v8613_v22  ;;  %v8623_v45 = vld [vmem:[#allocation32_spill] sm:$0xff] }
 0x222   : > { %v7654_v33 = vadd.f32 %v3141_v34, %v2907_v49  ;;  %v2909_v11 = vadd.f32 %v2908_v17, %v8614_v25  ;;  %5751 = vmatprep.mubr.f32.mxu1 %v8615_v37  ;;  %5772 = vmatpush3.msra.mxu0 %v8613_v22  ;;  %v8624_v62 = vld [vmem:[#allocation20_spill] sm:$0xff]  ;;  %v8626_v17 = vld [vmem:[#allocation26_spill] sm:$0xff] }
 0x223   : > { %v2917_v54 = vpop.f32.mrf.mxu0  ;;  %5719 = vmatmul.mubr.f32.gmra.mxu0 %v8616_v50  ;;  %v3150_v19 = vpop.f32.mrf.mxu1  ;;  %5802 = vmatpush3.msra.mxu1 %v7324_v46  ;;  %v8627_v25 = vld [vmem:[#allocation22_spill] sm:$0xff]  ;;  %v8628_v37 = vld [vmem:[#allocation36_spill] sm:$0xff]  ;;  %v8630_v50 = vld [vmem:[#allocation25_spill] sm:$0xff] }
 0x224   : > { %v7661_v0 = vadd.f32 %v3143_v6, %v2909_v11  ;;  %v2918_v30 = vadd.f32 %v2917_v54, %v8617_v39  ;;  %5721 = vmatprep.mubr.f32.mxu0 %v8618_v23  ;;  %5773 = vmatprep.subr.mxu0 %v8619_v8 }
 0x225   : > { %v2919_v12 = vpop.f32.mrf.mxu0  ;;  %v3155_v1 = vpop.f32.mrf.mxu1  ;;  %5752 = vmatmul.mubr.f32.gmra.mxu1 %v8620_v13  ;;  %5774 = vmatpush3.msra.mxu0 %v8619_v8  ;;  %v8632_v8 = vld [vmem:[#allocation33_spill] sm:$0xff] }
 0x226   : > { %v7668_v15 = vadd.f32 %v3148_v5, %v2918_v30  ;;  %v2920_v34 = vadd.f32 %v2919_v12, %v8622_v48  ;;  %5754 = vmatprep.mubr.f32.mxu1 %v8623_v45  ;;  %5803 = vmatprep.subr.mxu1 %v7347_v59  ;;  %v8631_v30 = vld [vmem:[#allocation41_spill] sm:$0xff]  ;;  %v8634_v12 = vld [vmem:[#allocation3_spill] sm:$0xff]  ;;  %v8635_v48 = vld [vmem:[#allocation38_spill] sm:$0xff] }
 0x227   : > { %v2928_v46 = vpop.f32.mrf.mxu0  ;;  %5722 = vmatmul.mubr.f32.gmra.mxu0 %v8624_v62  ;;  %v3157_v6 = vpop.f32.mrf.mxu1  ;;  %5804 = vmatpush3.msra.mxu1 %v7347_v59  ;;  %v8638_v62 = vld [vmem:[#allocation12_spill] sm:$0xff] }
 0x228   : > { %8621 = vst [vmem:[#allocation56_spill] sm:$0xff] %v7668_v15  ;;  %v7675_v49 = vadd.f32 %v3150_v19, %v2920_v34  ;;  %v2929_v22 = vadd.f32 %v2928_v46, %v8626_v17  ;;  %5724 = vmatprep.mubr.f32.mxu0 %v8627_v25  ;;  %v8636_v46 = vld [vmem:[#allocation46_spill] sm:$0xff] }
 0x229   : > { %v2930_v5 = vpop.f32.mrf.mxu0  ;;  %v3162_v11 = vpop.f32.mrf.mxu1  ;;  %5755 = vmatmul.mubr.f32.gmra.mxu1 %v8628_v37 }
 0x22a   : > { %8625 = vst [vmem:[#allocation17_spill] sm:$0xff] %v7675_v49  ;;  %v7680_v54 = vadd.f32 %v3155_v1, %v2929_v22  ;;  %v2931_v39 = vadd.f32 %v2930_v5, %v8630_v50  ;;  %5757 = vmatprep.mubr.f32.mxu1 %v8631_v30  ;;  %v8639_v22 = vld [vmem:[#allocation50_spill] sm:$0xff]  ;;  %v8643_v30 = vld [vmem:[#allocation47_spill] sm:$0xff] }
 0x22b   : > { %v2939_v23 = vpop.f32.mrf.mxu0  ;;  %5725 = vmatmul.mubr.f32.gmra.mxu0 %v8632_v8  ;;  %v3164_v59 = vpop.f32.mrf.mxu1  ;;  %v8640_v5 = vld [vmem:[#allocation42_spill] sm:$0xff] }
 0x22c   : > { %8629 = vst [vmem:[#allocation61_spill] sm:$0xff] %v7680_v54  ;;  %v7685_v19 = vadd.f32 %v3157_v6, %v2931_v39  ;;  %v2940_v13 = vadd.f32 %v2939_v23, %v8634_v12  ;;  %5727 = vmatprep.mubr.f32.mxu0 %v8635_v48  ;;  %v8642_v50 = vld [vmem:[#allocation74_spill] sm:$0xff]  ;;  %v8644_v12 = vld [vmem:[#allocation52_spill] sm:$0xff] }
 0x22d   : > { %v2941_v34 = vpop.f32.mrf.mxu0  ;;  %v3169_v45 = vpop.f32.mrf.mxu1  ;;  %5758 = vmatmul.mubr.f32.gmra.mxu1 %v8636_v46 }
 0x22e   : > { %8633 = vst [vmem:[#allocation30_spill] sm:$0xff] %v7685_v19  ;;  %v7690_v1 = vadd.f32 %v3162_v11, %v2940_v13  ;;  %v2942_v17 = vadd.f32 %v2941_v34, %v8638_v62  ;;  %5760 = vmatprep.mubr.f32.mxu1 %v8639_v22  ;;  %v8646_v13 = vld [vmem:[#allocation75_spill] sm:$0xff]  ;;  %v8647_v34 = vld [vmem:[#allocation58_spill] sm:$0xff]  ;;  %v8648_v62 = vld [vmem:[#allocation48_spill] sm:$0xff] }
 0x22f   : > { %v2950_v25 = vpop.f32.mrf.mxu0  ;;  %5728 = vmatmul.mubr.f32.gmra.mxu0 %v8640_v5  ;;  %v3171_v37 = vpop.f32.mrf.mxu1  ;;  %v8651_v5 = vld [vmem:[#allocation54_spill] sm:$0xff] }
 0x230   : > { %8637 = vst [vmem:[#allocation62_spill] sm:$0xff] %v7690_v1  ;;  %v7695_v6 = vadd.f32 %v3164_v59, %v2942_v17  ;;  %v2951_v39 = vadd.f32 %v2950_v25, %v8642_v50  ;;  %5730 = vmatprep.mubr.f32.mxu0 %v8643_v30  ;;  %v8650_v17 = vld [vmem:[#allocation76_spill] sm:$0xff] }
 0x231   : > { %v2952_v23 = vpop.f32.mrf.mxu0  ;;  %v3176_v8 = vpop.f32.mrf.mxu1  ;;  %5761 = vmatmul.mubr.f32.gmra.mxu1 %v8644_v12  ;;  %v8655_v12 = vld [vmem:[#allocation68_spill] sm:$0xff] }
 0x232   : > { %8641 = vst [vmem:[#allocation34_spill] sm:$0xff] %v7695_v6  ;;  %v7700_v11 = vadd.f32 %v3169_v45, %v2951_v39  ;;  %v2953_v48 = vadd.f32 %v2952_v23, %v8646_v13  ;;  %5763 = vmatprep.mubr.f32.mxu1 %v8647_v34  ;;  %v8654_v39 = vld [vmem:[#allocation77_spill] sm:$0xff]  ;;  %v8656_v34 = vld [vmem:[#allocation59_spill] sm:$0xff] }
 0x233   : > { %v2961_v46 = vpop.f32.mrf.mxu0  ;;  %5731 = vmatmul.mubr.f32.gmra.mxu0 %v8648_v62  ;;  %v3178_v22 = vpop.f32.mrf.mxu1 }
 0x234   : > { %8645 = vst [vmem:[#allocation66_spill] sm:$0xff] %v7700_v11  ;;  %v7705_v59 = vadd.f32 %v3171_v37, %v2953_v48  ;;  %v2962_v25 = vadd.f32 %v2961_v46, %v8650_v17  ;;  %5733 = vmatprep.mubr.f32.mxu0 %v8651_v5  ;;  %v8658_v48 = vld [vmem:[#allocation78_spill] sm:$0xff]  ;;  %v8659_v17 = vld [vmem:[#allocation65_spill] sm:$0xff] }
 0x235   : > { %v2963_v50 = vpop.f32.mrf.mxu0  ;;  %v3183_v30 = vpop.f32.mrf.mxu1  ;;  %5764 = vmatmul.mubr.f32.gmra.mxu1 %v8652_v20 }
 0x236   : > { %8649 = vst [vmem:[#allocation37_spill] sm:$0xff] %v7705_v59  ;;  %v7710_v45 = vadd.f32 %v3176_v8, %v2962_v25  ;;  %v2964_v23 = vadd.f32 %v2963_v50, %v8654_v39  ;;  %5766 = vmatprep.mubr.f32.mxu1 %v8655_v12  ;;  %v8662_v8 = vld [vmem:[#allocation79_spill] sm:$0xff]  ;;  %v8663_v39 = vld [vmem:[#allocation69_spill] sm:$0xff] }
 0x237   : > { %v2972_v13 = vpop.f32.mrf.mxu0  ;;  %5734 = vmatmul.mubr.f32.gmra.mxu0 %v8656_v34  ;;  %v3185_v62 = vpop.f32.mrf.mxu1 }
 0x238   : > { %8653 = vst [vmem:[#allocation67_spill] sm:$0xff] %v7710_v45  ;;  %v7715_v37 = vadd.f32 %v3178_v22, %v2964_v23  ;;  %v2973_v46 = vadd.f32 %v2972_v13, %v8658_v48  ;;  %5736 = vmatprep.mubr.f32.mxu0 %v8659_v17  ;;  %v8665_v23 = vld [vmem:[#allocation51_spill] sm:$0xff] }
 0x239   : > { %v2974_v5 = vpop.f32.mrf.mxu0  ;;  %v3190_v21 = vpop.f32.mrf.mxu1  ;;  %5767 = vmatmul.mubr.f32.gmra.mxu1 %v8660_v28 }
 0x23a   : > { %8657 = vst [vmem:[#allocation40_spill] sm:$0xff] %v7715_v37  ;;  %v7720_v20 = vadd.f32 %v3183_v30, %v2973_v46  ;;  %v2975_v25 = vadd.f32 %v2974_v5, %v8662_v8  ;;  %5805 = vmatprep.mubr.f32.mxu1 %v8558_v14  ;;  %v8667_v30 = vld [vmem:[#allocation80_spill] sm:$0xff] }
 0x23b   : > { %v2983_v50 = vpop.f32.mrf.mxu0  ;;  %5737 = vmatmul.mubr.f32.gmra.mxu0 %v8663_v39  ;;  %v3192_v12 = vpop.f32.mrf.mxu1 }
 0x23c   : > { %8661 = vst [vmem:[#allocation70_spill] sm:$0xff] %v7720_v20  ;;  %v7725_v22 = vadd.f32 %v3185_v62, %v2975_v25  ;;  %v2984_v13 = vadd.f32 %v2983_v50, %v8665_v23  ;;  %5775 = vmatprep.mubr.f32.mxu0 %v8558_v14 }
 0x23d   : > { %v2985_v34 = vpop.f32.mrf.mxu0  ;;  %v7729_v48 = vpop.f32.mrf.mxu1  ;;  %5806 = vmatmul.mubr.f32.vlgmr.msra.gmra.mxu1 %v8559_v51 }
 0x23e   : > { %8664 = vst [vmem:[#allocation45_spill] sm:$0xff] %v7725_v22  ;;  %v7732_v28 = vadd.f32 %v3190_v21, %v2984_v13  ;;  %v2986_v46 = vadd.f32 %v2985_v34, %v8667_v30  ;;  %5808 = vmatprep.mubr.f32.mxu1 %v8560_v53 }
 0x23f   : > { %v7736_v17 = vpop.f32.mrf.mxu0  ;;  %5776 = vmatmul.mubr.f32.vlgmr.msra.gmra.mxu0 %v8559_v51  ;;  %v7739_v62 = vpop.f32.mrf.mxu1 }
 0x240   : > { %8666 = vst [vmem:[#allocation16_spill] sm:$0xff] %v7732_v28  ;;  %v7741_v5 = vadd.f32 %v3192_v12, %v2986_v46  ;;  %5778 = vmatprep.mubr.f32.mxu0 %v8560_v53 }
 0x241   : > { %v7744_v14 = vpop.f32.mrf.mxu0  ;;  %v7746_v8 = vpop.f32.mrf.mxu1  ;;  %5809 = vmatmul.mubr.f32.gmra.mxu1 %v8561_v7 }
 0x242   : > { %8668 = vst [vmem:[#allocation49_spill] sm:$0xff] %v7741_v5  ;;  %5811 = vmatprep.mubr.f32.mxu1 %v8562_v36 }
 0x243   : > { %v7750_v21 = vpop.f32.mrf.mxu0  ;;  %5779 = vmatmul.mubr.f32.gmra.mxu0 %v8561_v7  ;;  %v7753_v25 = vpop.f32.mrf.mxu1 }
 0x244   : > { %5781 = vmatprep.mubr.f32.mxu0 %v8562_v36 }
 0x245   : > { %v7756_v51 = vpop.f32.mrf.mxu0  ;;  %v7758_v50 = vpop.f32.mrf.mxu1  ;;  %5812 = vmatmul.mubr.f32.gmra.mxu1 %v8563_v4 }
 0x246   : > { %5814 = vmatprep.mubr.f32.mxu1 %v8564_v55 }
 0x247   : > { %v7762_v53 = vpop.f32.mrf.mxu0  ;;  %5782 = vmatmul.mubr.f32.gmra.mxu0 %v8563_v4  ;;  %v7765_v39 = vpop.f32.mrf.mxu1 }
 0x248   : > { %5784 = vmatprep.mubr.f32.mxu0 %v8564_v55 }
 0x249   : > { %v7768_v7 = vpop.f32.mrf.mxu0  ;;  %v7770_v12 = vpop.f32.mrf.mxu1  ;;  %5815 = vmatmul.mubr.f32.gmra.mxu1 %v8565_v24 }
 0x24a   : > { %5817 = vmatprep.mubr.f32.mxu1 %v8566_v60 }
 0x24b   : > { %v7774_v36 = vpop.f32.mrf.mxu0  ;;  %5785 = vmatmul.mubr.f32.gmra.mxu0 %v8565_v24  ;;  %v7777_v23 = vpop.f32.mrf.mxu1 }
 0x24c   : > { %5787 = vmatprep.mubr.f32.mxu0 %v8566_v60 }
 0x24d   : > { %v7780_v4 = vpop.f32.mrf.mxu0  ;;  %v7782_v13 = vpop.f32.mrf.mxu1  ;;  %5818 = vmatmul.mubr.f32.gmra.mxu1 %v8567_v58 }
 0x24e   : > { %5820 = vmatprep.mubr.f32.mxu1 %v8570_v32 }
 0x24f   : > { %v7786_v55 = vpop.f32.mrf.mxu0  ;;  %5788 = vmatmul.mubr.f32.gmra.mxu0 %v8567_v58  ;;  %v7789_v34 = vpop.f32.mrf.mxu1 }
 0x250   : > { %5790 = vmatprep.mubr.f32.mxu0 %v8570_v32 }
 0x251   : > { %v7792_v24 = vpop.f32.mrf.mxu0  ;;  %v7794_v30 = vpop.f32.mrf.mxu1  ;;  %5821 = vmatmul.mubr.f32.gmra.mxu1 %v8573_v52 }
 0x252   : > { %5823 = vmatprep.mubr.f32.mxu1 %v7027_v16 }
 0x253   : > { %v7798_v60 = vpop.f32.mrf.mxu0  ;;  %5791 = vmatmul.mubr.f32.gmra.mxu0 %v8573_v52  ;;  %v7801_v46 = vpop.f32.mrf.mxu1 }
 0x254   : > { %5793 = vmatprep.mubr.f32.mxu0 %v7027_v16 }
 0x255   : > { %v7804_v58 = vpop.f32.mrf.mxu0  ;;  %v7806_v41 = vpop.f32.mrf.mxu1  ;;  %5824 = vmatmul.mubr.f32.gmra.mxu1 %v8578_v27 }
 0x256   : > { %5826 = vmatprep.mubr.f32.mxu1 %v8581_v29 }
 0x257   : > { %v7810_v32 = vpop.f32.mrf.mxu0  ;;  %5794 = vmatmul.mubr.f32.gmra.mxu0 %v8578_v27  ;;  %v7813_v47 = vpop.f32.mrf.mxu1 }
 0x258   : > { %5796 = vmatprep.mubr.f32.mxu0 %v8581_v29 }
 0x259   : > { %v7816_v52 = vpop.f32.mrf.mxu0  ;;  %v7818_v5 = vpop.f32.mrf.mxu1  ;;  %5827 = vmatmul.mubr.f32.gmra.mxu1 %v7098_v42 }
 0x25b   : > { %v7821_v16 = vpop.f32.mrf.mxu0  ;;  %5797 = vmatmul.mubr.f32.gmra.mxu0 %v7098_v42  ;;  %v7824_v28 = vpop.f32.mrf.mxu1 }
 0x25d   : > { %v7826_v22 = vpop.f32.mrf.mxu0  ;;  %v7828_v20 = vpop.f32.mrf.mxu1 }
 0x25f   : > { %v7830_v27 = vpop.f32.mrf.mxu0  ;;  %v7832_v37 = vpop.f32.mrf.mxu1 }
 0x260   : > { %8669 = vst [vmem:[#allocation72_spill] sm:$0xff] %v7832_v37 }
 0x261   : > { %v7834_v29 = vpop.f32.mrf.mxu0  ;;  %v7836_v45 = vpop.f32.mrf.mxu1 }
 0x262   : > { %8670 = vst [vmem:[#allocation53_spill] sm:$0xff] %v7836_v45 }
 0x263   : > { %v7838_v59 = vpop.f32.mrf.mxu0  ;;  %v7840_v11 = vpop.f32.mrf.mxu1 }
 0x264   : > { %8671 = vst [vmem:[#allocation24_spill] sm:$0xff] %v7838_v59  ;;  %8672 = vst [vmem:[#allocation57_spill] sm:$0xff] %v7840_v11 }
 0x265   : > { %v7842_v6 = vpop.f32.mrf.mxu0  ;;  %v7844_v42 = vpop.f32.mrf.mxu1 }
 0x266   : > { %8673 = vst [vmem:[#allocation73_spill] sm:$0xff] %v7842_v6  ;;  %8674 = vst [vmem:[#allocation63_spill] sm:$0xff] %v7844_v42 }
 0x267   : > { %v7846_v1 = vpop.f32.mrf.mxu0  ;;  %v7848_v19 = vpop.f32.mrf.mxu1 }
 0x268   : > { %8675 = vst [vmem:[#allocation14_spill] sm:$0xff] %v7846_v1  ;;  %8676 = vst [vmem:[#allocation23_spill] sm:$0xff] %v7848_v19 }
 0x269   : > { %v7850_v54 = vpop.f32.mrf.mxu0  ;;  %v7852_v49 = vpop.f32.mrf.mxu1 }
 0x26a   : > { %8677 = vst [vmem:[#allocation2_spill] sm:$0xff] %v7850_v54  ;;  %8678 = vst [vmem:[#allocation81_spill] sm:$0xff] %v7852_v49 }
 0x26b   : > { %v7854_v37 = vpop.f32.mrf.mxu0  ;;  %v7856_v15 = vpop.f32.mrf.mxu1 }
 0x26c   : > { %8679 = vst [vmem:[#allocation5_spill] sm:$0xff] %v7854_v37  ;;  %8680 = vst [vmem:[#allocation18_spill] sm:$0xff] %v7856_v15 }
 0x26d   : > { %v7858_v45 = vpop.f32.mrf.mxu0  ;;  %v7860_v59 = vpop.f32.mrf.mxu1 }
 0x26e   : > { %8681 = vst [vmem:[#allocation8_spill] sm:$0xff] %v7858_v45  ;;  %8682 = vst [vmem:[#allocation28_spill] sm:$0xff] %v7860_v59 }
 0x26f   : > { %v7862_v11 = vpop.f32.mrf.mxu0  ;;  %v7864_v42 = vpop.f32.mrf.mxu1 }
 0x270   : > { %8683 = vst [vmem:[#allocation15_spill] sm:$0xff] %v7862_v11  ;;  %8684 = vst [vmem:[#allocation82_spill] sm:$0xff] %v7864_v42  ;;  %v3276_v42 = vadd.f32 %v7736_v17, %v7562_v3  ;;  %v3286_v17 = vadd.f32 %v7756_v51, %v7583_v35 }
 0x271   : > { %v7866_v1 = vpop.f32.mrf.mxu0  ;;  %v7868_v19 = vpop.f32.mrf.mxu1 }
 0x272   : > { %8685 = vst [vmem:[#allocation31_spill] sm:$0xff] %v7868_v19  ;;  %v3487_v35 = vadd.f32 %v7753_v25, %v3286_v17 }
 0x273   : > { %v7870_v54 = vpop.f32.mrf.mxu0  ;;  %v7872_v49 = vpop.f32.mrf.mxu1 }
 0x274   : > { %8686 = vst [vmem:[#allocation21_spill] sm:$0xff] %v7870_v54  ;;  %8687 = vst [vmem:[#allocation32_spill] sm:$0xff] %v7872_v49  ;;  %v3278_v49 = vadd.f32 %v7744_v14, %v7569_v18 }
 0x275   : > { %v7874_v37 = vpop.f32.mrf.mxu0  ;;  %v7876_v15 = vpop.f32.mrf.mxu1 }
 0x276   : > { %8688 = vst [vmem:[#allocation20_spill] sm:$0xff] %v7874_v37  ;;  %8689 = vst [vmem:[#allocation26_spill] sm:$0xff] %v7876_v15  ;;  %v3478_v3 = vadd.f32 %v7739_v62, %v3278_v49 }
 0x277   : > { %v7878_v45 = vpop.f32.mrf.mxu0  ;;  %v7880_v59 = vpop.f32.mrf.mxu1 }
 0x278   : > { %8690 = vst [vmem:[#allocation22_spill] sm:$0xff] %v7878_v45  ;;  %8691 = vst [vmem:[#allocation36_spill] sm:$0xff] %v7880_v59  ;;  %v3476_v59 = vadd.f32 %v7729_v48, %v3276_v42 }
 0x279   : > { %v7882_v11 = vpop.f32.mrf.mxu0  ;;  %v7884_v6 = vpop.f32.mrf.mxu1 }
 0x27a   : > { %8692 = vst [vmem:[#allocation25_spill] sm:$0xff] %v7882_v11  ;;  %8693 = vst [vmem:[#allocation41_spill] sm:$0xff] %v7884_v6  ;;  %v3284_v11 = vadd.f32 %v7750_v21, %v7576_v26  ;;  %v3292_v26 = vadd.f32 %v7762_v53, %v7590_v40  ;;  %v3300_v40 = vadd.f32 %v7774_v36, %v7600_v43 }
 0x27b   : > { %v7888_v19 = vpop.f32.mrf.mxu0  ;;  %v7890_v54 = vpop.f32.mrf.mxu1  ;;  %v3308_v43 = vadd.f32 %v7786_v55, %v7610_v63  ;;  %v3316_v63 = vadd.f32 %v7798_v60, %v7620_v9  ;;  %v3324_v9 = vadd.f32 %v7810_v32, %v7630_v44  ;;  %v3332_v44 = vadd.f32 %v7821_v16, %v7640_v38 }
 0x27c   : > { %8694 = vst [vmem:[#allocation33_spill] sm:$0xff] %v7888_v19  ;;  %8695 = vst [vmem:[#allocation3_spill] sm:$0xff] %v7890_v54  ;;  %v3485_v48 = vadd.f32 %v7746_v8, %v3284_v11  ;;  %v3494_v11 = vadd.f32 %v7758_v50, %v3292_v26  ;;  %v3503_v17 = vadd.f32 %v7770_v12, %v3300_v40 }
 0x27d   : > { %v7895_v15 = vpop.f32.mrf.mxu0  ;;  %v3883_v45 = vpop.f32.mrf.mxu1  ;;  %v3340_v38 = vadd.f32 %v7830_v27, %v7654_v33  ;;  %v8698_v33 = vld [vmem:[#allocation24_spill] sm:$0xff] }
 0x27e   : > { %8696 = vst [vmem:[#allocation38_spill] sm:$0xff] %v7895_v15 }
 0x27f   : > { %v3700_v6 = vpop.f32.mrf.mxu0  ;;  %v3885_v37 = vpop.f32.mrf.mxu1 }
 0x280   : > { %v3701_v54 = vadd.f32 %v3700_v6, %v3476_v59  ;;  %v3294_v6 = vadd.f32 %v7768_v7, %v7595_v61  ;;  %v3302_v61 = vadd.f32 %v7780_v4, %v7605_v31  ;;  %v3310_v31 = vadd.f32 %v7792_v24, %v7615_v57 }
 0x281   : > { %v3702_v18 = vpop.f32.mrf.mxu0  ;;  %v3890_v14 = vpop.f32.mrf.mxu1  ;;  %v3318_v57 = vadd.f32 %v7804_v58, %v7625_v56  ;;  %v3326_v56 = vadd.f32 %v7816_v52, %v7635_v2  ;;  %v3334_v2 = vadd.f32 %v7826_v22, %v7647_v10  ;;  %v3342_v10 = vadd.f32 %v7834_v29, %v7661_v0  ;;  %v8701_v0 = vld [vmem:[#allocation73_spill] sm:$0xff] }
 0x282   : > { %v3884_v21 = vadd.f32 %v3883_v45, %v3701_v54  ;;  %v3703_v49 = vadd.f32 %v3702_v18, %v3478_v3  ;;  %v3496_v53 = vadd.f32 %v7765_v39, %v3294_v6  ;;  %v3521_v6 = vadd.f32 %v7794_v30, %v3316_v63 }
 0x283   : > { %v3707_v62 = vpop.f32.mrf.mxu0  ;;  %v3892_v42 = vpop.f32.mrf.mxu1 }
 0x284   : > { %5110 = vst [vmem:[%s7906_s23] sm:$0xff] %v3884_v21  ;;  %v3886_v59 = vadd.f32 %v3885_v37, %v3703_v49  ;;  %v3708_v51 = vadd.f32 %v3707_v62, %v3485_v48  ;;  %v3512_v21 = vadd.f32 %v7782_v13, %v3308_v43  ;;  %v3514_v62 = vadd.f32 %v7789_v34, %v3310_v31 }
 0x285   : > { %v3709_v15 = vpop.f32.mrf.mxu0  ;;  %v3897_v19 = vpop.f32.mrf.mxu1 }
 0x286   : > { %5111 = vst [vmem:[%s7906_s23 + $0x8] sm:$0xff] %v3886_v59  ;;  %v3891_v54 = vadd.f32 %v3890_v14, %v3708_v51  ;;  %v3710_v45 = vadd.f32 %v3709_v15, %v3487_v35  ;;  %v3505_v14 = vadd.f32 %v7777_v23, %v3302_v61 }
 0x287   : > { %v3714_v8 = vpop.f32.mrf.mxu0  ;;  %v3899_v25 = vpop.f32.mrf.mxu1 }
 0x288   : > { %5113 = vst [vmem:[%s7906_s23 + $0x18] sm:$0xff] %v3891_v54  ;;  %v3893_v37 = vadd.f32 %v3892_v42, %v3710_v45  ;;  %v3715_v7 = vadd.f32 %v3714_v8, %v3494_v11  ;;  %v3523_v11 = vadd.f32 %v7801_v46, %v3318_v57  ;;  %v3530_v45 = vadd.f32 %v7806_v41, %v3324_v9  ;;  %v8706_v9 = vld [vmem:[#allocation30_spill] sm:$0xff] }
 0x289   : > { %v3716_v3 = vpop.f32.mrf.mxu0  ;;  %v3904_v50 = vpop.f32.mrf.mxu1 }
 0x28a   : > { %5114 = vst [vmem:[%s7906_s23 + $0x20] sm:$0xff] %v3893_v37  ;;  %v3898_v15 = vadd.f32 %v3897_v19, %v3715_v7  ;;  %v3717_v36 = vadd.f32 %v3716_v3, %v3496_v53  ;;  %v3532_v53 = vadd.f32 %v7813_v47, %v3326_v56  ;;  %v3539_v7 = vadd.f32 %v7818_v5, %v3332_v44 }
 0x28b   : > { %v3721_v18 = vpop.f32.mrf.mxu0  ;;  %v3906_v39 = vpop.f32.mrf.mxu1 }
 0x28c   : > { %5116 = vst [vmem:[%s7906_s23 + $0x30] sm:$0xff] %v3898_v15  ;;  %v3900_v4 = vadd.f32 %v3899_v25, %v3717_v36  ;;  %v3722_v48 = vadd.f32 %v3721_v18, %v3503_v17  ;;  %v3541_v17 = vadd.f32 %v7824_v28, %v3334_v2  ;;  %v3548_v36 = vadd.f32 %v7828_v20, %v3340_v38  ;;  %v8697_v18 = vld [vmem:[#allocation56_spill] sm:$0xff]  ;;  %v8712_v2 = vld [vmem:[#allocation34_spill] sm:$0xff] }
 0x28d   : > { %v3723_v26 = vpop.f32.mrf.mxu0  ;;  %v3911_v12 = vpop.f32.mrf.mxu1  ;;  %v3348_v27 = vadd.f32 %v8698_v33, %v8697_v18  ;;  %v8718_v18 = vld [vmem:[#allocation37_spill] sm:$0xff] }
 0x28e   : > { %5117 = vst [vmem:[%s7906_s23 + $0x38] sm:$0xff] %v3900_v4  ;;  %v3905_v19 = vadd.f32 %v3904_v50, %v3722_v48  ;;  %v3724_v55 = vadd.f32 %v3723_v26, %v3505_v14  ;;  %v8699_v4 = vld [vmem:[#allocation72_spill] sm:$0xff]  ;;  %v8700_v26 = vld [vmem:[#allocation17_spill] sm:$0xff]  ;;  %v3374_v33 = vadd.f32 %v7866_v1, %v8718_v18 }
 0x28f   : > { %v3728_v49 = vpop.f32.mrf.mxu0  ;;  %v3913_v23 = vpop.f32.mrf.mxu1  ;;  %v3550_v48 = vadd.f32 %v8699_v4, %v3342_v10  ;;  %v3350_v29 = vadd.f32 %v8701_v0, %v8700_v26  ;;  %v8721_v26 = vld [vmem:[#allocation21_spill] sm:$0xff]  ;;  %v8724_v1 = vld [vmem:[#allocation20_spill] sm:$0xff] }
 0x290   : > { %5119 = vst [vmem:[%s7906_s23 + $0x48] sm:$0xff] %v3905_v19  ;;  %v3907_v24 = vadd.f32 %v3906_v39, %v3724_v55  ;;  %v3729_v42 = vadd.f32 %v3728_v49, %v3512_v21  ;;  %v8702_v19 = vld [vmem:[#allocation53_spill] sm:$0xff] }
 0x291   : > { %v3730_v35 = vpop.f32.mrf.mxu0  ;;  %v3918_v13 = vpop.f32.mrf.mxu1  ;;  %v3557_v55 = vadd.f32 %v8702_v19, %v3348_v27  ;;  %v8703_v49 = vld [vmem:[#allocation61_spill] sm:$0xff] }
 0x292   : > { %5120 = vst [vmem:[%s7906_s23 + $0x50] sm:$0xff] %v3907_v24  ;;  %v3912_v60 = vadd.f32 %v3911_v12, %v3729_v42  ;;  %v3731_v59 = vadd.f32 %v3730_v35, %v3514_v62 }
 0x293   : > { %v3735_v51 = vpop.f32.mrf.mxu0  ;;  %v3920_v34 = vpop.f32.mrf.mxu1 }
 0x294   : > { %5122 = vst [vmem:[%s7906_s23 + $0x60] sm:$0xff] %v3912_v60  ;;  %v3914_v58 = vadd.f32 %v3913_v23, %v3731_v59  ;;  %v3736_v40 = vadd.f32 %v3735_v51, %v3521_v6  ;;  %v8704_v23 = vld [vmem:[#allocation14_spill] sm:$0xff] }
 0x295   : > { %v3737_v54 = vpop.f32.mrf.mxu0  ;;  %v3925_v30 = vpop.f32.mrf.mxu1  ;;  %v3356_v62 = vadd.f32 %v8704_v23, %v8703_v49  ;;  %v8707_v60 = vld [vmem:[#allocation2_spill] sm:$0xff] }
 0x296   : > { %5123 = vst [vmem:[%s7906_s23 + $0x68] sm:$0xff] %v3914_v58  ;;  %v3919_v32 = vadd.f32 %v3918_v13, %v3736_v40  ;;  %v3738_v8 = vadd.f32 %v3737_v54, %v3523_v11  ;;  %v8705_v13 = vld [vmem:[#allocation57_spill] sm:$0xff]  ;;  %v3358_v59 = vadd.f32 %v8707_v60, %v8706_v9  ;;  %v8708_v58 = vld [vmem:[#allocation63_spill] sm:$0xff]  ;;  %v8709_v54 = vld [vmem:[#allocation62_spill] sm:$0xff] }
 0x297   : > { %v3742_v25 = vpop.f32.mrf.mxu0  ;;  %v3927_v46 = vpop.f32.mrf.mxu1  ;;  %v3559_v6 = vadd.f32 %v8705_v13, %v3350_v29  ;;  %v3566_v40 = vadd.f32 %v8708_v58, %v3356_v62  ;;  %v8726_v13 = vld [vmem:[#allocation70_spill] sm:$0xff]  ;;  %v8729_v58 = vld [vmem:[#allocation45_spill] sm:$0xff] }
 0x298   : > { %5125 = vst [vmem:[%s7906_s23 + $0x78] sm:$0xff] %v3919_v32  ;;  %v3921_v52 = vadd.f32 %v3920_v34, %v3738_v8  ;;  %v3743_v61 = vadd.f32 %v3742_v25, %v3530_v45 }
 0x299   : > { %v3744_v37 = vpop.f32.mrf.mxu0  ;;  %v3932_v41 = vpop.f32.mrf.mxu1 }
 0x29a   : > { %5126 = vst [vmem:[%s7906_s23 + $0x80] sm:$0xff] %v3921_v52  ;;  %v3926_v16 = vadd.f32 %v3925_v30, %v3743_v61  ;;  %v3745_v3 = vadd.f32 %v3744_v37, %v3532_v53  ;;  %v8710_v30 = vld [vmem:[#allocation5_spill] sm:$0xff]  ;;  %v8713_v52 = vld [vmem:[#allocation8_spill] sm:$0xff] }
 0x29b   : > { %v3749_v50 = vpop.f32.mrf.mxu0  ;;  %v3934_v47 = vpop.f32.mrf.mxu1  ;;  %v3364_v45 = vadd.f32 %v8710_v30, %v8709_v54  ;;  %v3366_v61 = vadd.f32 %v8713_v52, %v8712_v2 }
 0x29c   : > { %5128 = vst [vmem:[%s7906_s23 + $0x90] sm:$0xff] %v3926_v16  ;;  %v3928_v22 = vadd.f32 %v3927_v46, %v3745_v3  ;;  %v3750_v43 = vadd.f32 %v3749_v50, %v3539_v7  ;;  %v8711_v46 = vld [vmem:[#allocation23_spill] sm:$0xff]  ;;  %v8714_v16 = vld [vmem:[#allocation81_spill] sm:$0xff]  ;;  %v8715_v50 = vld [vmem:[#allocation66_spill] sm:$0xff] }
 0x29d   : > { %v3751_v15 = vpop.f32.mrf.mxu0  ;;  %v3939_v5 = vpop.f32.mrf.mxu1  ;;  %v3568_v53 = vadd.f32 %v8711_v46, %v3358_v59  ;;  %v3575_v3 = vadd.f32 %v8714_v16, %v3364_v45  ;;  %v8732_v46 = vld [vmem:[#allocation16_spill] sm:$0xff]  ;;  %v8735_v16 = vld [vmem:[#allocation49_spill] sm:$0xff] }
 0x29e   : > { %5129 = vst [vmem:[%s7906_s23 + $0x98] sm:$0xff] %v3928_v22  ;;  %v3933_v39 = vadd.f32 %v3932_v41, %v3750_v43  ;;  %v3752_v14 = vadd.f32 %v3751_v15, %v3541_v17 }
 0x29f   : > { %v3756_v31 = vpop.f32.mrf.mxu0  ;;  %v3941_v28 = vpop.f32.mrf.mxu1 }
 0x2a0   : > { %5131 = vst [vmem:[%s7906_s23 + $0xa8] sm:$0xff] %v3933_v39  ;;  %v3935_v12 = vadd.f32 %v3934_v47, %v3752_v14  ;;  %v3757_v21 = vadd.f32 %v3756_v31, %v3548_v36  ;;  %v8716_v47 = vld [vmem:[#allocation15_spill] sm:$0xff] }
 0x2a1   : > { %v3758_v63 = vpop.f32.mrf.mxu0  ;;  %v3946_v20 = vpop.f32.mrf.mxu1  ;;  %v3372_v17 = vadd.f32 %v8716_v47, %v8715_v50 }
 0x2a2   : > { %5132 = vst [vmem:[%s7906_s23 + $0xb0] sm:$0xff] %v3935_v12  ;;  %v3940_v57 = vadd.f32 %v3939_v5, %v3757_v21  ;;  %v3759_v24 = vadd.f32 %v3758_v63, %v3550_v48  ;;  %v8717_v5 = vld [vmem:[#allocation18_spill] sm:$0xff]  ;;  %v8720_v48 = vld [vmem:[#allocation67_spill] sm:$0xff] }
 0x2a3   : > { %v3763_v42 = vpop.f32.mrf.mxu0  ;;  %v3948_v35 = vpop.f32.mrf.mxu1  ;;  %v3577_v36 = vadd.f32 %v8717_v5, %v3366_v61  ;;  %v3380_v0 = vadd.f32 %v8721_v26, %v8720_v48 }
 0x2a4   : > { %5134 = vst [vmem:[%s7906_s23 + $0xc0] sm:$0xff] %v3940_v57  ;;  %v3942_v51 = vadd.f32 %v3941_v28, %v3759_v24  ;;  %v3764_v34 = vadd.f32 %v3763_v42, %v3557_v55  ;;  %v8719_v28 = vld [vmem:[#allocation28_spill] sm:$0xff]  ;;  %v8725_v42 = vld [vmem:[#allocation31_spill] sm:$0xff] }
 0x2a5   : > { %v3765_v11 = vpop.f32.mrf.mxu0  ;;  %v3953_v56 = vpop.f32.mrf.mxu1  ;;  %v3584_v4 = vadd.f32 %v8719_v28, %v3372_v17  ;;  %v8723_v55 = vld [vmem:[#allocation40_spill] sm:$0xff] }
 0x2a6   : > { %5135 = vst [vmem:[%s7906_s23 + $0xc8] sm:$0xff] %v3942_v51  ;;  %v3947_v44 = vadd.f32 %v3946_v20, %v3764_v34  ;;  %v3766_v32 = vadd.f32 %v3765_v11, %v3559_v6  ;;  %v8722_v20 = vld [vmem:[#allocation82_spill] sm:$0xff]  ;;  %v3382_v49 = vadd.f32 %v8724_v1, %v8723_v55  ;;  %v8728_v11 = vld [vmem:[#allocation32_spill] sm:$0xff] }
 0x2a7   : > { %v3770_v8 = vpop.f32.mrf.mxu0  ;;  %v3955_v25 = vpop.f32.mrf.mxu1  ;;  %v3586_v19 = vadd.f32 %v8722_v20, %v3374_v33  ;;  %v8727_v6 = vld [vmem:[#allocation22_spill] sm:$0xff] }
 0x2a8   : > { %5137 = vst [vmem:[%s7906_s23 + $0xd8] sm:$0xff] %v3947_v44  ;;  %v3949_v37 = vadd.f32 %v3948_v35, %v3766_v32  ;;  %v3771_v41 = vadd.f32 %v3770_v8, %v3566_v40  ;;  %v3593_v35 = vadd.f32 %v8725_v42, %v3380_v0  ;;  %v3388_v9 = vadd.f32 %v8727_v6, %v8726_v13  ;;  %v8730_v40 = vld [vmem:[#allocation25_spill] sm:$0xff]  ;;  %v8731_v8 = vld [vmem:[#allocation26_spill] sm:$0xff] }
 0x2a9   : > { %v3772_v7 = vpop.f32.mrf.mxu0  ;;  %v3960_v38 = vpop.f32.mrf.mxu1  ;;  %v3390_v54 = vadd.f32 %v8730_v40, %v8729_v58 }
 0x2aa   : > { %5138 = vst [vmem:[%s7906_s23 + $0xe0] sm:$0xff] %v3949_v37  ;;  %v3954_v10 = vadd.f32 %v3953_v56, %v3771_v41  ;;  %v3773_v22 = vadd.f32 %v3772_v7, %v3568_v53  ;;  %v3595_v56 = vadd.f32 %v8728_v11, %v3382_v49  ;;  %v8733_v53 = vld [vmem:[#allocation33_spill] sm:$0xff]  ;;  %v8734_v7 = vld [vmem:[#allocation36_spill] sm:$0xff] }
 0x2ab   : > { %v3777_v43 = vpop.f32.mrf.mxu0  ;;  %v3962_v15 = vpop.f32.mrf.mxu1  ;;  %v3396_v2 = vadd.f32 %v8733_v53, %v8732_v46 }
 0x2ac   : > { %5140 = vst [vmem:[%s7906_s23 + $0xf0] sm:$0xff] %v3954_v10  ;;  %v3956_v27 = vadd.f32 %v3955_v25, %v3773_v22  ;;  %v3778_v39 = vadd.f32 %v3777_v43, %v3575_v3  ;;  %v3602_v25 = vadd.f32 %v8731_v8, %v3388_v9  ;;  %v8736_v3 = vld [vmem:[#allocation38_spill] sm:$0xff]  ;;  %v8737_v43 = vld [vmem:[#allocation41_spill] sm:$0xff] }
 0x2ad   : > { %v3779_v14 = vpop.f32.mrf.mxu0  ;;  %v3967_v31 = vpop.f32.mrf.mxu1  ;;  %v3398_v50 = vadd.f32 %v8736_v3, %v8735_v16 }
 0x2ae   : > { %5141 = vst [vmem:[%s7906_s23 + $0xf8] sm:$0xff] %v3956_v27  ;;  %v3961_v29 = vadd.f32 %v3960_v38, %v3778_v39  ;;  %v3780_v12 = vadd.f32 %v3779_v14, %v3577_v36  ;;  %v3604_v38 = vadd.f32 %v8734_v7, %v3390_v54  ;;  %v8738_v27 = vld [vmem:[#allocation3_spill] sm:$0xff] }
 0x2af   : > { %v3784_v21 = vpop.f32.mrf.mxu0  ;;  %v3969_v63 = vpop.f32.mrf.mxu1  ;;  %v3613_v39 = vadd.f32 %v8738_v27, %v3398_v50 }
 0x2b0   : > { %5143 = vst [vmem:[%s7906_s23 + $0x108] sm:$0xff] %v3961_v29  ;;  %v3963_v23 = vadd.f32 %v3962_v15, %v3780_v12  ;;  %v3785_v62 = vadd.f32 %v3784_v21, %v3584_v4  ;;  %v3611_v15 = vadd.f32 %v8737_v43, %v3396_v2 }
 0x2b1   : > { %v3786_v57 = vpop.f32.mrf.mxu0  ;;  %v3974_v24 = vpop.f32.mrf.mxu1 }
 0x2b2   : > { %5144 = vst [vmem:[%s7906_s23 + $0x110] sm:$0xff] %v3963_v23  ;;  %v3968_v60 = vadd.f32 %v3967_v31, %v3785_v62  ;;  %v3787_v59 = vadd.f32 %v3786_v57, %v3586_v19 }
 0x2b3   : > { %v3791_v51 = vpop.f32.mrf.mxu0  ;;  %v3976_v34 = vpop.f32.mrf.mxu1 }
 0x2b4   : > { %5146 = vst [vmem:[%s7906_s23 + $0x120] sm:$0xff] %v3968_v60  ;;  %v3970_v30 = vadd.f32 %v3969_v63, %v3787_v59  ;;  %v3792_v45 = vadd.f32 %v3791_v51, %v3593_v35 }
 0x2b5   : > { %v3793_v44 = vpop.f32.mrf.mxu0  ;;  %v3981_v32 = vpop.f32.mrf.mxu1 }
 0x2b6   : > { %5147 = vst [vmem:[%s7906_s23 + $0x128] sm:$0xff] %v3970_v30  ;;  %v3975_v52 = vadd.f32 %v3974_v24, %v3792_v45  ;;  %v3794_v61 = vadd.f32 %v3793_v44, %v3595_v56 }
 0x2b7   : > { %v3798_v37 = vpop.f32.mrf.mxu0  ;;  %v3983_v41 = vpop.f32.mrf.mxu1 }
 0x2b8   : > { %5149 = vst [vmem:[%s7906_s23 + $0x138] sm:$0xff] %v3975_v52  ;;  %v3977_v47 = vadd.f32 %v3976_v34, %v3794_v61  ;;  %v3799_v17 = vadd.f32 %v3798_v37, %v3602_v25 }
 0x2b9   : > { %v3800_v10 = vpop.f32.mrf.mxu0  ;;  %v3988_v22 = vpop.f32.mrf.mxu1 }
 0x2ba   : > { %5150 = vst [vmem:[%s7906_s23 + $0x140] sm:$0xff] %v3977_v47  ;;  %v3982_v5 = vadd.f32 %v3981_v32, %v3799_v17  ;;  %v3801_v36 = vadd.f32 %v3800_v10, %v3604_v38 }
 0x2bb   : > { %v3805_v18 = vpop.f32.mrf.mxu0  ;;  %v3990_v33 = vpop.f32.mrf.mxu1 }
 0x2bc   : > { %5152 = vst [vmem:[%s7906_s23 + $0x150] sm:$0xff] %v3982_v5  ;;  %v3984_v14 = vadd.f32 %v3983_v41, %v3801_v36  ;;  %v3806_v31 = vadd.f32 %v3805_v18, %v3611_v15 }
 0x2bd   : > { %v3807_v28 = vpop.f32.mrf.mxu0  ;;  %v8023_v4 = vpop.f32.mrf.mxu1 }
 0x2be   : > { %5153 = vst [vmem:[%s7906_s23 + $0x158] sm:$0xff] %v3984_v14  ;;  %v3989_v48 = vadd.f32 %v3988_v22, %v3806_v31  ;;  %v3808_v26 = vadd.f32 %v3807_v28, %v3613_v39  ;;  %v8747_v31 = vld [vmem:[#allocation19_spill] sm:$0xff] }
 0x2bf   : > { %v5657_v0 = vpop.f32.mrf.mxu0  ;;  %v8026_v29 = vpop.f32.mrf.mxu1 }
 0x2c0   : > { %5155 = vst [vmem:[%s7906_s23 + $0x168] sm:$0xff] %v3989_v48  ;;  %v3991_v12 = vadd.f32 %v3990_v33, %v3808_v26  ;;  %v8745_v33 = vld [vmem:[#allocation13_spill] sm:$0xff] }
 0x2c1   : > { %v4067_v21 = vpop.f32.mrf.mxu0  ;;  %v8029_v63 = vpop.f32.mrf.mxu1  ;;  %v4078_v27 = vadd.f32 %v5657_v0, %v8745_v33  ;;  %v8753_v33 = vld [vmem:[#allocation4_spill] sm:$0xff] }
 0x2c2   : > { %5156 = vst [vmem:[%s7906_s23 + $0x170] sm:$0xff] %v3991_v12  ;;  %v4068_v28 = vadd.f32 %v4067_v21, %v8747_v31 }
 0x2c3   : > { %v5660_v20 = vpop.f32.mrf.mxu0  ;;  %v8032_v19 = vpop.f32.mrf.mxu1  ;;  %v4310_v12 = vadd.f32 %v8023_v4, %v4078_v27  ;;  %v8756_v27 = vld [vmem:[#allocation10_spill] sm:$0xff] }
 0x2c4   : > { %v4304_v0 = vadd.f32 %v8026_v29, %v4068_v28 }
 0x2c5   : > { %v4087_v55 = vpop.f32.mrf.mxu0  ;;  %v8034_v1 = vpop.f32.mrf.mxu1 }
 0x2c7   : > { %v5663_v49 = vpop.f32.mrf.mxu0  ;;  %v8036_v23 = vpop.f32.mrf.mxu1 }
 0x2c9   : > { %v4107_v62 = vpop.f32.mrf.mxu0  ;;  %v8038_v57 = vpop.f32.mrf.mxu1 }
 0x2cb   : > { %v8040_v24 = vpop.f32.mrf.mxu0  ;;  %v8042_v42 = vpop.f32.mrf.mxu1 }
 0x2cd   : > { %v8044_v35 = vpop.f32.mrf.mxu0  ;;  %v8046_v13 = vpop.f32.mrf.mxu1 }
 0x2cf   : > { %v8048_v6 = vpop.f32.mrf.mxu0  ;;  %v8050_v9 = vpop.f32.mrf.mxu1 }
 0x2d1   : > { %v8052_v60 = vpop.f32.mrf.mxu0  ;;  %v8054_v59 = vpop.f32.mrf.mxu1 }
 0x2d3   : > { %v8056_v51 = vpop.f32.mrf.mxu0  ;;  %v8058_v34 = vpop.f32.mrf.mxu1 }
 0x2d5   : > { %v8060_v11 = vpop.f32.mrf.mxu0  ;;  %v8062_v56 = vpop.f32.mrf.mxu1 }
 0x2d7   : > { %v8064_v58 = vpop.f32.mrf.mxu0  ;;  %v8066_v40 = vpop.f32.mrf.mxu1 }
 0x2d8   : > { %8739 = vst [vmem:[#allocation46_spill] sm:$0xff] %v8066_v40 }
 0x2d9   : > { %v8068_v54 = vpop.f32.mrf.mxu0  ;;  %v8070_v30 = vpop.f32.mrf.mxu1 }
 0x2da   : > { %8740 = vst [vmem:[#allocation12_spill] sm:$0xff] %v8070_v30 }
 0x2db   : > { %v8072_v45 = vpop.f32.mrf.mxu0  ;;  %v8074_v44 = vpop.f32.mrf.mxu1 }
 0x2dc   : > { %8741 = vst [vmem:[#allocation50_spill] sm:$0xff] %v8074_v44  ;;  %v8750_v44 = vld [vmem:[#allocation27_spill] sm:$0xff] }
 0x2dd   : > { %v8076_v32 = vpop.f32.mrf.mxu0  ;;  %v5747_v8 = vpop.f32.mrf.mxu1  ;;  %v4098_v30 = vadd.f32 %v5660_v20, %v8750_v44  ;;  %v4108_v20 = vadd.f32 %v4107_v62, %v8756_v27 }
 0x2de   : > { %8742 = vst [vmem:[#allocation42_spill] sm:$0xff] %v8076_v32 }
 0x2df   : > { %v5717_v25 = vpop.f32.mrf.mxu0  ;;  %v4652_v46 = vpop.f32.mrf.mxu1  ;;  %v4322_v31 = vadd.f32 %v8029_v63, %v4098_v30  ;;  %v4328_v62 = vadd.f32 %v8036_v23, %v4108_v20 }
 0x2e0   : > { %v4479_v40 = vadd.f32 %v5717_v25, %v4310_v12 }
 0x2e1   : > { %v4471_v53 = vpop.f32.mrf.mxu0  ;;  %v5750_v2 = vpop.f32.mrf.mxu1 }
 0x2e2   : > { %v4472_v4 = vadd.f32 %v4471_v53, %v4304_v0  ;;  %v4661_v29 = vadd.f32 %v5747_v8, %v4479_v40  ;;  %v8758_v53 = vld [vmem:[#allocation29_spill] sm:$0xff] }
 0x2e3   : > { %v5720_v52 = vpop.f32.mrf.mxu0  ;;  %v4668_v61 = vpop.f32.mrf.mxu1 }
 0x2e4   : > { %v4493_v28 = vadd.f32 %v5720_v52, %v4322_v31  ;;  %v4653_v63 = vadd.f32 %v4652_v46, %v4472_v4  ;;  %v8759_v31 = vld [vmem:[#allocation35_spill] sm:$0xff] }
 0x2e5   : > { %v4485_v37 = vpop.f32.mrf.mxu0  ;;  %v8078_v41 = vpop.f32.mrf.mxu1 }
 0x2e6   : > { %v4677_v40 = vadd.f32 %v5750_v2, %v4493_v28  ;;  %v8760_v2 = vld [vmem:[#allocation39_spill] sm:$0xff] }
 0x2e7   : > { %v5723_v7 = vpop.f32.mrf.mxu0  ;;  %v8080_v38 = vpop.f32.mrf.mxu1 }
 0x2e9   : > { %v4499_v16 = vpop.f32.mrf.mxu0  ;;  %v8082_v3 = vpop.f32.mrf.mxu1 }
 0x2eb   : > { %v8084_v50 = vpop.f32.mrf.mxu0  ;;  %v8086_v47 = vpop.f32.mrf.mxu1 }
 0x2ed   : > { %v8088_v17 = vpop.f32.mrf.mxu0  ;;  %v8090_v10 = vpop.f32.mrf.mxu1 }
 0x2ef   : > { %v8092_v22 = vpop.f32.mrf.mxu0  ;;  %v8094_v43 = vpop.f32.mrf.mxu1 }
 0x2f1   : > { %v8096_v15 = vpop.f32.mrf.mxu0  ;;  %v8098_v5 = vpop.f32.mrf.mxu1 }
 0x2f2   : > { %8743 = vst [vmem:[#allocation74_spill] sm:$0xff] %v8098_v5 }
 0x2f3   : > { %v8100_v36 = vpop.f32.mrf.mxu0  ;;  %v8102_v18 = vpop.f32.mrf.mxu1 }
 0x2f4   : > { %8744 = vst [vmem:[#allocation47_spill] sm:$0xff] %v8102_v18  ;;  %v4088_v18 = vadd.f32 %v4087_v55, %v8753_v33  ;;  %v8757_v55 = vld [vmem:[#allocation11_spill] sm:$0xff] }
 0x2f5   : > { %v8105_v39 = vpop.f32.mrf.mxu0  ;;  %v8107_v14 = vpop.f32.mrf.mxu1  ;;  %v4138_v25 = vadd.f32 %v8040_v24, %v8757_v55 }
 0x2f6   : > { %8746 = vst [vmem:[#allocation52_spill] sm:$0xff] %v8107_v14 }
 0x2f7   : > { %v8110_v48 = vpop.f32.mrf.mxu0  ;;  %v8112_v26 = vpop.f32.mrf.mxu1  ;;  %v4346_v24 = vadd.f32 %v8038_v57, %v4138_v25 }
 0x2f8   : > { %8748 = vst [vmem:[#allocation75_spill] sm:$0xff] %v8110_v48  ;;  %8749 = vst [vmem:[#allocation58_spill] sm:$0xff] %v8112_v26  ;;  %v8755_v26 = vld [vmem:[#allocation7_spill] sm:$0xff] }
 0x2f9   : > { %v8116_v5 = vpop.f32.mrf.mxu0  ;;  %v8118_v32 = vpop.f32.mrf.mxu1  ;;  %v4118_v48 = vadd.f32 %v5663_v49, %v8755_v26  ;;  %v4128_v26 = vadd.f32 %v8044_v35, %v8758_v53  ;;  %v4521_v27 = vadd.f32 %v8084_v50, %v4346_v24 }
 0x2fa   : > { %8751 = vst [vmem:[#allocation48_spill] sm:$0xff] %v8116_v5  ;;  %8752 = vst [vmem:[#allocation76_spill] sm:$0xff] %v8118_v32  ;;  %v4316_v32 = vadd.f32 %v8032_v19, %v4088_v18 }
 0x2fb   : > { %v8122_v14 = vpop.f32.mrf.mxu0  ;;  %v8124_v21 = vpop.f32.mrf.mxu1  ;;  %v4340_v35 = vadd.f32 %v8042_v42, %v4128_v26 }
 0x2fc   : > { %8754 = vst [vmem:[#allocation54_spill] sm:$0xff] %v8124_v21  ;;  %v4334_v21 = vadd.f32 %v8034_v1, %v4118_v48  ;;  %v4486_v30 = vadd.f32 %v4485_v37, %v4316_v32  ;;  %v4158_v1 = vadd.f32 %v8048_v6, %v8759_v31  ;;  %v4500_v48 = vadd.f32 %v4499_v16, %v4328_v62  ;;  %v8761_v16 = vld [vmem:[#allocation43_spill] sm:$0xff]  ;;  %v8765_v31 = vld [vmem:[#allocation6_spill] sm:$0xff] }
 0x2fd   : > { %v8129_v44 = vpop.f32.mrf.mxu0  ;;  %v5807_v5 = vpop.f32.mrf.mxu1  ;;  %v8763_v62 = vld [vmem:[#allocation55_spill] sm:$0xff] }
 0x2fe   : > { %v4507_v8 = vadd.f32 %v5723_v7, %v4334_v21  ;;  %v4669_v37 = vadd.f32 %v4668_v61, %v4486_v30  ;;  %v4148_v7 = vadd.f32 %v8052_v60, %v8760_v2  ;;  %v4358_v61 = vadd.f32 %v8046_v13, %v4158_v1 }
 0x2ff   : > { %v5777_v12 = vpop.f32.mrf.mxu0  ;;  %v5016_v33 = vpop.f32.mrf.mxu1  ;;  %v4685_v55 = vadd.f32 %v8080_v38, %v4500_v48  ;;  %v4514_v60 = vadd.f32 %v8088_v17, %v4340_v35  ;;  %v4709_v30 = vadd.f32 %v8082_v3, %v4521_v27  ;;  %v4198_v53 = vadd.f32 %v8064_v58, %v8763_v62 }
 0x300   : > { %v4859_v49 = vadd.f32 %v5777_v12, %v4661_v29  ;;  %v4693_v57 = vadd.f32 %v8078_v41, %v4507_v8  ;;  %v4178_v29 = vadd.f32 %v8056_v51, %v8761_v16  ;;  %v4352_v50 = vadd.f32 %v8050_v9, %v4148_v7  ;;  %v8762_v12 = vld [vmem:[#allocation44_spill] sm:$0xff]  ;;  %v8769_v7 = vld [vmem:[#allocation74_spill] sm:$0xff] }
 0x301   : > { %v4852_v0 = vpop.f32.mrf.mxu0  ;;  %v5810_v19 = vpop.f32.mrf.mxu1  ;;  %v4535_v51 = vadd.f32 %v8092_v22, %v4358_v61  ;;  %v4218_v1 = vadd.f32 %v8072_v45, %v8765_v31  ;;  %v8770_v45 = vld [vmem:[#allocation75_spill] sm:$0xff] }
 0x302   : > { %v5023_v52 = vadd.f32 %v5807_v5, %v4859_v49  ;;  %v4853_v18 = vadd.f32 %v4852_v0, %v4653_v63  ;;  %v4370_v17 = vadd.f32 %v8054_v59, %v4178_v29  ;;  %v4701_v0 = vadd.f32 %v8086_v47, %v4514_v60  ;;  %v8772_v61 = vld [vmem:[#allocation47_spill] sm:$0xff]  ;;  %v8773_v29 = vld [vmem:[#allocation48_spill] sm:$0xff]  ;;  %v8774_v60 = vld [vmem:[#allocation50_spill] sm:$0xff] }
 0x303   : > { %v5780_v32 = vpop.f32.mrf.mxu0  ;;  %v5028_v46 = vpop.f32.mrf.mxu1 }
 0x304   : > { %5115 = vst [vmem:[%s7906_s23 + $0x28] sm:$0xff] %v5023_v52  ;;  %v5017_v23 = vadd.f32 %v5016_v33, %v4853_v18  ;;  %v4871_v4 = vadd.f32 %v5780_v32, %v4677_v40  ;;  %v4168_v33 = vadd.f32 %v8060_v11, %v8762_v12  ;;  %v4528_v11 = vadd.f32 %v8096_v15, %v4352_v50  ;;  %v8764_v40 = vld [vmem:[#allocation60_spill] sm:$0xff] }
 0x305   : > { %v4864_v5 = vpop.f32.mrf.mxu0  ;;  %v5813_v21 = vpop.f32.mrf.mxu1  ;;  %v4188_v8 = vadd.f32 %v8068_v54, %v8764_v40  ;;  %v4725_v18 = vadd.f32 %v8090_v10, %v4535_v51  ;;  %v4549_v58 = vadd.f32 %v8100_v36, %v4370_v17  ;;  %v4382_v15 = vadd.f32 %v8062_v56, %v4198_v53  ;;  %v8766_v36 = vld [vmem:[#allocation46_spill] sm:$0xff]  ;;  %v8775_v12 = vld [vmem:[#allocation52_spill] sm:$0xff] }
 0x306   : > { %5112 = vst [vmem:[%s7906_s23 + $0x10] sm:$0xff] %v5017_v23  ;;  %v5035_v6 = vadd.f32 %v5810_v19, %v4871_v4  ;;  %v4865_v20 = vadd.f32 %v4864_v5, %v4669_v37  ;;  %v4364_v22 = vadd.f32 %v8058_v34, %v4168_v33  ;;  %v8767_v23 = vld [vmem:[#allocation9_spill] sm:$0xff]  ;;  %v8768_v4 = vld [vmem:[#allocation42_spill] sm:$0xff] }
 0x307   : > { %v5783_v28 = vpop.f32.mrf.mxu0  ;;  %v5040_v42 = vpop.f32.mrf.mxu1  ;;  %v4376_v48 = vadd.f32 %v8766_v36, %v4188_v8  ;;  %v4208_v35 = vadd.f32 %v8768_v4, %v8767_v23  ;;  %v4741_v5 = vadd.f32 %v8769_v7, %v4549_v58  ;;  %v8778_v40 = vld [vmem:[#allocation54_spill] sm:$0xff] }
 0x308   : > { %5121 = vst [vmem:[%s7906_s23 + $0x58] sm:$0xff] %v5035_v6  ;;  %v5029_v25 = vadd.f32 %v5028_v46, %v4865_v20  ;;  %v4883_v41 = vadd.f32 %v5783_v28, %v4693_v57  ;;  %v4717_v46 = vadd.f32 %v8094_v43, %v4528_v11  ;;  %v4542_v54 = vadd.f32 %v8105_v39, %v4364_v22  ;;  %v8771_v39 = vld [vmem:[#allocation12_spill] sm:$0xff] }
 0x309   : > { %v4876_v63 = vpop.f32.mrf.mxu0  ;;  %v5816_v13 = vpop.f32.mrf.mxu1  ;;  %v4394_v27 = vadd.f32 %v8771_v39, %v4218_v1  ;;  %v4556_v28 = vadd.f32 %v8773_v29, %v4376_v48 }
 0x30a   : > { %5118 = vst [vmem:[%s7906_s23 + $0x40] sm:$0xff] %v5029_v25  ;;  %v5047_v49 = vadd.f32 %v5813_v21, %v4883_v41  ;;  %v4877_v38 = vadd.f32 %v4876_v63, %v4685_v55  ;;  %v4563_v21 = vadd.f32 %v8770_v45, %v4382_v15  ;;  %v4733_v16 = vadd.f32 %v8772_v61, %v4542_v54 }
 0x30b   : > { %v5786_v26 = vpop.f32.mrf.mxu0  ;;  %v5052_v9 = vpop.f32.mrf.mxu1  ;;  %v4388_v25 = vadd.f32 %v8774_v60, %v4208_v35  ;;  %v4577_v63 = vadd.f32 %v8122_v14, %v4394_v27 }
 0x30c   : > { %5127 = vst [vmem:[%s7906_s23 + $0x88] sm:$0xff] %v5047_v49  ;;  %v5041_v19 = vadd.f32 %v5040_v42, %v4877_v38  ;;  %v4895_v3 = vadd.f32 %v5786_v26, %v4709_v30  ;;  %v4757_v33 = vadd.f32 %v8775_v12, %v4563_v21  ;;  %v8776_v38 = vld [vmem:[#allocation58_spill] sm:$0xff] }
 0x30d   : > { %v4888_v52 = vpop.f32.mrf.mxu0  ;;  %v5819_v59 = vpop.f32.mrf.mxu1  ;;  %v4749_v17 = vadd.f32 %v8776_v38, %v4556_v28  ;;  %v4570_v62 = vadd.f32 %v8129_v44, %v4388_v25 }
 0x30e   : > { %5124 = vst [vmem:[%s7906_s23 + $0x70] sm:$0xff] %v5041_v19  ;;  %v5059_v24 = vadd.f32 %v5816_v13, %v4895_v3  ;;  %v4889_v47 = vadd.f32 %v4888_v52, %v4701_v0  ;;  %v8777_v0 = vld [vmem:[#allocation76_spill] sm:$0xff] }
 0x30f   : > { %v5789_v32 = vpop.f32.mrf.mxu0  ;;  %v5064_v34 = vpop.f32.mrf.mxu1  ;;  %v4773_v11 = vadd.f32 %v8777_v0, %v4577_v63  ;;  %v4765_v8 = vadd.f32 %v8778_v40, %v4570_v62 }
 0x310   : > { %5133 = vst [vmem:[%s7906_s23 + $0xb8] sm:$0xff] %v5059_v24  ;;  %v5053_v37 = vadd.f32 %v5052_v9, %v4889_v47  ;;  %v4907_v10 = vadd.f32 %v5789_v32, %v4725_v18 }
 0x311   : > { %v4900_v2 = vpop.f32.mrf.mxu0  ;;  %v5822_v56 = vpop.f32.mrf.mxu1 }
 0x312   : > { %5130 = vst [vmem:[%s7906_s23 + $0xa0] sm:$0xff] %v5053_v37  ;;  %v5071_v43 = vadd.f32 %v5819_v59, %v4907_v10  ;;  %v4901_v57 = vadd.f32 %v4900_v2, %v4717_v46 }
 0x313   : > { %v5792_v6 = vpop.f32.mrf.mxu0  ;;  %v5076_v20 = vpop.f32.mrf.mxu1 }
 0x314   : > { %5139 = vst [vmem:[%s7906_s23 + $0xe8] sm:$0xff] %v5071_v43  ;;  %v5065_v42 = vadd.f32 %v5064_v34, %v4901_v57  ;;  %v4919_v55 = vadd.f32 %v5792_v6, %v4741_v5 }
 0x315   : > { %v4912_v41 = vpop.f32.mrf.mxu0  ;;  %v5825_v50 = vpop.f32.mrf.mxu1 }
 0x316   : > { %5136 = vst [vmem:[%s7906_s23 + $0xd0] sm:$0xff] %v5065_v42  ;;  %v5083_v13 = vadd.f32 %v5822_v56, %v4919_v55  ;;  %v4913_v30 = vadd.f32 %v4912_v41, %v4733_v16 }
 0x317   : > { %v5795_v51 = vpop.f32.mrf.mxu0  ;;  %v5088_v49 = vpop.f32.mrf.mxu1 }
 0x318   : > { %5145 = vst [vmem:[%s7906_s23 + $0x118] sm:$0xff] %v5083_v13  ;;  %v5077_v53 = vadd.f32 %v5076_v20, %v4913_v30  ;;  %v4931_v26 = vadd.f32 %v5795_v51, %v4757_v33 }
 0x319   : > { %v4924_v9 = vpop.f32.mrf.mxu0  ;;  %v5828_v22 = vpop.f32.mrf.mxu1 }
 0x31a   : > { %5142 = vst [vmem:[%s7906_s23 + $0x100] sm:$0xff] %v5077_v53  ;;  %v5095_v14 = vadd.f32 %v5825_v50, %v4931_v26  ;;  %v4925_v19 = vadd.f32 %v4924_v9, %v4749_v17 }
 0x31b   : > { %v5798_v3 = vpop.f32.mrf.mxu0  ;;  %v5100_v24 = vpop.f32.mrf.mxu1 }
 0x31c   : > { %5151 = vst [vmem:[%s7906_s23 + $0x148] sm:$0xff] %v5095_v14  ;;  %v5089_v52 = vadd.f32 %v5088_v49, %v4925_v19  ;;  %v4943_v59 = vadd.f32 %v5798_v3, %v4773_v11 }
 0x31d   : > { %v4936_v44 = vpop.f32.mrf.mxu0 }
 0x31e   : > { %5148 = vst [vmem:[%s7906_s23 + $0x130] sm:$0xff] %v5089_v52  ;;  %v5107_v18 = vadd.f32 %v5828_v22, %v4943_v59  ;;  %v4937_v58 = vadd.f32 %v4936_v44, %v4765_v8 }
 0x320   : > { %5157 = vst [vmem:[%s7906_s23 + $0x178] sm:$0xff] %v5107_v18  ;;  %v5101_v47 = vadd.f32 %v5100_v24, %v4937_v58 }
 0x322   : > { %5154 = vst [vmem:[%s7906_s23 + $0x160] sm:$0xff] %v5101_v47 }
 0x323 PF: > { %s14_s15 = sadd.s32 1, %s5845_s15  }
 0x324   : > { %p11_p4 = scmp.ge.s32.totalorder %s14_s15, 6  }
 0x326   :  { %13 = sbr.rel (!%p11_p4) target bundleno = 1 (0x1), region = 69 }

</bundles_post_ra>
